<compile_context>
chip_gen: v7x
topology: tpu7x:2x2x1
jax: 0.10.0
libtpu: 0.0.40
codegen_flags: <defaults>
</compile_context>

<pallas_src>
import functools

import jax
import jax.numpy as jnp
from jax import lax
from jax.experimental import pallas as pl
from jax.experimental.pallas import tpu as pltpu


def _round_up(x, m):
    return (x + m - 1) // m * m


def _pick_spatial_tile(s, max_tile=2048):
    """Largest multiple of 128 that divides s (and is <= max_tile)."""
    best = 0
    t = 128
    while t <= min(s, max_tile):
        if s % t == 0:
            best = t
        t += 128
    return best


# -------- Pallas kernel 1: 27-tap conv + bias + GroupNorm partial stats ------
def _conv_tap_kernel(x0_ref, x1_ref, x2_ref, w_ref, b_ref, y_ref, st_ref,
                     *, H, W, Cin):
    # x{0,1,2}_ref: (H+2, W+2, Cin) bf16 halo depth slices d, d+1, d+2 (padded)
    # w_ref: (3, 3, 3, Cin, Cp) bf16 resident weights, b_ref: (1, Cp) f32 bias
    # y_ref: (HW, Cp) bf16 conv output slice, st_ref: (2, Cp) f32 sum / sumsq
    HW = H * W
    Cp = w_ref.shape[-1]
    acc = jnp.zeros((HW, Cp), jnp.float32)
    # 27 shifted windows of the three halo slices, each a small MXU dot,
    # accumulated in f32.  (For real UNet layers Cin is 64-512, so K is fine.)
    for kd, x_ref in enumerate((x0_ref, x1_ref, x2_ref)):
        for kh in range(3):
            for kw in range(3):
                a = x_ref[kh:kh + H, kw:kw + W, :].reshape(HW, Cin)
                acc = acc + jnp.dot(a, w_ref[kd, kh, kw],
                                    preferred_element_type=jnp.float32)
    acc = acc + b_ref[...]                       # (1, Cp) broadcast
    y_ref[...] = acc.astype(jnp.bfloat16)        # bf16 intermediate writeback
    # GroupNorm partial statistics from the f32 accumulator.  No spatial
    # padding exists in this scheme, so no row masking is required.
    st_ref[0:1, :] = jnp.sum(acc, axis=0, keepdims=True)
    st_ref[1:2, :] = jnp.sum(acc * acc, axis=0, keepdims=True)


# ---- Pallas kernel 2: GN affine + ReLU (+ folded drop), transposed output ---
def _gn_relu_t_kernel(x_ref, sc_ref, sh_ref, o_ref):
    # x_ref: (TM, Cp) bf16; sc/sh: (1, Cp) f32; o_ref: (Cp, TM) f32.
    y = jnp.maximum(x_ref[...].astype(jnp.float32) * sc_ref[...] + sh_ref[...],
                    0.0)
    o_ref[...] = y.T        # fused layout change -> no XLA transpose pass


def _halo_spec(H, W, Cin, off):
    return pl.BlockSpec((None, None, H + 2, W + 2, Cin),
                        lambda n, d: (n, d + off, 0, 0, 0))


def conv3d_gn_relu_drop_forward(x, weight, bias, gamma, beta, *,
                                num_groups=16, eps=1e-5,
                                drop=0.5, training=False, rng=None):
    """Conv3d(k=3, s=1, p=1) + GroupNorm(num_groups) + ReLU + Dropout3d.

    x:      (N, Cin, D, H, W) float32
    weight: (Cout, Cin, 3, 3, 3), bias/gamma/beta: (Cout,)
    returns (N, Cout, D, H, W) float32
    """
    N, Cin, D, H, W = x.shape
    Cout = weight.shape[0]
    assert Cout % num_groups == 0, "GroupNorm requires Cout % num_groups == 0"
    HW = H * W
    S = D * HW
    Cp = _round_up(Cout, 128)        # lane-dense output channel axis
    G = num_groups
    Cg = Cout // G

    TM2 = _pick_spatial_tile(S)
    # TODO(synk): spatial sizes with D*H*W % 128 != 0 need a masked epilogue
    # tile (or an XLA transpose fallback); typical UNet shapes satisfy this.
    assert TM2 > 0, "D*H*W must be a multiple of 128 for the fused epilogue"

    # ---- glue: channels-last bf16 halo-padded input (one cheap pass) ----
    x_cl = jnp.transpose(x, (0, 2, 3, 4, 1)).astype(jnp.bfloat16)
    xp = jnp.pad(x_cl, ((0, 0), (1, 1), (1, 1), (1, 1), (0, 0)))

    # weight (Cout, Cin, kd, kh, kw) -> (3, 3, 3, Cin, Cp) bf16, bias -> (1, Cp)
    w = jnp.transpose(weight, (2, 3, 4, 1, 0))
    w = jnp.pad(w, ((0, 0), (0, 0), (0, 0), (0, 0), (0, Cp - Cout)))
    w = w.astype(jnp.bfloat16)
    b2d = jnp.pad(bias.astype(jnp.float32), (0, Cp - Cout)).reshape(1, Cp)

    # ---- Pallas kernel 1: conv taps + bias + bf16 out + GN partial stats ----
    y, st = pl.pallas_call(
        functools.partial(_conv_tap_kernel, H=H, W=W, Cin=Cin),
        out_shape=(jax.ShapeDtypeStruct((N, D, HW, Cp), jnp.bfloat16),
                   jax.ShapeDtypeStruct((N, D, 2, Cp), jnp.float32)),
        grid_spec=pltpu.PrefetchScalarGridSpec(
            num_scalar_prefetch=0,
            grid=(N, D),
            in_specs=[
                _halo_spec(H, W, Cin, 0),
                _halo_spec(H, W, Cin, 1),
                _halo_spec(H, W, Cin, 2),
                # Resident weights/bias (constant index_map => same block every
                # step, refetch elided).  On v7x at the largest layers, add
                # pipeline_mode=pl.Buffered(1) / tile H*W to cut VMEM further.
                pl.BlockSpec((3, 3, 3, Cin, Cp), lambda n, d: (0, 0, 0, 0, 0)),
                pl.BlockSpec((1, Cp), lambda n, d: (0, 0)),
            ],
            out_specs=(
                pl.BlockSpec((None, None, HW, Cp), lambda n, d: (n, d, 0, 0)),
                pl.BlockSpec((None, None, 2, Cp), lambda n, d: (n, d, 0, 0)),
            ),
        ),
        compiler_params=pltpu.CompilerParams(
            dimension_semantics=("parallel", "parallel"),
            vmem_limit_bytes=48 * 1024 * 1024,
        ),
    )(xp, xp, xp, w, b2d)

    # ---- glue: finish GroupNorm stats on the tiny (N, D, 2, Cp) partials ----
    st = jnp.sum(st, axis=1)                                    # (N, 2, Cp)
    cnt = jnp.float32(S * Cg)
    g_sum = st[:, 0, :Cout].reshape(N, G, Cg).sum(axis=-1)      # (N, G)
    g_sq = st[:, 1, :Cout].reshape(N, G, Cg).sum(axis=-1)       # (N, G)
    mean = g_sum / cnt
    var = jnp.maximum(g_sq / cnt - mean * mean, 0.0)            # biased (PyTorch GN)
    inv = lax.rsqrt(var + eps)
    mean_c = jnp.repeat(mean, Cg, axis=1)                       # (N, Cout)
    inv_c = jnp.repeat(inv, Cg, axis=1)
    scale = inv_c * gamma[None, :].astype(jnp.float32)
    shift = beta[None, :].astype(jnp.float32) - mean_c * scale

    if training:
        # Dropout3d: zero whole (sample, channel) maps, rescale rest by
        # 1/(1-p); folding into the affine is exact since relu(a*z)=a*relu(z)
        # for a >= 0.
        keep = jax.random.bernoulli(rng, 1.0 - drop, (N, Cout))
        keep = keep.astype(jnp.float32) / (1.0 - drop)
        scale = scale * keep
        shift = shift * keep

    scale = jnp.pad(scale, ((0, 0), (0, Cp - Cout))).reshape(N, 1, Cp)
    shift = jnp.pad(shift, ((0, 0), (0, Cp - Cout))).reshape(N, 1, Cp)

    # ---- Pallas kernel 2: normalize + ReLU, write (N, Cp, S) lane-dense ----
    y2 = y.reshape(N, S, Cp)        # free reshape: merges D and H*W
    out_t = pl.pallas_call(
        _gn_relu_t_kernel,
        out_shape=jax.ShapeDtypeStruct((N, Cp, S), jnp.float32),
        grid_spec=pltpu.PrefetchScalarGridSpec(
            num_scalar_prefetch=0,
            grid=(N, S // TM2),
            in_specs=[
                pl.BlockSpec((None, TM2, Cp), lambda n, s: (n, s, 0)),
                pl.BlockSpec((None, 1, Cp), lambda n, s: (n, 0, 0)),
                pl.BlockSpec((None, 1, Cp), lambda n, s: (n, 0, 0)),
            ],
            out_specs=pl.BlockSpec((None, Cp, TM2), lambda n, s: (n, 0, s)),
        ),
        compiler_params=pltpu.CompilerParams(
            dimension_semantics=("parallel", "parallel"),
            vmem_limit_bytes=48 * 1024 * 1024,
        ),
    )(y2, scale, shift)

    # ---- glue: channel slice (no-op when Cout % 128 == 0) + free reshape ----
    out = out_t[:, :Cout, :].reshape(N, Cout, D, H, W)
    return out


if __name__ == "__main__":
    # Small shapes consistent with the module: GroupNorm(16, Cout) => Cout % 16 == 0.
    N, Cin, Cout, D, H, W = 2, 4, 32, 8, 8, 8
    G, eps, drop = 16, 1e-5, 0.5

    key = jax.random.PRNGKey(0)
    kx, kw, kb, kg, kbe, kd = jax.random.split(key, 6)
    x = jax.random.normal(kx, (N, Cin, D, H, W), dtype=jnp.float32)
    fan_in = Cin * 3 * 3 * 3
    bound = 1.0 / (fan_in ** 0.5)
    weight = jax.random.uniform(kw, (Cout, Cin, 3, 3, 3), jnp.float32, -bound, bound)
    bias = jax.random.uniform(kb, (Cout,), jnp.float32, -bound, bound)
    gamma = 1.0 + 0.1 * jax.random.normal(kg, (Cout,), dtype=jnp.float32)
    beta = 0.1 * jax.random.normal(kbe, (Cout,), dtype=jnp.float32)

    # Eval-mode forward (Dropout3d is the identity in eval).
    out = jax.jit(conv3d_gn_relu_drop_forward)(x, weight, bias, gamma, beta)
    out = jax.block_until_ready(out)
    assert out.shape == (N, Cout, D, H, W)

    # Pure-JAX f32 reference: Conv3d + GroupNorm(16) + ReLU.
    ref = lax.conv_general_dilated(
        x, weight, window_strides=(1, 1, 1),
        padding=((1, 1), (1, 1), (1, 1)),
        dimension_numbers=("NCDHW", "OIDHW", "NCDHW"))
    ref = ref + bias[None, :, None, None, None]
    r = ref.reshape(N, G, Cout // G, D, H, W)
    m = r.mean(axis=(2, 3, 4, 5), keepdims=True)
    v = r.var(axis=(2, 3, 4, 5), keepdims=True)
    r = (r - m) * lax.rsqrt(v + eps)
    ref = r.reshape(N, Cout, D, H, W)
    ref = ref * gamma[None, :, None, None, None] + beta[None, :, None, None, None]
    ref = jnp.maximum(ref, 0.0)

    # bf16 conv operands / bf16 intermediate (f32 accumulation) => relaxed tol.
    err = float(jnp.max(jnp.abs(out - ref)))
    assert jnp.allclose(out, ref, rtol=5e-2, atol=5e-2), f"mismatch, max abs err {err}"

    # Training-mode smoke test (Dropout3d channel mask folded into the affine).
    out_tr = jax.jit(functools.partial(conv3d_gn_relu_drop_forward,
                                       training=True, drop=drop))(
        x, weight, bias, gamma, beta, rng=kd)
    out_tr = jax.block_until_ready(out_tr)
    assert out_tr.shape == (N, Cout, D, H, W)
    assert bool(jnp.all(jnp.isfinite(out_tr)))

    print("KERNEL_OK")
</pallas_src>

<mosaic_0001>
module attributes {stable_mosaic.version = 11 : i64} {
  func.func @_conv_tap_kernel(%arg0: i32, %arg1: i32, %arg2: memref<1x1x10x10x4xbf16, #tpu.memory_space<vmem>>, %arg3: memref<1x1x10x10x4xbf16, #tpu.memory_space<vmem>>, %arg4: memref<1x1x10x10x4xbf16, #tpu.memory_space<vmem>>, %arg5: memref<3x3x3x4x128xbf16, #tpu.memory_space<vmem>>, %arg6: memref<1x128xf32, #tpu.memory_space<vmem>>, %arg7: memref<1x1x64x128xbf16, #tpu.memory_space<vmem>>, %arg8: memref<1x1x2x128xf32, #tpu.memory_space<vmem>>) attributes {dimension_semantics = [#tpu.dimension_semantics<parallel>, #tpu.dimension_semantics<parallel>], iteration_bounds = array<i64: 2, 8>, scalar_prefetch = 0 : i64, scratch_operands = 0 : i64, tpu.core_type = #tpu.core_type<tc>, window_params = [{transform_indices = @transform_0, window_bounds = array<i64: 1, 1, 10, 10, 4>}, {transform_indices = @transform_1, window_bounds = array<i64: 1, 1, 10, 10, 4>}, {transform_indices = @transform_2, window_bounds = array<i64: 1, 1, 10, 10, 4>}, {pipeline_mode = #tpu.pipeline_mode<synchronous>, transform_indices = @transform_3, window_bounds = array<i64: 3, 3, 3, 4, 128>}, {pipeline_mode = #tpu.pipeline_mode<synchronous>, transform_indices = @transform_4, window_bounds = array<i64: 1, 128>}, {transform_indices = @transform_5, window_bounds = array<i64: 1, 1, 64, 128>}, {transform_indices = @transform_6, window_bounds = array<i64: 1, 1, 2, 128>}]} {
    %cst = arith.constant 0.000000e+00 : f32
    %0 = vector.broadcast %cst : f32 to vector<64x128xf32>
    %c0 = arith.constant 0 : index
    %c0_0 = arith.constant 0 : index
    %c0_1 = arith.constant 0 : index
    %c0_2 = arith.constant 0 : index
    %c0_3 = arith.constant 0 : index
    %1 = vector.load %arg2[%c0, %c0_0, %c0_1, %c0_2, %c0_3] : memref<1x1x10x10x4xbf16, #tpu.memory_space<vmem>>, vector<1x1x8x8x4xbf16>
    %2 = vector.shape_cast %1 : vector<1x1x8x8x4xbf16> to vector<8x8x4xbf16>
    %3 = vector.shape_cast %2 : vector<8x8x4xbf16> to vector<64x4xbf16>
    %c0_4 = arith.constant 0 : index
    %c0_5 = arith.constant 0 : index
    %c0_6 = arith.constant 0 : index
    %c0_7 = arith.constant 0 : index
    %c0_8 = arith.constant 0 : index
    %4 = vector.load %arg5[%c0_4, %c0_5, %c0_6, %c0_7, %c0_8] : memref<3x3x3x4x128xbf16, #tpu.memory_space<vmem>>, vector<1x1x1x4x128xbf16>
    %5 = vector.shape_cast %4 : vector<1x1x1x4x128xbf16> to vector<4x128xbf16>
    %cst_9 = arith.constant dense<0.000000e+00> : vector<64x128xf32>
    %6 = tpu.matmul %3, %5, %cst_9 {dimension_numbers = #tpu.dot_dimension_numbers<[1], [0], [0], [1], [0, 0, 1, 1], [], []>} : vector<64x4xbf16>, vector<4x128xbf16>, vector<64x128xf32> -> vector<64x128xf32>
    %7 = arith.addf %0, %6 : vector<64x128xf32>
    %c0_10 = arith.constant 0 : index
    %c0_11 = arith.constant 0 : index
    %c0_12 = arith.constant 0 : index
    %c1 = arith.constant 1 : index
    %c0_13 = arith.constant 0 : index
    %8 = vector.load %arg2[%c0_10, %c0_11, %c0_12, %c1, %c0_13] : memref<1x1x10x10x4xbf16, #tpu.memory_space<vmem>>, vector<1x1x8x8x4xbf16>
    %9 = vector.shape_cast %8 : vector<1x1x8x8x4xbf16> to vector<8x8x4xbf16>
    %10 = vector.shape_cast %9 : vector<8x8x4xbf16> to vector<64x4xbf16>
    %c0_14 = arith.constant 0 : index
    %c0_15 = arith.constant 0 : index
    %c1_16 = arith.constant 1 : index
    %c0_17 = arith.constant 0 : index
    %c0_18 = arith.constant 0 : index
    %11 = vector.load %arg5[%c0_14, %c0_15, %c1_16, %c0_17, %c0_18] : memref<3x3x3x4x128xbf16, #tpu.memory_space<vmem>>, vector<1x1x1x4x128xbf16>
    %12 = vector.shape_cast %11 : vector<1x1x1x4x128xbf16> to vector<4x128xbf16>
    %cst_19 = arith.constant dense<0.000000e+00> : vector<64x128xf32>
    %13 = tpu.matmul %10, %12, %cst_19 {dimension_numbers = #tpu.dot_dimension_numbers<[1], [0], [0], [1], [0, 0, 1, 1], [], []>} : vector<64x4xbf16>, vector<4x128xbf16>, vector<64x128xf32> -> vector<64x128xf32>
    %14 = arith.addf %7, %13 : vector<64x128xf32>
    %c0_20 = arith.constant 0 : index
    %c0_21 = arith.constant 0 : index
    %c0_22 = arith.constant 0 : index
    %c2 = arith.constant 2 : index
    %c0_23 = arith.constant 0 : index
    %15 = vector.load %arg2[%c0_20, %c0_21, %c0_22, %c2, %c0_23] : memref<1x1x10x10x4xbf16, #tpu.memory_space<vmem>>, vector<1x1x8x8x4xbf16>
    %16 = vector.shape_cast %15 : vector<1x1x8x8x4xbf16> to vector<8x8x4xbf16>
    %17 = vector.shape_cast %16 : vector<8x8x4xbf16> to vector<64x4xbf16>
    %c0_24 = arith.constant 0 : index
    %c0_25 = arith.constant 0 : index
    %c2_26 = arith.constant 2 : index
    %c0_27 = arith.constant 0 : index
    %c0_28 = arith.constant 0 : index
    %18 = vector.load %arg5[%c0_24, %c0_25, %c2_26, %c0_27, %c0_28] : memref<3x3x3x4x128xbf16, #tpu.memory_space<vmem>>, vector<1x1x1x4x128xbf16>
    %19 = vector.shape_cast %18 : vector<1x1x1x4x128xbf16> to vector<4x128xbf16>
    %cst_29 = arith.constant dense<0.000000e+00> : vector<64x128xf32>
    %20 = tpu.matmul %17, %19, %cst_29 {dimension_numbers = #tpu.dot_dimension_numbers<[1], [0], [0], [1], [0, 0, 1, 1], [], []>} : vector<64x4xbf16>, vector<4x128xbf16>, vector<64x128xf32> -> vector<64x128xf32>
    %21 = arith.addf %14, %20 : vector<64x128xf32>
    %c0_30 = arith.constant 0 : index
    %c0_31 = arith.constant 0 : index
    %c1_32 = arith.constant 1 : index
    %c0_33 = arith.constant 0 : index
    %c0_34 = arith.constant 0 : index
    %22 = vector.load %arg2[%c0_30, %c0_31, %c1_32, %c0_33, %c0_34] : memref<1x1x10x10x4xbf16, #tpu.memory_space<vmem>>, vector<1x1x8x8x4xbf16>
    %23 = vector.shape_cast %22 : vector<1x1x8x8x4xbf16> to vector<8x8x4xbf16>
    %24 = vector.shape_cast %23 : vector<8x8x4xbf16> to vector<64x4xbf16>
    %c0_35 = arith.constant 0 : index
    %c1_36 = arith.constant 1 : index
    %c0_37 = arith.constant 0 : index
    %c0_38 = arith.constant 0 : index
    %c0_39 = arith.constant 0 : index
    %25 = vector.load %arg5[%c0_35, %c1_36, %c0_37, %c0_38, %c0_39] : memref<3x3x3x4x128xbf16, #tpu.memory_space<vmem>>, vector<1x1x1x4x128xbf16>
    %26 = vector.shape_cast %25 : vector<1x1x1x4x128xbf16> to vector<4x128xbf16>
    %cst_40 = arith.constant dense<0.000000e+00> : vector<64x128xf32>
    %27 = tpu.matmul %24, %26, %cst_40 {dimension_numbers = #tpu.dot_dimension_numbers<[1], [0], [0], [1], [0, 0, 1, 1], [], []>} : vector<64x4xbf16>, vector<4x128xbf16>, vector<64x128xf32> -> vector<64x128xf32>
    %28 = arith.addf %21, %27 : vector<64x128xf32>
    %c0_41 = arith.constant 0 : index
    %c0_42 = arith.constant 0 : index
    %c1_43 = arith.constant 1 : index
    %c1_44 = arith.constant 1 : index
    %c0_45 = arith.constant 0 : index
    %29 = vector.load %arg2[%c0_41, %c0_42, %c1_43, %c1_44, %c0_45] : memref<1x1x10x10x4xbf16, #tpu.memory_space<vmem>>, vector<1x1x8x8x4xbf16>
    %30 = vector.shape_cast %29 : vector<1x1x8x8x4xbf16> to vector<8x8x4xbf16>
    %31 = vector.shape_cast %30 : vector<8x8x4xbf16> to vector<64x4xbf16>
    %c0_46 = arith.constant 0 : index
    %c1_47 = arith.constant 1 : index
    %c1_48 = arith.constant 1 : index
    %c0_49 = arith.constant 0 : index
    %c0_50 = arith.constant 0 : index
    %32 = vector.load %arg5[%c0_46, %c1_47, %c1_48, %c0_49, %c0_50] : memref<3x3x3x4x128xbf16, #tpu.memory_space<vmem>>, vector<1x1x1x4x128xbf16>
    %33 = vector.shape_cast %32 : vector<1x1x1x4x128xbf16> to vector<4x128xbf16>
    %cst_51 = arith.constant dense<0.000000e+00> : vector<64x128xf32>
    %34 = tpu.matmul %31, %33, %cst_51 {dimension_numbers = #tpu.dot_dimension_numbers<[1], [0], [0], [1], [0, 0, 1, 1], [], []>} : vector<64x4xbf16>, vector<4x128xbf16>, vector<64x128xf32> -> vector<64x128xf32>
    %35 = arith.addf %28, %34 : vector<64x128xf32>
    %c0_52 = arith.constant 0 : index
    %c0_53 = arith.constant 0 : index
    %c1_54 = arith.constant 1 : index
    %c2_55 = arith.constant 2 : index
    %c0_56 = arith.constant 0 : index
    %36 = vector.load %arg2[%c0_52, %c0_53, %c1_54, %c2_55, %c0_56] : memref<1x1x10x10x4xbf16, #tpu.memory_space<vmem>>, vector<1x1x8x8x4xbf16>
    %37 = vector.shape_cast %36 : vector<1x1x8x8x4xbf16> to vector<8x8x4xbf16>
    %38 = vector.shape_cast %37 : vector<8x8x4xbf16> to vector<64x4xbf16>
    %c0_57 = arith.constant 0 : index
    %c1_58 = arith.constant 1 : index
    %c2_59 = arith.constant 2 : index
    %c0_60 = arith.constant 0 : index
    %c0_61 = arith.constant 0 : index
    %39 = vector.load %arg5[%c0_57, %c1_58, %c2_59, %c0_60, %c0_61] : memref<3x3x3x4x128xbf16, #tpu.memory_space<vmem>>, vector<1x1x1x4x128xbf16>
    %40 = vector.shape_cast %39 : vector<1x1x1x4x128xbf16> to vector<4x128xbf16>
    %cst_62 = arith.constant dense<0.000000e+00> : vector<64x128xf32>
    %41 = tpu.matmul %38, %40, %cst_62 {dimension_numbers = #tpu.dot_dimension_numbers<[1], [0], [0], [1], [0, 0, 1, 1], [], []>} : vector<64x4xbf16>, vector<4x128xbf16>, vector<64x128xf32> -> vector<64x128xf32>
    %42 = arith.addf %35, %41 : vector<64x128xf32>
    %c0_63 = arith.constant 0 : index
    %c0_64 = arith.constant 0 : index
    %c2_65 = arith.constant 2 : index
    %c0_66 = arith.constant 0 : index
    %c0_67 = arith.constant 0 : index
    %43 = vector.load %arg2[%c0_63, %c0_64, %c2_65, %c0_66, %c0_67] : memref<1x1x10x10x4xbf16, #tpu.memory_space<vmem>>, vector<1x1x8x8x4xbf16>
    %44 = vector.shape_cast %43 : vector<1x1x8x8x4xbf16> to vector<8x8x4xbf16>
    %45 = vector.shape_cast %44 : vector<8x8x4xbf16> to vector<64x4xbf16>
    %c0_68 = arith.constant 0 : index
    %c2_69 = arith.constant 2 : index
    %c0_70 = arith.constant 0 : index
    %c0_71 = arith.constant 0 : index
    %c0_72 = arith.constant 0 : index
    %46 = vector.load %arg5[%c0_68, %c2_69, %c0_70, %c0_71, %c0_72] : memref<3x3x3x4x128xbf16, #tpu.memory_space<vmem>>, vector<1x1x1x4x128xbf16>
    %47 = vector.shape_cast %46 : vector<1x1x1x4x128xbf16> to vector<4x128xbf16>
    %cst_73 = arith.constant dense<0.000000e+00> : vector<64x128xf32>
    %48 = tpu.matmul %45, %47, %cst_73 {dimension_numbers = #tpu.dot_dimension_numbers<[1], [0], [0], [1], [0, 0, 1, 1], [], []>} : vector<64x4xbf16>, vector<4x128xbf16>, vector<64x128xf32> -> vector<64x128xf32>
    %49 = arith.addf %42, %48 : vector<64x128xf32>
    %c0_74 = arith.constant 0 : index
    %c0_75 = arith.constant 0 : index
    %c2_76 = arith.constant 2 : index
    %c1_77 = arith.constant 1 : index
    %c0_78 = arith.constant 0 : index
    %50 = vector.load %arg2[%c0_74, %c0_75, %c2_76, %c1_77, %c0_78] : memref<1x1x10x10x4xbf16, #tpu.memory_space<vmem>>, vector<1x1x8x8x4xbf16>
    %51 = vector.shape_cast %50 : vector<1x1x8x8x4xbf16> to vector<8x8x4xbf16>
    %52 = vector.shape_cast %51 : vector<8x8x4xbf16> to vector<64x4xbf16>
    %c0_79 = arith.constant 0 : index
    %c2_80 = arith.constant 2 : index
    %c1_81 = arith.constant 1 : index
    %c0_82 = arith.constant 0 : index
    %c0_83 = arith.constant 0 : index
    %53 = vector.load %arg5[%c0_79, %c2_80, %c1_81, %c0_82, %c0_83] : memref<3x3x3x4x128xbf16, #tpu.memory_space<vmem>>, vector<1x1x1x4x128xbf16>
    %54 = vector.shape_cast %53 : vector<1x1x1x4x128xbf16> to vector<4x128xbf16>
    %cst_84 = arith.constant dense<0.000000e+00> : vector<64x128xf32>
    %55 = tpu.matmul %52, %54, %cst_84 {dimension_numbers = #tpu.dot_dimension_numbers<[1], [0], [0], [1], [0, 0, 1, 1], [], []>} : vector<64x4xbf16>, vector<4x128xbf16>, vector<64x128xf32> -> vector<64x128xf32>
    %56 = arith.addf %49, %55 : vector<64x128xf32>
    %c0_85 = arith.constant 0 : index
    %c0_86 = arith.constant 0 : index
    %c2_87 = arith.constant 2 : index
    %c2_88 = arith.constant 2 : index
    %c0_89 = arith.constant 0 : index
    %57 = vector.load %arg2[%c0_85, %c0_86, %c2_87, %c2_88, %c0_89] : memref<1x1x10x10x4xbf16, #tpu.memory_space<vmem>>, vector<1x1x8x8x4xbf16>
    %58 = vector.shape_cast %57 : vector<1x1x8x8x4xbf16> to vector<8x8x4xbf16>
    %59 = vector.shape_cast %58 : vector<8x8x4xbf16> to vector<64x4xbf16>
    %c0_90 = arith.constant 0 : index
    %c2_91 = arith.constant 2 : index
    %c2_92 = arith.constant 2 : index
    %c0_93 = arith.constant 0 : index
    %c0_94 = arith.constant 0 : index
    %60 = vector.load %arg5[%c0_90, %c2_91, %c2_92, %c0_93, %c0_94] : memref<3x3x3x4x128xbf16, #tpu.memory_space<vmem>>, vector<1x1x1x4x128xbf16>
    %61 = vector.shape_cast %60 : vector<1x1x1x4x128xbf16> to vector<4x128xbf16>
    %cst_95 = arith.constant dense<0.000000e+00> : vector<64x128xf32>
    %62 = tpu.matmul %59, %61, %cst_95 {dimension_numbers = #tpu.dot_dimension_numbers<[1], [0], [0], [1], [0, 0, 1, 1], [], []>} : vector<64x4xbf16>, vector<4x128xbf16>, vector<64x128xf32> -> vector<64x128xf32>
    %63 = arith.addf %56, %62 : vector<64x128xf32>
    %c0_96 = arith.constant 0 : index
    %c0_97 = arith.constant 0 : index
    %c0_98 = arith.constant 0 : index
    %c0_99 = arith.constant 0 : index
    %c0_100 = arith.constant 0 : index
    %64 = vector.load %arg3[%c0_96, %c0_97, %c0_98, %c0_99, %c0_100] : memref<1x1x10x10x4xbf16, #tpu.memory_space<vmem>>, vector<1x1x8x8x4xbf16>
    %65 = vector.shape_cast %64 : vector<1x1x8x8x4xbf16> to vector<8x8x4xbf16>
    %66 = vector.shape_cast %65 : vector<8x8x4xbf16> to vector<64x4xbf16>
    %c1_101 = arith.constant 1 : index
    %c0_102 = arith.constant 0 : index
    %c0_103 = arith.constant 0 : index
    %c0_104 = arith.constant 0 : index
    %c0_105 = arith.constant 0 : index
    %67 = vector.load %arg5[%c1_101, %c0_102, %c0_103, %c0_104, %c0_105] : memref<3x3x3x4x128xbf16, #tpu.memory_space<vmem>>, vector<1x1x1x4x128xbf16>
    %68 = vector.shape_cast %67 : vector<1x1x1x4x128xbf16> to vector<4x128xbf16>
    %cst_106 = arith.constant dense<0.000000e+00> : vector<64x128xf32>
    %69 = tpu.matmul %66, %68, %cst_106 {dimension_numbers = #tpu.dot_dimension_numbers<[1], [0], [0], [1], [0, 0, 1, 1], [], []>} : vector<64x4xbf16>, vector<4x128xbf16>, vector<64x128xf32> -> vector<64x128xf32>
    %70 = arith.addf %63, %69 : vector<64x128xf32>
    %c0_107 = arith.constant 0 : index
    %c0_108 = arith.constant 0 : index
    %c0_109 = arith.constant 0 : index
    %c1_110 = arith.constant 1 : index
    %c0_111 = arith.constant 0 : index
    %71 = vector.load %arg3[%c0_107, %c0_108, %c0_109, %c1_110, %c0_111] : memref<1x1x10x10x4xbf16, #tpu.memory_space<vmem>>, vector<1x1x8x8x4xbf16>
    %72 = vector.shape_cast %71 : vector<1x1x8x8x4xbf16> to vector<8x8x4xbf16>
    %73 = vector.shape_cast %72 : vector<8x8x4xbf16> to vector<64x4xbf16>
    %c1_112 = arith.constant 1 : index
    %c0_113 = arith.constant 0 : index
    %c1_114 = arith.constant 1 : index
    %c0_115 = arith.constant 0 : index
    %c0_116 = arith.constant 0 : index
    %74 = vector.load %arg5[%c1_112, %c0_113, %c1_114, %c0_115, %c0_116] : memref<3x3x3x4x128xbf16, #tpu.memory_space<vmem>>, vector<1x1x1x4x128xbf16>
    %75 = vector.shape_cast %74 : vector<1x1x1x4x128xbf16> to vector<4x128xbf16>
    %cst_117 = arith.constant dense<0.000000e+00> : vector<64x128xf32>
    %76 = tpu.matmul %73, %75, %cst_117 {dimension_numbers = #tpu.dot_dimension_numbers<[1], [0], [0], [1], [0, 0, 1, 1], [], []>} : vector<64x4xbf16>, vector<4x128xbf16>, vector<64x128xf32> -> vector<64x128xf32>
    %77 = arith.addf %70, %76 : vector<64x128xf32>
    %c0_118 = arith.constant 0 : index
    %c0_119 = arith.constant 0 : index
    %c0_120 = arith.constant 0 : index
    %c2_121 = arith.constant 2 : index
    %c0_122 = arith.constant 0 : index
    %78 = vector.load %arg3[%c0_118, %c0_119, %c0_120, %c2_121, %c0_122] : memref<1x1x10x10x4xbf16, #tpu.memory_space<vmem>>, vector<1x1x8x8x4xbf16>
    %79 = vector.shape_cast %78 : vector<1x1x8x8x4xbf16> to vector<8x8x4xbf16>
    %80 = vector.shape_cast %79 : vector<8x8x4xbf16> to vector<64x4xbf16>
    %c1_123 = arith.constant 1 : index
    %c0_124 = arith.constant 0 : index
    %c2_125 = arith.constant 2 : index
    %c0_126 = arith.constant 0 : index
    %c0_127 = arith.constant 0 : index
    %81 = vector.load %arg5[%c1_123, %c0_124, %c2_125, %c0_126, %c0_127] : memref<3x3x3x4x128xbf16, #tpu.memory_space<vmem>>, vector<1x1x1x4x128xbf16>
    %82 = vector.shape_cast %81 : vector<1x1x1x4x128xbf16> to vector<4x128xbf16>
    %cst_128 = arith.constant dense<0.000000e+00> : vector<64x128xf32>
    %83 = tpu.matmul %80, %82, %cst_128 {dimension_numbers = #tpu.dot_dimension_numbers<[1], [0], [0], [1], [0, 0, 1, 1], [], []>} : vector<64x4xbf16>, vector<4x128xbf16>, vector<64x128xf32> -> vector<64x128xf32>
    %84 = arith.addf %77, %83 : vector<64x128xf32>
    %c0_129 = arith.constant 0 : index
    %c0_130 = arith.constant 0 : index
    %c1_131 = arith.constant 1 : index
    %c0_132 = arith.constant 0 : index
    %c0_133 = arith.constant 0 : index
    %85 = vector.load %arg3[%c0_129, %c0_130, %c1_131, %c0_132, %c0_133] : memref<1x1x10x10x4xbf16, #tpu.memory_space<vmem>>, vector<1x1x8x8x4xbf16>
    %86 = vector.shape_cast %85 : vector<1x1x8x8x4xbf16> to vector<8x8x4xbf16>
    %87 = vector.shape_cast %86 : vector<8x8x4xbf16> to vector<64x4xbf16>
    %c1_134 = arith.constant 1 : index
    %c1_135 = arith.constant 1 : index
    %c0_136 = arith.constant 0 : index
    %c0_137 = arith.constant 0 : index
    %c0_138 = arith.constant 0 : index
    %88 = vector.load %arg5[%c1_134, %c1_135, %c0_136, %c0_137, %c0_138] : memref<3x3x3x4x128xbf16, #tpu.memory_space<vmem>>, vector<1x1x1x4x128xbf16>
    %89 = vector.shape_cast %88 : vector<1x1x1x4x128xbf16> to vector<4x128xbf16>
    %cst_139 = arith.constant dense<0.000000e+00> : vector<64x128xf32>
    %90 = tpu.matmul %87, %89, %cst_139 {dimension_numbers = #tpu.dot_dimension_numbers<[1], [0], [0], [1], [0, 0, 1, 1], [], []>} : vector<64x4xbf16>, vector<4x128xbf16>, vector<64x128xf32> -> vector<64x128xf32>
    %91 = arith.addf %84, %90 : vector<64x128xf32>
    %c0_140 = arith.constant 0 : index
    %c0_141 = arith.constant 0 : index
    %c1_142 = arith.constant 1 : index
    %c1_143 = arith.constant 1 : index
    %c0_144 = arith.constant 0 : index
    %92 = vector.load %arg3[%c0_140, %c0_141, %c1_142, %c1_143, %c0_144] : memref<1x1x10x10x4xbf16, #tpu.memory_space<vmem>>, vector<1x1x8x8x4xbf16>
    %93 = vector.shape_cast %92 : vector<1x1x8x8x4xbf16> to vector<8x8x4xbf16>
    %94 = vector.shape_cast %93 : vector<8x8x4xbf16> to vector<64x4xbf16>
    %c1_145 = arith.constant 1 : index
    %c1_146 = arith.constant 1 : index
    %c1_147 = arith.constant 1 : index
    %c0_148 = arith.constant 0 : index
    %c0_149 = arith.constant 0 : index
    %95 = vector.load %arg5[%c1_145, %c1_146, %c1_147, %c0_148, %c0_149] : memref<3x3x3x4x128xbf16, #tpu.memory_space<vmem>>, vector<1x1x1x4x128xbf16>
    %96 = vector.shape_cast %95 : vector<1x1x1x4x128xbf16> to vector<4x128xbf16>
    %cst_150 = arith.constant dense<0.000000e+00> : vector<64x128xf32>
    %97 = tpu.matmul %94, %96, %cst_150 {dimension_numbers = #tpu.dot_dimension_numbers<[1], [0], [0], [1], [0, 0, 1, 1], [], []>} : vector<64x4xbf16>, vector<4x128xbf16>, vector<64x128xf32> -> vector<64x128xf32>
    %98 = arith.addf %91, %97 : vector<64x128xf32>
    %c0_151 = arith.constant 0 : index
    %c0_152 = arith.constant 0 : index
    %c1_153 = arith.constant 1 : index
    %c2_154 = arith.constant 2 : index
    %c0_155 = arith.constant 0 : index
    %99 = vector.load %arg3[%c0_151, %c0_152, %c1_153, %c2_154, %c0_155] : memref<1x1x10x10x4xbf16, #tpu.memory_space<vmem>>, vector<1x1x8x8x4xbf16>
    %100 = vector.shape_cast %99 : vector<1x1x8x8x4xbf16> to vector<8x8x4xbf16>
    %101 = vector.shape_cast %100 : vector<8x8x4xbf16> to vector<64x4xbf16>
    %c1_156 = arith.constant 1 : index
    %c1_157 = arith.constant 1 : index
    %c2_158 = arith.constant 2 : index
    %c0_159 = arith.constant 0 : index
    %c0_160 = arith.constant 0 : index
    %102 = vector.load %arg5[%c1_156, %c1_157, %c2_158, %c0_159, %c0_160] : memref<3x3x3x4x128xbf16, #tpu.memory_space<vmem>>, vector<1x1x1x4x128xbf16>
    %103 = vector.shape_cast %102 : vector<1x1x1x4x128xbf16> to vector<4x128xbf16>
    %cst_161 = arith.constant dense<0.000000e+00> : vector<64x128xf32>
    %104 = tpu.matmul %101, %103, %cst_161 {dimension_numbers = #tpu.dot_dimension_numbers<[1], [0], [0], [1], [0, 0, 1, 1], [], []>} : vector<64x4xbf16>, vector<4x128xbf16>, vector<64x128xf32> -> vector<64x128xf32>
    %105 = arith.addf %98, %104 : vector<64x128xf32>
    %c0_162 = arith.constant 0 : index
    %c0_163 = arith.constant 0 : index
    %c2_164 = arith.constant 2 : index
    %c0_165 = arith.constant 0 : index
    %c0_166 = arith.constant 0 : index
    %106 = vector.load %arg3[%c0_162, %c0_163, %c2_164, %c0_165, %c0_166] : memref<1x1x10x10x4xbf16, #tpu.memory_space<vmem>>, vector<1x1x8x8x4xbf16>
    %107 = vector.shape_cast %106 : vector<1x1x8x8x4xbf16> to vector<8x8x4xbf16>
    %108 = vector.shape_cast %107 : vector<8x8x4xbf16> to vector<64x4xbf16>
    %c1_167 = arith.constant 1 : index
    %c2_168 = arith.constant 2 : index
    %c0_169 = arith.constant 0 : index
    %c0_170 = arith.constant 0 : index
    %c0_171 = arith.constant 0 : index
    %109 = vector.load %arg5[%c1_167, %c2_168, %c0_169, %c0_170, %c0_171] : memref<3x3x3x4x128xbf16, #tpu.memory_space<vmem>>, vector<1x1x1x4x128xbf16>
    %110 = vector.shape_cast %109 : vector<1x1x1x4x128xbf16> to vector<4x128xbf16>
    %cst_172 = arith.constant dense<0.000000e+00> : vector<64x128xf32>
    %111 = tpu.matmul %108, %110, %cst_172 {dimension_numbers = #tpu.dot_dimension_numbers<[1], [0], [0], [1], [0, 0, 1, 1], [], []>} : vector<64x4xbf16>, vector<4x128xbf16>, vector<64x128xf32> -> vector<64x128xf32>
    %112 = arith.addf %105, %111 : vector<64x128xf32>
    %c0_173 = arith.constant 0 : index
    %c0_174 = arith.constant 0 : index
    %c2_175 = arith.constant 2 : index
    %c1_176 = arith.constant 1 : index
    %c0_177 = arith.constant 0 : index
    %113 = vector.load %arg3[%c0_173, %c0_174, %c2_175, %c1_176, %c0_177] : memref<1x1x10x10x4xbf16, #tpu.memory_space<vmem>>, vector<1x1x8x8x4xbf16>
    %114 = vector.shape_cast %113 : vector<1x1x8x8x4xbf16> to vector<8x8x4xbf16>
    %115 = vector.shape_cast %114 : vector<8x8x4xbf16> to vector<64x4xbf16>
    %c1_178 = arith.constant 1 : index
    %c2_179 = arith.constant 2 : index
    %c1_180 = arith.constant 1 : index
    %c0_181 = arith.constant 0 : index
    %c0_182 = arith.constant 0 : index
    %116 = vector.load %arg5[%c1_178, %c2_179, %c1_180, %c0_181, %c0_182] : memref<3x3x3x4x128xbf16, #tpu.memory_space<vmem>>, vector<1x1x1x4x128xbf16>
    %117 = vector.shape_cast %116 : vector<1x1x1x4x128xbf16> to vector<4x128xbf16>
    %cst_183 = arith.constant dense<0.000000e+00> : vector<64x128xf32>
    %118 = tpu.matmul %115, %117, %cst_183 {dimension_numbers = #tpu.dot_dimension_numbers<[1], [0], [0], [1], [0, 0, 1, 1], [], []>} : vector<64x4xbf16>, vector<4x128xbf16>, vector<64x128xf32> -> vector<64x128xf32>
    %119 = arith.addf %112, %118 : vector<64x128xf32>
    %c0_184 = arith.constant 0 : index
    %c0_185 = arith.constant 0 : index
    %c2_186 = arith.constant 2 : index
    %c2_187 = arith.constant 2 : index
    %c0_188 = arith.constant 0 : index
    %120 = vector.load %arg3[%c0_184, %c0_185, %c2_186, %c2_187, %c0_188] : memref<1x1x10x10x4xbf16, #tpu.memory_space<vmem>>, vector<1x1x8x8x4xbf16>
    %121 = vector.shape_cast %120 : vector<1x1x8x8x4xbf16> to vector<8x8x4xbf16>
    %122 = vector.shape_cast %121 : vector<8x8x4xbf16> to vector<64x4xbf16>
    %c1_189 = arith.constant 1 : index
    %c2_190 = arith.constant 2 : index
    %c2_191 = arith.constant 2 : index
    %c0_192 = arith.constant 0 : index
    %c0_193 = arith.constant 0 : index
    %123 = vector.load %arg5[%c1_189, %c2_190, %c2_191, %c0_192, %c0_193] : memref<3x3x3x4x128xbf16, #tpu.memory_space<vmem>>, vector<1x1x1x4x128xbf16>
    %124 = vector.shape_cast %123 : vector<1x1x1x4x128xbf16> to vector<4x128xbf16>
    %cst_194 = arith.constant dense<0.000000e+00> : vector<64x128xf32>
    %125 = tpu.matmul %122, %124, %cst_194 {dimension_numbers = #tpu.dot_dimension_numbers<[1], [0], [0], [1], [0, 0, 1, 1], [], []>} : vector<64x4xbf16>, vector<4x128xbf16>, vector<64x128xf32> -> vector<64x128xf32>
    %126 = arith.addf %119, %125 : vector<64x128xf32>
    %c0_195 = arith.constant 0 : index
    %c0_196 = arith.constant 0 : index
    %c0_197 = arith.constant 0 : index
    %c0_198 = arith.constant 0 : index
    %c0_199 = arith.constant 0 : index
    %127 = vector.load %arg4[%c0_195, %c0_196, %c0_197, %c0_198, %c0_199] : memref<1x1x10x10x4xbf16, #tpu.memory_space<vmem>>, vector<1x1x8x8x4xbf16>
    %128 = vector.shape_cast %127 : vector<1x1x8x8x4xbf16> to vector<8x8x4xbf16>
    %129 = vector.shape_cast %128 : vector<8x8x4xbf16> to vector<64x4xbf16>
    %c2_200 = arith.constant 2 : index
    %c0_201 = arith.constant 0 : index
    %c0_202 = arith.constant 0 : index
    %c0_203 = arith.constant 0 : index
    %c0_204 = arith.constant 0 : index
    %130 = vector.load %arg5[%c2_200, %c0_201, %c0_202, %c0_203, %c0_204] : memref<3x3x3x4x128xbf16, #tpu.memory_space<vmem>>, vector<1x1x1x4x128xbf16>
    %131 = vector.shape_cast %130 : vector<1x1x1x4x128xbf16> to vector<4x128xbf16>
    %cst_205 = arith.constant dense<0.000000e+00> : vector<64x128xf32>
    %132 = tpu.matmul %129, %131, %cst_205 {dimension_numbers = #tpu.dot_dimension_numbers<[1], [0], [0], [1], [0, 0, 1, 1], [], []>} : vector<64x4xbf16>, vector<4x128xbf16>, vector<64x128xf32> -> vector<64x128xf32>
    %133 = arith.addf %126, %132 : vector<64x128xf32>
    %c0_206 = arith.constant 0 : index
    %c0_207 = arith.constant 0 : index
    %c0_208 = arith.constant 0 : index
    %c1_209 = arith.constant 1 : index
    %c0_210 = arith.constant 0 : index
    %134 = vector.load %arg4[%c0_206, %c0_207, %c0_208, %c1_209, %c0_210] : memref<1x1x10x10x4xbf16, #tpu.memory_space<vmem>>, vector<1x1x8x8x4xbf16>
    %135 = vector.shape_cast %134 : vector<1x1x8x8x4xbf16> to vector<8x8x4xbf16>
    %136 = vector.shape_cast %135 : vector<8x8x4xbf16> to vector<64x4xbf16>
    %c2_211 = arith.constant 2 : index
    %c0_212 = arith.constant 0 : index
    %c1_213 = arith.constant 1 : index
    %c0_214 = arith.constant 0 : index
    %c0_215 = arith.constant 0 : index
    %137 = vector.load %arg5[%c2_211, %c0_212, %c1_213, %c0_214, %c0_215] : memref<3x3x3x4x128xbf16, #tpu.memory_space<vmem>>, vector<1x1x1x4x128xbf16>
    %138 = vector.shape_cast %137 : vector<1x1x1x4x128xbf16> to vector<4x128xbf16>
    %cst_216 = arith.constant dense<0.000000e+00> : vector<64x128xf32>
    %139 = tpu.matmul %136, %138, %cst_216 {dimension_numbers = #tpu.dot_dimension_numbers<[1], [0], [0], [1], [0, 0, 1, 1], [], []>} : vector<64x4xbf16>, vector<4x128xbf16>, vector<64x128xf32> -> vector<64x128xf32>
    %140 = arith.addf %133, %139 : vector<64x128xf32>
    %c0_217 = arith.constant 0 : index
    %c0_218 = arith.constant 0 : index
    %c0_219 = arith.constant 0 : index
    %c2_220 = arith.constant 2 : index
    %c0_221 = arith.constant 0 : index
    %141 = vector.load %arg4[%c0_217, %c0_218, %c0_219, %c2_220, %c0_221] : memref<1x1x10x10x4xbf16, #tpu.memory_space<vmem>>, vector<1x1x8x8x4xbf16>
    %142 = vector.shape_cast %141 : vector<1x1x8x8x4xbf16> to vector<8x8x4xbf16>
    %143 = vector.shape_cast %142 : vector<8x8x4xbf16> to vector<64x4xbf16>
    %c2_222 = arith.constant 2 : index
    %c0_223 = arith.constant 0 : index
    %c2_224 = arith.constant 2 : index
    %c0_225 = arith.constant 0 : index
    %c0_226 = arith.constant 0 : index
    %144 = vector.load %arg5[%c2_222, %c0_223, %c2_224, %c0_225, %c0_226] : memref<3x3x3x4x128xbf16, #tpu.memory_space<vmem>>, vector<1x1x1x4x128xbf16>
    %145 = vector.shape_cast %144 : vector<1x1x1x4x128xbf16> to vector<4x128xbf16>
    %cst_227 = arith.constant dense<0.000000e+00> : vector<64x128xf32>
    %146 = tpu.matmul %143, %145, %cst_227 {dimension_numbers = #tpu.dot_dimension_numbers<[1], [0], [0], [1], [0, 0, 1, 1], [], []>} : vector<64x4xbf16>, vector<4x128xbf16>, vector<64x128xf32> -> vector<64x128xf32>
    %147 = arith.addf %140, %146 : vector<64x128xf32>
    %c0_228 = arith.constant 0 : index
    %c0_229 = arith.constant 0 : index
    %c1_230 = arith.constant 1 : index
    %c0_231 = arith.constant 0 : index
    %c0_232 = arith.constant 0 : index
    %148 = vector.load %arg4[%c0_228, %c0_229, %c1_230, %c0_231, %c0_232] : memref<1x1x10x10x4xbf16, #tpu.memory_space<vmem>>, vector<1x1x8x8x4xbf16>
    %149 = vector.shape_cast %148 : vector<1x1x8x8x4xbf16> to vector<8x8x4xbf16>
    %150 = vector.shape_cast %149 : vector<8x8x4xbf16> to vector<64x4xbf16>
    %c2_233 = arith.constant 2 : index
    %c1_234 = arith.constant 1 : index
    %c0_235 = arith.constant 0 : index
    %c0_236 = arith.constant 0 : index
    %c0_237 = arith.constant 0 : index
    %151 = vector.load %arg5[%c2_233, %c1_234, %c0_235, %c0_236, %c0_237] : memref<3x3x3x4x128xbf16, #tpu.memory_space<vmem>>, vector<1x1x1x4x128xbf16>
    %152 = vector.shape_cast %151 : vector<1x1x1x4x128xbf16> to vector<4x128xbf16>
    %cst_238 = arith.constant dense<0.000000e+00> : vector<64x128xf32>
    %153 = tpu.matmul %150, %152, %cst_238 {dimension_numbers = #tpu.dot_dimension_numbers<[1], [0], [0], [1], [0, 0, 1, 1], [], []>} : vector<64x4xbf16>, vector<4x128xbf16>, vector<64x128xf32> -> vector<64x128xf32>
    %154 = arith.addf %147, %153 : vector<64x128xf32>
    %c0_239 = arith.constant 0 : index
    %c0_240 = arith.constant 0 : index
    %c1_241 = arith.constant 1 : index
    %c1_242 = arith.constant 1 : index
    %c0_243 = arith.constant 0 : index
    %155 = vector.load %arg4[%c0_239, %c0_240, %c1_241, %c1_242, %c0_243] : memref<1x1x10x10x4xbf16, #tpu.memory_space<vmem>>, vector<1x1x8x8x4xbf16>
    %156 = vector.shape_cast %155 : vector<1x1x8x8x4xbf16> to vector<8x8x4xbf16>
    %157 = vector.shape_cast %156 : vector<8x8x4xbf16> to vector<64x4xbf16>
    %c2_244 = arith.constant 2 : index
    %c1_245 = arith.constant 1 : index
    %c1_246 = arith.constant 1 : index
    %c0_247 = arith.constant 0 : index
    %c0_248 = arith.constant 0 : index
    %158 = vector.load %arg5[%c2_244, %c1_245, %c1_246, %c0_247, %c0_248] : memref<3x3x3x4x128xbf16, #tpu.memory_space<vmem>>, vector<1x1x1x4x128xbf16>
    %159 = vector.shape_cast %158 : vector<1x1x1x4x128xbf16> to vector<4x128xbf16>
    %cst_249 = arith.constant dense<0.000000e+00> : vector<64x128xf32>
    %160 = tpu.matmul %157, %159, %cst_249 {dimension_numbers = #tpu.dot_dimension_numbers<[1], [0], [0], [1], [0, 0, 1, 1], [], []>} : vector<64x4xbf16>, vector<4x128xbf16>, vector<64x128xf32> -> vector<64x128xf32>
    %161 = arith.addf %154, %160 : vector<64x128xf32>
    %c0_250 = arith.constant 0 : index
    %c0_251 = arith.constant 0 : index
    %c1_252 = arith.constant 1 : index
    %c2_253 = arith.constant 2 : index
    %c0_254 = arith.constant 0 : index
    %162 = vector.load %arg4[%c0_250, %c0_251, %c1_252, %c2_253, %c0_254] : memref<1x1x10x10x4xbf16, #tpu.memory_space<vmem>>, vector<1x1x8x8x4xbf16>
    %163 = vector.shape_cast %162 : vector<1x1x8x8x4xbf16> to vector<8x8x4xbf16>
    %164 = vector.shape_cast %163 : vector<8x8x4xbf16> to vector<64x4xbf16>
    %c2_255 = arith.constant 2 : index
    %c1_256 = arith.constant 1 : index
    %c2_257 = arith.constant 2 : index
    %c0_258 = arith.constant 0 : index
    %c0_259 = arith.constant 0 : index
    %165 = vector.load %arg5[%c2_255, %c1_256, %c2_257, %c0_258, %c0_259] : memref<3x3x3x4x128xbf16, #tpu.memory_space<vmem>>, vector<1x1x1x4x128xbf16>
    %166 = vector.shape_cast %165 : vector<1x1x1x4x128xbf16> to vector<4x128xbf16>
    %cst_260 = arith.constant dense<0.000000e+00> : vector<64x128xf32>
    %167 = tpu.matmul %164, %166, %cst_260 {dimension_numbers = #tpu.dot_dimension_numbers<[1], [0], [0], [1], [0, 0, 1, 1], [], []>} : vector<64x4xbf16>, vector<4x128xbf16>, vector<64x128xf32> -> vector<64x128xf32>
    %168 = arith.addf %161, %167 : vector<64x128xf32>
    %c0_261 = arith.constant 0 : index
    %c0_262 = arith.constant 0 : index
    %c2_263 = arith.constant 2 : index
    %c0_264 = arith.constant 0 : index
    %c0_265 = arith.constant 0 : index
    %169 = vector.load %arg4[%c0_261, %c0_262, %c2_263, %c0_264, %c0_265] : memref<1x1x10x10x4xbf16, #tpu.memory_space<vmem>>, vector<1x1x8x8x4xbf16>
    %170 = vector.shape_cast %169 : vector<1x1x8x8x4xbf16> to vector<8x8x4xbf16>
    %171 = vector.shape_cast %170 : vector<8x8x4xbf16> to vector<64x4xbf16>
    %c2_266 = arith.constant 2 : index
    %c2_267 = arith.constant 2 : index
    %c0_268 = arith.constant 0 : index
    %c0_269 = arith.constant 0 : index
    %c0_270 = arith.constant 0 : index
    %172 = vector.load %arg5[%c2_266, %c2_267, %c0_268, %c0_269, %c0_270] : memref<3x3x3x4x128xbf16, #tpu.memory_space<vmem>>, vector<1x1x1x4x128xbf16>
    %173 = vector.shape_cast %172 : vector<1x1x1x4x128xbf16> to vector<4x128xbf16>
    %cst_271 = arith.constant dense<0.000000e+00> : vector<64x128xf32>
    %174 = tpu.matmul %171, %173, %cst_271 {dimension_numbers = #tpu.dot_dimension_numbers<[1], [0], [0], [1], [0, 0, 1, 1], [], []>} : vector<64x4xbf16>, vector<4x128xbf16>, vector<64x128xf32> -> vector<64x128xf32>
    %175 = arith.addf %168, %174 : vector<64x128xf32>
    %c0_272 = arith.constant 0 : index
    %c0_273 = arith.constant 0 : index
    %c2_274 = arith.constant 2 : index
    %c1_275 = arith.constant 1 : index
    %c0_276 = arith.constant 0 : index
    %176 = vector.load %arg4[%c0_272, %c0_273, %c2_274, %c1_275, %c0_276] : memref<1x1x10x10x4xbf16, #tpu.memory_space<vmem>>, vector<1x1x8x8x4xbf16>
    %177 = vector.shape_cast %176 : vector<1x1x8x8x4xbf16> to vector<8x8x4xbf16>
    %178 = vector.shape_cast %177 : vector<8x8x4xbf16> to vector<64x4xbf16>
    %c2_277 = arith.constant 2 : index
    %c2_278 = arith.constant 2 : index
    %c1_279 = arith.constant 1 : index
    %c0_280 = arith.constant 0 : index
    %c0_281 = arith.constant 0 : index
    %179 = vector.load %arg5[%c2_277, %c2_278, %c1_279, %c0_280, %c0_281] : memref<3x3x3x4x128xbf16, #tpu.memory_space<vmem>>, vector<1x1x1x4x128xbf16>
    %180 = vector.shape_cast %179 : vector<1x1x1x4x128xbf16> to vector<4x128xbf16>
    %cst_282 = arith.constant dense<0.000000e+00> : vector<64x128xf32>
    %181 = tpu.matmul %178, %180, %cst_282 {dimension_numbers = #tpu.dot_dimension_numbers<[1], [0], [0], [1], [0, 0, 1, 1], [], []>} : vector<64x4xbf16>, vector<4x128xbf16>, vector<64x128xf32> -> vector<64x128xf32>
    %182 = arith.addf %175, %181 : vector<64x128xf32>
    %c0_283 = arith.constant 0 : index
    %c0_284 = arith.constant 0 : index
    %c2_285 = arith.constant 2 : index
    %c2_286 = arith.constant 2 : index
    %c0_287 = arith.constant 0 : index
    %183 = vector.load %arg4[%c0_283, %c0_284, %c2_285, %c2_286, %c0_287] : memref<1x1x10x10x4xbf16, #tpu.memory_space<vmem>>, vector<1x1x8x8x4xbf16>
    %184 = vector.shape_cast %183 : vector<1x1x8x8x4xbf16> to vector<8x8x4xbf16>
    %185 = vector.shape_cast %184 : vector<8x8x4xbf16> to vector<64x4xbf16>
    %c2_288 = arith.constant 2 : index
    %c2_289 = arith.constant 2 : index
    %c2_290 = arith.constant 2 : index
    %c0_291 = arith.constant 0 : index
    %c0_292 = arith.constant 0 : index
    %186 = vector.load %arg5[%c2_288, %c2_289, %c2_290, %c0_291, %c0_292] : memref<3x3x3x4x128xbf16, #tpu.memory_space<vmem>>, vector<1x1x1x4x128xbf16>
    %187 = vector.shape_cast %186 : vector<1x1x1x4x128xbf16> to vector<4x128xbf16>
    %cst_293 = arith.constant dense<0.000000e+00> : vector<64x128xf32>
    %188 = tpu.matmul %185, %187, %cst_293 {dimension_numbers = #tpu.dot_dimension_numbers<[1], [0], [0], [1], [0, 0, 1, 1], [], []>} : vector<64x4xbf16>, vector<4x128xbf16>, vector<64x128xf32> -> vector<64x128xf32>
    %189 = arith.addf %182, %188 : vector<64x128xf32>
    %c0_294 = arith.constant 0 : index
    %c0_295 = arith.constant 0 : index
    %190 = vector.load %arg6[%c0_294, %c0_295] : memref<1x128xf32, #tpu.memory_space<vmem>>, vector<1x128xf32>
    %191 = vector.broadcast %190 : vector<1x128xf32> to vector<64x128xf32>
    %192 = arith.addf %189, %191 : vector<64x128xf32>
    %193 = arith.truncf %192 : vector<64x128xf32> to vector<64x128xbf16>
    %c0_296 = arith.constant 0 : index
    %c0_297 = arith.constant 0 : index
    %c0_298 = arith.constant 0 : index
    %c0_299 = arith.constant 0 : index
    %194 = vector.load %arg7[%c0_296, %c0_297, %c0_298, %c0_299] : memref<1x1x64x128xbf16, #tpu.memory_space<vmem>>, vector<1x1x64x128xbf16>
    %195 = vector.shape_cast %194 : vector<1x1x64x128xbf16> to vector<64x128xbf16>
    %196 = vector.shape_cast %193 : vector<64x128xbf16> to vector<1x1x64x128xbf16>
    tpu.vector_store %arg7[%c0_296, %c0_297, %c0_298, %c0_299], %196 {strides = array<i32>} : memref<1x1x64x128xbf16, #tpu.memory_space<vmem>>, vector<1x1x64x128xbf16>,
    %cst_300 = arith.constant dense<0.000000e+00> : vector<128xf32>
    %197 = vector.multi_reduction <add>, %192, %cst_300 [0] : vector<64x128xf32> to vector<128xf32>
    %198 = vector.shape_cast %197 : vector<128xf32> to vector<1x128xf32>
    %c0_301 = arith.constant 0 : index
    %c0_302 = arith.constant 0 : index
    %c0_303 = arith.constant 0 : index
    %c0_304 = arith.constant 0 : index
    %199 = vector.load %arg8[%c0_301, %c0_302, %c0_303, %c0_304] : memref<1x1x2x128xf32, #tpu.memory_space<vmem>>, vector<1x1x1x128xf32>
    %200 = vector.shape_cast %199 : vector<1x1x1x128xf32> to vector<1x128xf32>
    %201 = vector.shape_cast %198 : vector<1x128xf32> to vector<1x1x1x128xf32>
    tpu.vector_store %arg8[%c0_301, %c0_302, %c0_303, %c0_304], %201 {strides = array<i32>} : memref<1x1x2x128xf32, #tpu.memory_space<vmem>>, vector<1x1x1x128xf32>,
    %202 = arith.mulf %192, %192 : vector<64x128xf32>
    %cst_305 = arith.constant dense<0.000000e+00> : vector<128xf32>
    %203 = vector.multi_reduction <add>, %202, %cst_305 [0] : vector<64x128xf32> to vector<128xf32>
    %204 = vector.shape_cast %203 : vector<128xf32> to vector<1x128xf32>
    %c0_306 = arith.constant 0 : index
    %c0_307 = arith.constant 0 : index
    %c1_308 = arith.constant 1 : index
    %c0_309 = arith.constant 0 : index
    %205 = vector.load %arg8[%c0_306, %c0_307, %c1_308, %c0_309] : memref<1x1x2x128xf32, #tpu.memory_space<vmem>>, vector<1x1x1x128xf32>
    %206 = vector.shape_cast %205 : vector<1x1x1x128xf32> to vector<1x128xf32>
    %207 = vector.shape_cast %204 : vector<1x128xf32> to vector<1x1x1x128xf32>
    tpu.vector_store %arg8[%c0_306, %c0_307, %c1_308, %c0_309], %207 {strides = array<i32>} : memref<1x1x2x128xf32, #tpu.memory_space<vmem>>, vector<1x1x1x128xf32>,
    return
  }
  func.func @transform_0(%arg0: i32, %arg1: i32) -> (i32, i32, i32, i32, i32) {
    %c0_i32 = arith.constant 0 : i32
    %0 = arith.addi %arg1, %c0_i32 : i32
    %c0_i32_0 = arith.constant 0 : i32
    %c0_i32_1 = arith.constant 0 : i32
    %c0_i32_2 = arith.constant 0 : i32
    %c0_i32_3 = arith.constant 0 : i32
    return %arg0, %0, %c0_i32_0, %c0_i32_1, %c0_i32_2 : i32, i32, i32, i32, i32
  }
  func.func @transform_1(%arg0: i32, %arg1: i32) -> (i32, i32, i32, i32, i32) {
    %c1_i32 = arith.constant 1 : i32
    %0 = arith.addi %arg1, %c1_i32 : i32
    %c0_i32 = arith.constant 0 : i32
    %c0_i32_0 = arith.constant 0 : i32
    %c0_i32_1 = arith.constant 0 : i32
    %c0_i32_2 = arith.constant 0 : i32
    return %arg0, %0, %c0_i32, %c0_i32_0, %c0_i32_1 : i32, i32, i32, i32, i32
  }
  func.func @transform_2(%arg0: i32, %arg1: i32) -> (i32, i32, i32, i32, i32) {
    %c2_i32 = arith.constant 2 : i32
    %0 = arith.addi %arg1, %c2_i32 : i32
    %c0_i32 = arith.constant 0 : i32
    %c0_i32_0 = arith.constant 0 : i32
    %c0_i32_1 = arith.constant 0 : i32
    %c0_i32_2 = arith.constant 0 : i32
    return %arg0, %0, %c0_i32, %c0_i32_0, %c0_i32_1 : i32, i32, i32, i32, i32
  }
  func.func @transform_3(%arg0: i32, %arg1: i32) -> (i32, i32, i32, i32, i32) {
    %c0_i32 = arith.constant 0 : i32
    %c0_i32_0 = arith.constant 0 : i32
    %c0_i32_1 = arith.constant 0 : i32
    %c0_i32_2 = arith.constant 0 : i32
    %c0_i32_3 = arith.constant 0 : i32
    %c0_i32_4 = arith.constant 0 : i32
    return %c0_i32, %c0_i32_0, %c0_i32_1, %c0_i32_2, %c0_i32_3 : i32, i32, i32, i32, i32
  }
  func.func @transform_4(%arg0: i32, %arg1: i32) -> (i32, i32) {
    %c0_i32 = arith.constant 0 : i32
    %c0_i32_0 = arith.constant 0 : i32
    %c0_i32_1 = arith.constant 0 : i32
    return %c0_i32, %c0_i32_0 : i32, i32
  }
  func.func @transform_5(%arg0: i32, %arg1: i32) -> (i32, i32, i32, i32) {
    %c0_i32 = arith.constant 0 : i32
    %c0_i32_0 = arith.constant 0 : i32
    %c0_i32_1 = arith.constant 0 : i32
    return %arg0, %arg1, %c0_i32, %c0_i32_0 : i32, i32, i32, i32
  }
  func.func @transform_6(%arg0: i32, %arg1: i32) -> (i32, i32, i32, i32) {
    %c0_i32 = arith.constant 0 : i32
    %c0_i32_0 = arith.constant 0 : i32
    %c0_i32_1 = arith.constant 0 : i32
    return %arg0, %arg1, %c0_i32, %c0_i32_0 : i32, i32, i32, i32
  }
}

module attributes {stable_mosaic.version = 11 : i64} {
  func.func @_gn_relu_t_kernel(%arg0: i32, %arg1: i32, %arg2: memref<1x512x128xbf16, #tpu.memory_space<vmem>>, %arg3: memref<1x1x128xf32, #tpu.memory_space<vmem>>, %arg4: memref<1x1x128xf32, #tpu.memory_space<vmem>>, %arg5: memref<1x128x512xf32, #tpu.memory_space<vmem>>) attributes {dimension_semantics = [#tpu.dimension_semantics<parallel>, #tpu.dimension_semantics<parallel>], iteration_bounds = array<i64: 2, 1>, scalar_prefetch = 0 : i64, scratch_operands = 0 : i64, tpu.core_type = #tpu.core_type<tc>, window_params = [{transform_indices = @transform_0, window_bounds = array<i64: 1, 512, 128>}, {transform_indices = @transform_1, window_bounds = array<i64: 1, 1, 128>}, {transform_indices = @transform_2, window_bounds = array<i64: 1, 1, 128>}, {transform_indices = @transform_3, window_bounds = array<i64: 1, 128, 512>}]} {
    %c0 = arith.constant 0 : index
    %c0_0 = arith.constant 0 : index
    %c0_1 = arith.constant 0 : index
    %0 = vector.load %arg2[%c0, %c0_0, %c0_1] : memref<1x512x128xbf16, #tpu.memory_space<vmem>>, vector<1x512x128xbf16>
    %1 = vector.shape_cast %0 : vector<1x512x128xbf16> to vector<512x128xbf16>
    %2 = arith.extf %1 : vector<512x128xbf16> to vector<512x128xf32>
    %c0_2 = arith.constant 0 : index
    %c0_3 = arith.constant 0 : index
    %c0_4 = arith.constant 0 : index
    %3 = vector.load %arg3[%c0_2, %c0_3, %c0_4] : memref<1x1x128xf32, #tpu.memory_space<vmem>>, vector<1x1x128xf32>
    %4 = vector.shape_cast %3 : vector<1x1x128xf32> to vector<1x128xf32>
    %5 = vector.broadcast %4 : vector<1x128xf32> to vector<512x128xf32>
    %6 = arith.mulf %2, %5 : vector<512x128xf32>
    %c0_5 = arith.constant 0 : index
    %c0_6 = arith.constant 0 : index
    %c0_7 = arith.constant 0 : index
    %7 = vector.load %arg4[%c0_5, %c0_6, %c0_7] : memref<1x1x128xf32, #tpu.memory_space<vmem>>, vector<1x1x128xf32>
    %8 = vector.shape_cast %7 : vector<1x1x128xf32> to vector<1x128xf32>
    %9 = vector.broadcast %8 : vector<1x128xf32> to vector<512x128xf32>
    %10 = arith.addf %6, %9 : vector<512x128xf32>
    %cst = arith.constant 0.000000e+00 : f32
    %11 = vector.broadcast %cst : f32 to vector<512x128xf32>
    %12 = arith.maximumf %10, %11 : vector<512x128xf32>
    %13 = tpu.transpose %12, [1, 0] : vector<512x128xf32> -> vector<128x512xf32>
    %c0_8 = arith.constant 0 : index
    %c0_9 = arith.constant 0 : index
    %c0_10 = arith.constant 0 : index
    %14 = vector.load %arg5[%c0_8, %c0_9, %c0_10] : memref<1x128x512xf32, #tpu.memory_space<vmem>>, vector<1x128x512xf32>
    %15 = vector.shape_cast %14 : vector<1x128x512xf32> to vector<128x512xf32>
    %16 = vector.shape_cast %13 : vector<128x512xf32> to vector<1x128x512xf32>
    tpu.vector_store %arg5[%c0_8, %c0_9, %c0_10], %16 {strides = array<i32>} : memref<1x128x512xf32, #tpu.memory_space<vmem>>, vector<1x128x512xf32>,
    return
  }
  func.func @transform_0(%arg0: i32, %arg1: i32) -> (i32, i32, i32) {
    %c0_i32 = arith.constant 0 : i32
    %c0_i32_0 = arith.constant 0 : i32
    return %arg0, %arg1, %c0_i32 : i32, i32, i32
  }
  func.func @transform_1(%arg0: i32, %arg1: i32) -> (i32, i32, i32) {
    %c0_i32 = arith.constant 0 : i32
    %c0_i32_0 = arith.constant 0 : i32
    %c0_i32_1 = arith.constant 0 : i32
    return %arg0, %c0_i32, %c0_i32_0 : i32, i32, i32
  }
  func.func @transform_2(%arg0: i32, %arg1: i32) -> (i32, i32, i32) {
    %c0_i32 = arith.constant 0 : i32
    %c0_i32_0 = arith.constant 0 : i32
    %c0_i32_1 = arith.constant 0 : i32
    return %arg0, %c0_i32, %c0_i32_0 : i32, i32, i32
  }
  func.func @transform_3(%arg0: i32, %arg1: i32) -> (i32, i32, i32) {
    %c0_i32 = arith.constant 0 : i32
    %c0_i32_0 = arith.constant 0 : i32
    return %arg0, %c0_i32, %arg1 : i32, i32, i32
  }
}

</mosaic_0001>

<bundles_post_ra>
// kernel: squeeze.2
= control target key start
LH: loop header
LB: loop body
LE: loop exit
PB: predicated region body
PF: predicated region fallthrough
CT: control target
= control target key end

     0   :  { %s130_s8 = smov 122   ;;  %s131_s9 = smov 124   ;;  %vm7_vm0 = vcmask 15360   ;;  %s221_s0 = inlined_call_operand.vmem [shape: f32[2,32], index: 0, kind: input, shape index: {}]   ;;  %s222_s1 = inlined_call_operand.vmem [shape: f32[2,16,2], index: 1, kind: output, shape index: {}]  }
   0x1   :  { %v4_v0 = vld [vmem:[%s221_s0] sm:$0x3]  ;;  %s129_s0 = smov 126   ;;  %s132_s10 = smov 120  }
   0x2   :  { %5 = vst [vmem:[#allocation0] sm:$0x3] %v4_v0  ;;  %s133_s11 = smov 118   ;;  %s134_s12 = smov 116  }
   0x3   :  { %s135_s13 = smov 114   ;;  %s136_s14 = smov 112  }
   0x4   :  { %s137_s17 = smov 110   ;;  %s138_s18 = smov 108  }
   0x5   :  { %s139_s19 = smov 106   ;;  %s140_s20 = smov 104  }
   0x6   :  { %s141_s21 = smov 102   ;;  %s142_s22 = smov 100  }
   0x7   :  { %s143_s23 = smov 98  }
   0x9   :  { %v9_v1 = vld [vmem:[#allocation0] sm:$0x3]  }
   0xa   :  { %v21_v2 = vld [vmem:[#allocation0] sm:$0x3]   ;;  %10 = vrot.lane.b32.xlu0 %v9_v1, %s129_s0 }
   0xb   :  { %22 = vrot.lane.b32.xlu1 %v21_v2, %s130_s8  ;;  %v15_v3 = vld [vmem:[#allocation0] sm:$0x3]  }
   0xc   :  { %v27_v4 = vld [vmem:[#allocation0] sm:$0x3]  }
   0xd   :  { %v33_v5 = vld [vmem:[#allocation0] sm:$0x3]  }
   0xe   :  { %16 = vrot.lane.b32.xlu0 %v15_v3, %s131_s9  ;;  %v39_v6 = vld [vmem:[#allocation0] sm:$0x3]  }
   0xf   :  { %28 = vrot.lane.b32.xlu1 %v27_v4, %s132_s10  ;;  %v45_v7 = vld [vmem:[#allocation0] sm:$0x3]  }
  0x10   :  { %v51_v8 = vld [vmem:[#allocation0] sm:$0x3]  }
  0x11   :  { %v57_v9 = vld [vmem:[#allocation0] sm:$0x3]  }
  0x12   :  { %34 = vrot.lane.b32.xlu0 %v33_v5, %s133_s11  ;;  %v63_v10 = vld [vmem:[#allocation0] sm:$0x3]  }
  0x13   :  { %40 = vrot.lane.b32.xlu1 %v39_v6, %s134_s12  ;;  %v6_v11 = vld [vmem:[#allocation0] sm:$0x3]  }
  0x14   :  { %8 = vst.msk [vmem:[%s222_s1] ss:$16 sm:$0x3] %vm7_vm0, %v6_v11   ;;  %v69_v12 = vld [vmem:[#allocation0] sm:$0x3]  }
  0x15   :  { %v75_v13 = vld [vmem:[#allocation0] sm:$0x3]  }
  0x16   :  { %46 = vrot.lane.b32.xlu0 %v45_v7, %s135_s13  ;;  %v81_v14 = vld [vmem:[#allocation0] sm:$0x3]  }
  0x17   :  { %52 = vrot.lane.b32.xlu1 %v51_v8, %s136_s14  ;;  %v87_v15 = vld [vmem:[#allocation0] sm:$0x3]  }
  0x18   :  { %v93_v16 = vld [vmem:[#allocation0] sm:$0x3]  }
  0x1a   :  { %58 = vrot.lane.b32.xlu0 %v57_v9, %s137_s17 }
  0x1b   :  { %64 = vrot.lane.b32.xlu1 %v63_v10, %s138_s18 }
  0x1e   :  { %70 = vrot.lane.b32.xlu0 %v69_v12, %s139_s19 }
  0x1f   :  { %76 = vrot.lane.b32.xlu1 %v75_v13, %s140_s20 }
  0x22   :  { %82 = vrot.lane.b32.xlu0 %v81_v14, %s141_s21 }
  0x23   :  { %88 = vrot.lane.b32.xlu1 %v87_v15, %s142_s22 }
  0x26   :  { %94 = vrot.lane.b32.xlu0 %v93_v16, %s143_s23 }
  0x7c   :  { %v11_v17 = vpop.permute.xlu0 %10  }
  0x7d   :  { %v23_v18 = vpop.permute.xlu1 %22   ;;  %99 = vst.msk [vmem:[%s222_s1 + $0x1] ss:$16 sm:$0x3] %vm7_vm0, %v11_v17  }
  0x7e   :  { %101 = vst.msk [vmem:[%s222_s1 + $0x3] ss:$16 sm:$0x3] %vm7_vm0, %v23_v18  }
  0x80   :  { %v17_v19 = vpop.permute.xlu0 %16  }
  0x81   :  { %v29_v20 = vpop.permute.xlu1 %28   ;;  %100 = vst.msk [vmem:[%s222_s1 + $0x2] ss:$16 sm:$0x3] %vm7_vm0, %v17_v19  }
  0x82   :  { %102 = vst.msk [vmem:[%s222_s1 + $0x4] ss:$16 sm:$0x3] %vm7_vm0, %v29_v20  }
  0x84   :  { %v35_v21 = vpop.permute.xlu0 %34  }
  0x85   :  { %v41_v22 = vpop.permute.xlu1 %40   ;;  %103 = vst.msk [vmem:[%s222_s1 + $0x5] ss:$16 sm:$0x3] %vm7_vm0, %v35_v21  }
  0x86   :  { %104 = vst.msk [vmem:[%s222_s1 + $0x6] ss:$16 sm:$0x3] %vm7_vm0, %v41_v22  }
  0x88   :  { %v47_v23 = vpop.permute.xlu0 %46  }
  0x89   :  { %v53_v24 = vpop.permute.xlu1 %52   ;;  %105 = vst.msk [vmem:[%s222_s1 + $0x7] ss:$16 sm:$0x3] %vm7_vm0, %v47_v23  }
  0x8a   :  { %106 = vst.msk [vmem:[%s222_s1 + $0x8] ss:$16 sm:$0x3] %vm7_vm0, %v53_v24  }
  0x8c   :  { %v59_v25 = vpop.permute.xlu0 %58  }
  0x8d   :  { %v65_v26 = vpop.permute.xlu1 %64   ;;  %107 = vst.msk [vmem:[%s222_s1 + $0x9] ss:$16 sm:$0x3] %vm7_vm0, %v59_v25  }
  0x8e   :  { %108 = vst.msk [vmem:[%s222_s1 + $0xa] ss:$16 sm:$0x3] %vm7_vm0, %v65_v26  }
  0x90   :  { %v71_v27 = vpop.permute.xlu0 %70  }
  0x91   :  { %v77_v28 = vpop.permute.xlu1 %76   ;;  %109 = vst.msk [vmem:[%s222_s1 + $0xb] ss:$16 sm:$0x3] %vm7_vm0, %v71_v27  }
  0x92   :  { %110 = vst.msk [vmem:[%s222_s1 + $0xc] ss:$16 sm:$0x3] %vm7_vm0, %v77_v28  }
  0x94   :  { %v83_v29 = vpop.permute.xlu0 %82  }
  0x95   :  { %v89_v30 = vpop.permute.xlu1 %88   ;;  %111 = vst.msk [vmem:[%s222_s1 + $0xd] ss:$16 sm:$0x3] %vm7_vm0, %v83_v29  }
  0x96   :  { %112 = vst.msk [vmem:[%s222_s1 + $0xe] ss:$16 sm:$0x3] %vm7_vm0, %v89_v30  }
  0x98   :  { %v95_v31 = vpop.permute.xlu0 %94  }
  0x99   :  { %113 = vst.msk [vmem:[%s222_s1 + $0xf] ss:$16 sm:$0x3] %vm7_vm0, %v95_v31  }

// kernel: conv3d_gn_relu_drop_forward.3
= control target key start
LH: loop header
LB: loop body
LE: loop exit
PB: predicated region body
PF: predicated region fallthrough
CT: control target
= control target key end

     0   :  { %s1111_s12 = smov 0   ;;  %s1113_s13 = smov 0   ;;  %s1539_s0 = inlined_call_operand.vmem [shape: bf16[2,512,128], index: 0, kind: input, shape index: {}]   ;;  %s1540_s1 = inlined_call_operand.vmem [shape: f32[2,1,128], index: 1, kind: input, shape index: {}]   ;;  %s1541_s2 = inlined_call_operand.vmem [shape: f32[2,1,128], index: 2, kind: input, shape index: {}]   ;;  %s1542_s3 = inlined_call_operand.vmem [shape: f32[2,128,512], index: 3, kind: output, shape index: {}]  }
   0x1   :  { %s1115_s14 = smov 0  }
   0x2 LB: > { %s25_s15 = sadd.s32 1, %s1085_s13  ;;  %p873_p0 = scmp.ge.s32.totalorder %s1089_s14, 1  ;;  %s1089_s14 = sphi %s1115_s14, %s13_s14   ;;  %s1085_s13 = sphi %s1113_s13, %s1544_s13   ;;  %s1081_s12 = sphi %s1111_s12, %s1543_s12  }
   0x3   : > { %p27_p1 = scmp.ge.s32.totalorder %s25_s15, 2  ;;  %p174_p2 = scmp.lt.s32.totalorder %s1089_s14, 3 }
   0x5   : > { %s1546_s15 = smov (%p27_p1, %s25_s15), 0  ;;  %p175_p3 = pnand %p873_p0, %p174_p2 }
   0x6   : > { %p213_p4 = scmp.lt.s32.totalorder (!%p175_p3), %s1081_s12, 1 }
   0x7   : > { %178 = sbr.rel (%p175_p3) target bundleno = 281 (0x119), region = 32 }
   0xe   : > { %s1548_s12 = smov (!%p213_p4, %s1081_s12), 1 }
   0xf   : > { %s882_s16 = sshll.u32 %s1548_s12, 8  ;;  %s224_s19 = scalar_lea.vmem %s1540_s1, %s1548_s12 }
  0x10   : > { %s1139_s22 = scalar_lea.vmem %s1539_s0, %s882_s16  ;;  %s227_s25 = scalar_lea.vmem %s1541_s2, %s1548_s12  ;;  %v1146_v1 = vld [vmem:[%s224_s19] ss:$0 sm:$0xff] }
  0x11   : > { %v1019_v0 = vld [vmem:[%s1139_s22 + $0x40] sm:$0xff]   ;;  %v1020_v7 = vld [vmem:[%s1139_s22 + $0x48] sm:$0xff]   ;;  %v1021_v24 = vld [vmem:[%s1139_s22 + $0x50] sm:$0xff]   ;;  %s883_s26 = sshll.u32 %s1548_s12, 9 }
  0x12   : > { %v885_v2 = vld [vmem:[%s1139_s22] sm:$0xff]   ;;  %v918_v3 = vunpack.c.l.bf16 %v1019_v0  ;;  %v919_v5 = vunpack.c.h.bf16 %v1019_v0  ;;  %v1012_v8 = vld [vmem:[%s1139_s22 + $0x8] sm:$0xff]   ;;  %v922_v10 = vunpack.c.l.bf16 %v1020_v7  ;;  %v923_v12 = vunpack.c.h.bf16 %v1020_v7  ;;  %v1013_v25 = vld [vmem:[%s1139_s22 + $0x10] sm:$0xff]   ;;  %s1464_s29 = scalar_lea.vmem %s1542_s3, %s883_s26 }
  0x13   : > { %v886_v4 = vunpack.c.l.bf16 %v885_v2  ;;  %v887_v6 = vunpack.c.h.bf16 %v885_v2  ;;  %v1151_v9 = vld [vmem:[%s227_s25] ss:$0 sm:$0xff]  ;;  %v890_v11 = vunpack.c.l.bf16 %v1012_v8  ;;  %v891_v13 = vunpack.c.h.bf16 %v1012_v8  ;;  %v1022_v40 = vld [vmem:[%s1139_s22 + $0x58] sm:$0xff]   ;;  %v1024_v52 = vld [vmem:[%s1139_s22 + $0x68] sm:$0xff]  }
  0x14   : > { %v389_v14 = vmul.f32 %v918_v3, %v1146_v1  ;;  %v390_v16 = vmul.f32 %v919_v5, %v1146_v1  ;;  %v391_v18 = vmul.f32 %v922_v10, %v1146_v1  ;;  %v392_v28 = vmul.f32 %v923_v12, %v1146_v1  ;;  %v1014_v41 = vld [vmem:[%s1139_s22 + $0x18] sm:$0xff]   ;;  %v1023_v46 = vld [vmem:[%s1139_s22 + $0x60] sm:$0xff]   ;;  %v1016_v57 = vld [vmem:[%s1139_s22 + $0x28] sm:$0xff]  }
  0x15   : > { %v373_v15 = vmul.f32 %v886_v4, %v1146_v1  ;;  %v374_v17 = vmul.f32 %v887_v6, %v1146_v1  ;;  %v375_v19 = vmul.f32 %v890_v11, %v1146_v1  ;;  %v376_v29 = vmul.f32 %v891_v13, %v1146_v1  ;;  %v1015_v47 = vld [vmem:[%s1139_s22 + $0x20] sm:$0xff]  }
  0x16   : > { %v460_v20 = vadd.f32 %v1151_v9, %v389_v14  ;;  %v461_v22 = vadd.f32 %v1151_v9, %v390_v16  ;;  %v462_v30 = vadd.f32 %v1151_v9, %v391_v18  ;;  %v926_v34 = vunpack.c.l.bf16 %v1021_v24 }
  0x17   : > { %v444_v21 = vadd.f32 %v1151_v9, %v373_v15  ;;  %v445_v23 = vadd.f32 %v1151_v9, %v374_v17  ;;  %v446_v31 = vadd.f32 %v1151_v9, %v375_v19  ;;  %v894_v35 = vunpack.c.l.bf16 %v1013_v25 }
  0x18   : > { %v524_v26 = vmax.f32 %v460_v20, 0.0  ;;  %v525_v32 = vmax.f32 %v461_v22, 0.0  ;;  %v463_v36 = vadd.f32 %v1151_v9, %v392_v28  ;;  %v447_v37 = vadd.f32 %v1151_v9, %v376_v29 }
  0x19   : > { %v508_v27 = vmax.f32 %v444_v21, 0.0  ;;  %v509_v33 = vmax.f32 %v445_v23, 0.0  ;;  %v927_v38 = vunpack.c.h.bf16 %v1021_v24  ;;  %v895_v39 = vunpack.c.h.bf16 %v1013_v25  ;;  %v1200_v25 = vld [vmem:[%s1139_s22 + $0x70] sm:$0xff]  }
  0x1a   : > { %604 = vxpose.xlu1.b32.start [1/16] %v524_v26, 128  ;;  %v526_v42 = vmax.f32 %v462_v30, 0.0  ;;  %v510_v43 = vmax.f32 %v446_v31, 0.0  ;;  %v393_v44 = vmul.f32 %v926_v34, %v1146_v1  ;;  %v377_v45 = vmul.f32 %v894_v35, %v1146_v1 }
  0x1b   : > { %572 = vxpose.xlu0.b32.start [1/16] %v508_v27, 128  ;;  %v527_v48 = vmax.f32 %v463_v36, 0.0  ;;  %v511_v49 = vmax.f32 %v447_v37, 0.0  ;;  %v930_v50 = vunpack.c.l.bf16 %v1022_v40  ;;  %v898_v51 = vunpack.c.l.bf16 %v1014_v41 }
  0x1c   : > { %v394_v53 = vmul.f32 %v927_v38, %v1146_v1  ;;  %v378_v54 = vmul.f32 %v895_v39, %v1146_v1  ;;  %v931_v55 = vunpack.c.h.bf16 %v1022_v40  ;;  %v899_v56 = vunpack.c.h.bf16 %v1014_v41  ;;  %v1035_v39 = vld [vmem:[%s1139_s22 + $0xc0] sm:$0xff]  }
  0x1d   : > { %v464_v58 = vadd.f32 %v1151_v9, %v393_v44  ;;  %v448_v59 = vadd.f32 %v1151_v9, %v377_v45  ;;  %v934_v60 = vunpack.c.l.bf16 %v1023_v46  ;;  %v902_v61 = vunpack.c.l.bf16 %v1015_v47  ;;  %v1017_v44 = vld [vmem:[%s1139_s22 + $0x30] sm:$0xff]   ;;  %v1231_v45 = vld [vmem:[%s1139_s22 + $0x78] sm:$0xff]  }
  0x1e   : > { %605 = vxpose.xlu1.b32.cont [2/16] %v525_v32, 128  ;;  %v935_v62 = vunpack.c.h.bf16 %v1023_v46  ;;  %v903_v63 = vunpack.c.h.bf16 %v1015_v47  ;;  %v938_v0 = vunpack.c.l.bf16 %v1024_v52  ;;  %v395_v2 = vmul.f32 %v930_v50, %v1146_v1  ;;  %v1240_v50 = vld [vmem:[%s1139_s22 + $0x38] sm:$0xff]  }
  0x1f   : > { %573 = vxpose.xlu0.b32.cont [2/16] %v509_v33, 128  ;;  %v379_v3 = vmul.f32 %v898_v51, %v1146_v1  ;;  %v906_v4 = vunpack.c.l.bf16 %v1016_v57  ;;  %v939_v5 = vunpack.c.h.bf16 %v1024_v52  ;;  %v465_v6 = vadd.f32 %v1151_v9, %v394_v53  ;;  %v1027_v51 = vld [vmem:[%s1139_s22 + $0x80] sm:$0xff]  }
  0x20   : > { %v449_v7 = vadd.f32 %v1151_v9, %v378_v54  ;;  %v396_v8 = vmul.f32 %v931_v55, %v1146_v1  ;;  %v380_v10 = vmul.f32 %v899_v56, %v1146_v1  ;;  %v528_v11 = vmax.f32 %v464_v58, 0.0  ;;  %v1036_v56 = vld [vmem:[%s1139_s22 + $0xc8] sm:$0xff]  }
  0x21   : > { %v512_v12 = vmax.f32 %v448_v59, 0.0  ;;  %v397_v13 = vmul.f32 %v934_v60, %v1146_v1  ;;  %v381_v14 = vmul.f32 %v902_v61, %v1146_v1  ;;  %v398_v15 = vmul.f32 %v935_v62, %v1146_v1 }
  0x22   : > { %606 = vxpose.xlu1.b32.cont [3/16] %v526_v42, 128  ;;  %v382_v16 = vmul.f32 %v903_v63, %v1146_v1  ;;  %v399_v17 = vmul.f32 %v938_v0, %v1146_v1  ;;  %v907_v18 = vunpack.c.h.bf16 %v1016_v57  ;;  %v383_v19 = vmul.f32 %v906_v4, %v1146_v1  ;;  %v1028_v57 = vld [vmem:[%s1139_s22 + $0x88] sm:$0xff]  }
  0x23   : > { %574 = vxpose.xlu0.b32.cont [3/16] %v510_v43, 128  ;;  %v400_v20 = vmul.f32 %v939_v5, %v1146_v1  ;;  %v529_v21 = vmax.f32 %v465_v6, 0.0  ;;  %v466_v22 = vadd.f32 %v1151_v9, %v395_v2  ;;  %v450_v23 = vadd.f32 %v1151_v9, %v379_v3 }
  0x24   : > { %v467_v24 = vadd.f32 %v1151_v9, %v396_v8  ;;  %v513_v26 = vmax.f32 %v449_v7, 0.0  ;;  %v451_v27 = vadd.f32 %v1151_v9, %v380_v10  ;;  %v1204_v28 = vadd.f32 %v1151_v9, %v397_v13 }
  0x25   : > { %v1207_v29 = vadd.f32 %v1151_v9, %v381_v14  ;;  %v1210_v30 = vadd.f32 %v1151_v9, %v398_v15  ;;  %v1213_v31 = vadd.f32 %v1151_v9, %v382_v16  ;;  %v1216_v32 = vadd.f32 %v1151_v9, %v399_v17  ;;  %v1037_v16 = vld [vmem:[%s1139_s22 + $0xd0] sm:$0xff]  }
  0x26   : > { %607 = vxpose.xlu1.b32.cont [4/16] %v527_v48, 128  ;;  %v384_v33 = vmul.f32 %v907_v18, %v1146_v1  ;;  %v1220_v34 = vadd.f32 %v1151_v9, %v383_v19  ;;  %v1223_v35 = vadd.f32 %v1151_v9, %v400_v20  ;;  %v942_v36 = vunpack.c.l.bf16 %v1200_v25 }
  0x27   : > { %575 = vxpose.xlu0.b32.cont [4/16] %v511_v49, 128  ;;  %v530_v37 = vmax.f32 %v466_v22, 0.0  ;;  %v514_v38 = vmax.f32 %v450_v23, 0.0  ;;  %v531_v40 = vmax.f32 %v467_v24, 0.0  ;;  %v515_v41 = vmax.f32 %v451_v27, 0.0 }
  0x28   : > { %v532_v42 = vmax.f32 %v1204_v28, 0.0  ;;  %v516_v43 = vmax.f32 %v1207_v29, 0.0  ;;  %v533_v46 = vmax.f32 %v1210_v30, 0.0  ;;  %v517_v47 = vmax.f32 %v1213_v31, 0.0 }
  0x29   : > { %v534_v48 = vmax.f32 %v1216_v32, 0.0  ;;  %v1237_v49 = vadd.f32 %v1151_v9, %v384_v33  ;;  %v518_v52 = vmax.f32 %v1220_v34, 0.0  ;;  %v535_v53 = vmax.f32 %v1223_v35, 0.0  ;;  %v1038_v33 = vld [vmem:[%s1139_s22 + $0xd8] sm:$0xff]  }
  0x2a   : > { %608 = vxpose.xlu1.b32.cont [5/16] %v528_v11, 128  ;;  %v401_v54 = vmul.f32 %v942_v36, %v1146_v1  ;;  %v982_v55 = vunpack.c.l.bf16 %v1035_v39  ;;  %v910_v58 = vunpack.c.l.bf16 %v1017_v44  ;;  %v943_v59 = vunpack.c.h.bf16 %v1200_v25  ;;  %v1029_v25 = vld [vmem:[%s1139_s22 + $0x90] sm:$0xff]   ;;  %v1030_v36 = vld [vmem:[%s1139_s22 + $0x98] sm:$0xff]  }
  0x2b   : > { %576 = vxpose.xlu0.b32.cont [5/16] %v512_v12, 128  ;;  %v911_v60 = vunpack.c.h.bf16 %v1017_v44  ;;  %v946_v61 = vunpack.c.l.bf16 %v1231_v45  ;;  %v914_v62 = vunpack.c.l.bf16 %v1240_v50  ;;  %v983_v63 = vunpack.c.h.bf16 %v1035_v39 }
  0x2c   : > { %v421_v0 = vmul.f32 %v982_v55, %v1146_v1  ;;  %v950_v2 = vunpack.c.l.bf16 %v1027_v51  ;;  %v951_v3 = vunpack.c.h.bf16 %v1027_v51  ;;  %v986_v4 = vunpack.c.l.bf16 %v1036_v56 }
  0x2d   : > { %v954_v5 = vunpack.c.l.bf16 %v1028_v57  ;;  %v987_v6 = vunpack.c.h.bf16 %v1036_v56  ;;  %v422_v10 = vmul.f32 %v983_v63, %v1146_v1  ;;  %v955_v11 = vunpack.c.h.bf16 %v1028_v57  ;;  %v1039_v63 = vld [vmem:[%s1139_s22 + $0xe0] sm:$0xff]  }
  0x2e   : > { %609 = vxpose.xlu1.b32.cont [6/16] %v529_v21, 128  ;;  %v1253_v7 = vadd.f32 %v1151_v9, %v421_v0  ;;  %v405_v8 = vmul.f32 %v950_v2, %v1146_v1  ;;  %v406_v12 = vmul.f32 %v951_v3, %v1146_v1  ;;  %v423_v13 = vmul.f32 %v986_v4, %v1146_v1 }
  0x2f   : > { %577 = vxpose.xlu0.b32.cont [6/16] %v513_v26, 128  ;;  %v407_v14 = vmul.f32 %v954_v5, %v1146_v1  ;;  %v424_v15 = vmul.f32 %v987_v6, %v1146_v1  ;;  %v947_v17 = vunpack.c.h.bf16 %v1231_v45  ;;  %v1267_v19 = vadd.f32 %v1151_v9, %v422_v10 }
  0x30   : > { %v1264_v18 = vadd.f32 %v1151_v9, %v405_v8  ;;  %v408_v20 = vmul.f32 %v955_v11, %v1146_v1  ;;  %v1271_v21 = vadd.f32 %v1151_v9, %v406_v12  ;;  %v1274_v22 = vadd.f32 %v1151_v9, %v423_v13  ;;  %v1040_v11 = vld [vmem:[%s1139_s22 + $0xe8] sm:$0xff]  }
  0x31   : > { %v1277_v23 = vadd.f32 %v1151_v9, %v407_v14  ;;  %v1280_v24 = vadd.f32 %v1151_v9, %v424_v15  ;;  %v1284_v26 = vadd.f32 %v1151_v9, %v401_v54  ;;  %v385_v27 = vmul.f32 %v910_v58, %v1146_v1  ;;  %v1032_v12 = vld [vmem:[%s1139_s22 + $0xa8] sm:$0xff]  }
  0x32   : > { %610 = vxpose.xlu1.b32.cont [7/16] %v530_v37, 128  ;;  %v1288_v28 = vadd.f32 %v1151_v9, %v408_v20  ;;  %v990_v29 = vunpack.c.l.bf16 %v1037_v16  ;;  %v402_v37 = vmul.f32 %v943_v59, %v1146_v1  ;;  %v403_v39 = vmul.f32 %v946_v61, %v1146_v1 }
  0x33   : > { %578 = vxpose.xlu0.b32.cont [7/16] %v514_v38, 128  ;;  %v386_v38 = vmul.f32 %v911_v60, %v1146_v1  ;;  %v958_v45 = vunpack.c.l.bf16 %v1029_v25  ;;  %v991_v51 = vunpack.c.h.bf16 %v1037_v16  ;;  %v959_v54 = vunpack.c.h.bf16 %v1029_v25 }
  0x34   : > { %v425_v44 = vmul.f32 %v990_v29, %v1146_v1  ;;  %v994_v55 = vunpack.c.l.bf16 %v1038_v33  ;;  %v962_v56 = vunpack.c.l.bf16 %v1030_v36  ;;  %v995_v57 = vunpack.c.h.bf16 %v1038_v33 }
  0x35   : > { %v409_v59 = vmul.f32 %v958_v45, %v1146_v1  ;;  %v519_v0 = vmax.f32 %v1237_v49, 0.0  ;;  %v536_v49 = vmax.f32 %v1284_v26, 0.0  ;;  %v404_v6 = vmul.f32 %v947_v17, %v1146_v1 }
  0x36   : > { %611 = vxpose.xlu1.b32.cont [8/16] %v531_v40, 128  ;;  %v915_v40 = vunpack.c.h.bf16 %v1240_v50  ;;  %v1301_v58 = vadd.f32 %v1151_v9, %v425_v44  ;;  %v410_v50 = vmul.f32 %v959_v54, %v1146_v1  ;;  %v427_v60 = vmul.f32 %v994_v55, %v1146_v1  ;;  %v1041_v44 = vld [vmem:[%s1139_s22 + $0xf0] sm:$0xff]  }
  0x37   : > { %579 = vxpose.xlu0.b32.cont [8/16] %v515_v41, 128  ;;  %v1297_v41 = vmul.f32 %v914_v62, %v1146_v1  ;;  %v411_v61 = vmul.f32 %v962_v56, %v1146_v1  ;;  %v428_v62 = vmul.f32 %v995_v57, %v1146_v1  ;;  %v1316_v2 = vadd.f32 %v1151_v9, %v409_v59  ;;  %v1033_v59 = vld [vmem:[%s1139_s22 + $0xb0] sm:$0xff]  }
  0x38   : > { %v1323_v5 = vadd.f32 %v1151_v9, %v410_v50  ;;  %v1326_v30 = vadd.f32 %v1151_v9, %v427_v60  ;;  %v998_v10 = vunpack.c.l.bf16 %v1039_v63  ;;  %v456_v13 = vadd.f32 %v1151_v9, %v385_v27  ;;  %v1042_v60 = vld [vmem:[%s1139_s22 + $0xf8] sm:$0xff]  }
  0x39   : > { %v1329_v31 = vadd.f32 %v1151_v9, %v411_v61  ;;  %v473_v14 = vadd.f32 %v1151_v9, %v402_v37  ;;  %v457_v15 = vadd.f32 %v1151_v9, %v386_v38  ;;  %v388_v16 = vmul.f32 %v915_v40, %v1146_v1  ;;  %v1034_v61 = vld [vmem:[%s1139_s22 + $0xb8] sm:$0xff]  }
  0x3a   : > { %612 = vxpose.xlu1.b32.cont [9/16] %v532_v42, 128  ;;  %v426_v42 = vmul.f32 %v991_v51, %v1146_v1  ;;  %v1351_v17 = vadd.f32 %v1151_v9, %v403_v39  ;;  %v429_v20 = vmul.f32 %v998_v10, %v1146_v1  ;;  %v999_v26 = vunpack.c.h.bf16 %v1039_v63 }
  0x3b   : > { %580 = vxpose.xlu0.b32.cont [9/16] %v516_v43, 128  ;;  %v963_v43 = vunpack.c.h.bf16 %v1030_v36  ;;  %v1002_v29 = vunpack.c.l.bf16 %v1040_v11  ;;  %v970_v33 = vunpack.c.l.bf16 %v1032_v12  ;;  %v1003_v36 = vunpack.c.h.bf16 %v1040_v11 }
  0x3c   : > { %v1319_v3 = vadd.f32 %v1151_v9, %v426_v42  ;;  %v1355_v37 = vadd.f32 %v1151_v9, %v429_v20  ;;  %v430_v34 = vmul.f32 %v999_v26, %v1146_v1  ;;  %v520_v45 = vmax.f32 %v456_v13, 0.0 }
  0x3d   : > { %v412_v4 = vmul.f32 %v963_v43, %v1146_v1  ;;  %v431_v38 = vmul.f32 %v1002_v29, %v1146_v1  ;;  %v415_v39 = vmul.f32 %v970_v33, %v1146_v1  ;;  %v432_v40 = vmul.f32 %v1003_v36, %v1146_v1 }
  0x3e   : > { %613 = vxpose.xlu1.b32.cont [10/16] %v533_v46, 128  ;;  %v1332_v46 = vadd.f32 %v1151_v9, %v428_v62  ;;  %v1370_v54 = vadd.f32 %v1151_v9, %v430_v34  ;;  %v458_v42 = vadd.f32 %v1151_v9, %v1297_v41  ;;  %v1006_v50 = vunpack.c.l.bf16 %v1041_v44 }
  0x3f   : > { %581 = vxpose.xlu0.b32.cont [10/16] %v517_v47, 128  ;;  %v1031_v47 = vld [vmem:[%s1139_s22 + $0xa0] sm:$0xff]   ;;  %v1338_v8 = vadd.f32 %v1151_v9, %v412_v4  ;;  %v1377_v57 = vadd.f32 %v1151_v9, %v431_v38  ;;  %v1380_v35 = vadd.f32 %v1151_v9, %v415_v39  ;;  %v537_v62 = vmax.f32 %v473_v14, 0.0 }
  0x40   : > { %v966_v25 = vunpack.c.l.bf16 %v1031_v47  ;;  %v967_v27 = vunpack.c.h.bf16 %v1031_v47  ;;  %v521_v63 = vmax.f32 %v457_v15, 0.0  ;;  %v459_v4 = vadd.f32 %v1151_v9, %v388_v16 }
  0x41   : > { %v538_v47 = vmax.f32 %v1351_v17, 0.0  ;;  %v433_v10 = vmul.f32 %v1006_v50, %v1146_v1  ;;  %v974_v11 = vunpack.c.l.bf16 %v1033_v59  ;;  %v1007_v41 = vunpack.c.h.bf16 %v1041_v44 }
  0x42   : > { %614 = vxpose.xlu1.b32.cont [11/16] %v534_v48, 128  ;;  %v413_v32 = vmul.f32 %v966_v25, %v1146_v1  ;;  %v971_v48 = vunpack.c.h.bf16 %v1032_v12  ;;  %v975_v12 = vunpack.c.h.bf16 %v1033_v59  ;;  %v1010_v13 = vunpack.c.l.bf16 %v1042_v60 }
  0x43   : > { %582 = vxpose.xlu0.b32.cont [11/16] %v518_v52, 128  ;;  %v414_v52 = vmul.f32 %v967_v27, %v1146_v1  ;;  %v978_v20 = vunpack.c.l.bf16 %v1034_v61  ;;  %v1011_v25 = vunpack.c.h.bf16 %v1042_v60  ;;  %v1398_v26 = vadd.f32 %v1151_v9, %v433_v10 }
  0x44   : > { %v1367_v51 = vadd.f32 %v1151_v9, %v413_v32  ;;  %v416_v55 = vmul.f32 %v971_v48, %v1146_v1  ;;  %v417_v14 = vmul.f32 %v974_v11, %v1146_v1  ;;  %v979_v15 = vunpack.c.h.bf16 %v1034_v61 }
  0x45   : > { %v1374_v56 = vadd.f32 %v1151_v9, %v414_v52  ;;  %v435_v16 = vmul.f32 %v1010_v13, %v1146_v1  ;;  %v419_v17 = vmul.f32 %v978_v20, %v1146_v1  ;;  %v436_v27 = vmul.f32 %v1011_v25, %v1146_v1 }
  0x46   : > { %615 = vxpose.xlu1.b32.cont [12/16] %v535_v53, 128  ;;  %v1383_v53 = vadd.f32 %v1151_v9, %v432_v40  ;;  %v1389_v43 = vadd.f32 %v1151_v9, %v416_v55  ;;  %v522_v29 = vmax.f32 %v458_v42, 0.0  ;;  %v1407_v33 = vadd.f32 %v1151_v9, %v417_v14 }
  0x47   : > { %583 = vxpose.xlu0.b32.cont [12/16] %v519_v0, 128  ;;  %v475_v0 = vadd.f32 %v1151_v9, %v404_v6  ;;  %v434_v6 = vmul.f32 %v1007_v41, %v1146_v1  ;;  %v420_v32 = vmul.f32 %v979_v15, %v1146_v1  ;;  %v1417_v48 = vadd.f32 %v1151_v9, %v435_v16 }
  0x48   : > { %v1420_v52 = vadd.f32 %v1151_v9, %v419_v17  ;;  %v1423_v38 = vadd.f32 %v1151_v9, %v436_v27  ;;  %v523_v44 = vmax.f32 %v459_v4, 0.0  ;;  %v557_v55 = vmax.f32 %v1267_v19, 0.0 }
  0x49   : > { %v1410_v36 = vadd.f32 %v1151_v9, %v434_v6  ;;  %v1426_v39 = vadd.f32 %v1151_v9, %v420_v32  ;;  %v539_v40 = vmax.f32 %v475_v0, 0.0  ;;  %v541_v59 = vmax.f32 %v1271_v21, 0.0 }
  0x4a   : > { %616 = vxpose.xlu1.b32.cont [13/16] %v536_v49, 128  ;;  %v418_v49 = vmul.f32 %v975_v12, %v1146_v1  ;;  %v556_v1 = vmax.f32 %v1253_v7, 0.0  ;;  %v542_v42 = vmax.f32 %v1277_v23, 0.0  ;;  %v559_v50 = vmax.f32 %v1280_v24, 0.0 }
  0x4b   : > { %584 = vxpose.xlu0.b32.cont [13/16] %v520_v45, 128  ;;  %v540_v45 = vmax.f32 %v1264_v18, 0.0  ;;  %v543_v7 = vmax.f32 %v1288_v28, 0.0  ;;  %v560_v18 = vmax.f32 %v1301_v58, 0.0  ;;  %v544_v19 = vmax.f32 %v1316_v2, 0.0 }
  0x4c   : > { %v1414_v34 = vadd.f32 %v1151_v9, %v418_v49  ;;  %v558_v9 = vmax.f32 %v1274_v22, 0.0  ;;  %v561_v21 = vmax.f32 %v1319_v3, 0.0  ;;  %v545_v22 = vmax.f32 %v1323_v5, 0.0 }
  0x4d   : > { %v562_v23 = vmax.f32 %v1326_v30, 0.0  ;;  %v546_v24 = vmax.f32 %v1329_v31, 0.0  ;;  %v563_v28 = vmax.f32 %v1332_v46, 0.0  ;;  %v547_v58 = vmax.f32 %v1338_v8, 0.0 }
  0x4e   : > { %617 = vxpose.xlu1.b32.cont [14/16] %v537_v62, 128  ;;  %v564_v2 = vmax.f32 %v1355_v37, 0.0  ;;  %v548_v3 = vmax.f32 %v1367_v51, 0.0  ;;  %v565_v5 = vmax.f32 %v1370_v54, 0.0  ;;  %v549_v30 = vmax.f32 %v1374_v56, 0.0 }
  0x4f   : > { %585 = vxpose.xlu0.b32.cont [14/16] %v521_v63, 128  ;;  %v566_v31 = vmax.f32 %v1377_v57, 0.0  ;;  %v550_v46 = vmax.f32 %v1380_v35, 0.0  ;;  %v567_v8 = vmax.f32 %v1383_v53, 0.0  ;;  %v551_v37 = vmax.f32 %v1389_v43, 0.0 }
  0x50   : > { %v568_v51 = vmax.f32 %v1398_v26, 0.0  ;;  %v552_v54 = vmax.f32 %v1407_v33, 0.0  ;;  %v569_v56 = vmax.f32 %v1410_v36, 0.0  ;;  %v553_v57 = vmax.f32 %v1414_v34, 0.0 }
  0x51   : > { %v570_v35 = vmax.f32 %v1417_v48, 0.0  ;;  %v554_v53 = vmax.f32 %v1420_v52, 0.0  ;;  %v571_v43 = vmax.f32 %v1423_v38, 0.0  ;;  %v555_v60 = vmax.f32 %v1426_v39, 0.0 }
  0x52   : > { %618 = vxpose.xlu1.b32.cont [15/16] %v538_v47, 128 }
  0x53   : > { %586 = vxpose.xlu0.b32.cont [15/16] %v522_v29, 128 }
  0x56   : > { %619 = vxpose.xlu1.b32.end [16/16] %v539_v40, 128 }
  0x57   : > { %587 = vxpose.xlu0.b32.end [16/16] %v523_v44, 128 }
  0x5a   : > { %668 = vxpose.xlu1.b32.start [1/16] %v556_v1, 128 }
  0x5b   : > { %636 = vxpose.xlu0.b32.start [1/16] %v540_v45, 128 }
  0x5e   : > { %669 = vxpose.xlu1.b32.cont [2/16] %v557_v55, 128 }
  0x5f   : > { %637 = vxpose.xlu0.b32.cont [2/16] %v541_v59, 128 }
  0x62   : > { %670 = vxpose.xlu1.b32.cont [3/16] %v558_v9, 128 }
  0x63   : > { %638 = vxpose.xlu0.b32.cont [3/16] %v542_v42, 128 }
  0x66   : > { %671 = vxpose.xlu1.b32.cont [4/16] %v559_v50, 128 }
  0x67   : > { %639 = vxpose.xlu0.b32.cont [4/16] %v543_v7, 128 }
  0x6a   : > { %672 = vxpose.xlu1.b32.cont [5/16] %v560_v18, 128 }
  0x6b   : > { %640 = vxpose.xlu0.b32.cont [5/16] %v544_v19, 128 }
  0x6e   : > { %673 = vxpose.xlu1.b32.cont [6/16] %v561_v21, 128 }
  0x6f   : > { %641 = vxpose.xlu0.b32.cont [6/16] %v545_v22, 128 }
  0x72   : > { %674 = vxpose.xlu1.b32.cont [7/16] %v562_v23, 128 }
  0x73   : > { %642 = vxpose.xlu0.b32.cont [7/16] %v546_v24, 128 }
  0x76   : > { %675 = vxpose.xlu1.b32.cont [8/16] %v563_v28, 128 }
  0x77   : > { %643 = vxpose.xlu0.b32.cont [8/16] %v547_v58, 128 }
  0x7a   : > { %676 = vxpose.xlu1.b32.cont [9/16] %v564_v2, 128 }
  0x7b   : > { %644 = vxpose.xlu0.b32.cont [9/16] %v548_v3, 128 }
  0x7e   : > { %677 = vxpose.xlu1.b32.cont [10/16] %v565_v5, 128 }
  0x7f   : > { %645 = vxpose.xlu0.b32.cont [10/16] %v549_v30, 128 }
  0x82   : > { %678 = vxpose.xlu1.b32.cont [11/16] %v566_v31, 128 }
  0x83   : > { %646 = vxpose.xlu0.b32.cont [11/16] %v550_v46, 128 }
  0x86   : > { %679 = vxpose.xlu1.b32.cont [12/16] %v567_v8, 128 }
  0x87   : > { %647 = vxpose.xlu0.b32.cont [12/16] %v551_v37, 128 }
  0x8a   : > { %680 = vxpose.xlu1.b32.cont [13/16] %v568_v51, 128 }
  0x8b   : > { %648 = vxpose.xlu0.b32.cont [13/16] %v552_v54, 128 }
  0x8e   : > { %681 = vxpose.xlu1.b32.cont [14/16] %v569_v56, 128 }
  0x8f   : > { %649 = vxpose.xlu0.b32.cont [14/16] %v553_v57, 128 }
  0x92   : > { %682 = vxpose.xlu1.b32.cont [15/16] %v570_v35, 128 }
  0x93   : > { %650 = vxpose.xlu0.b32.cont [15/16] %v554_v53, 128 }
  0x96   : > { %683 = vxpose.xlu1.b32.end [16/16] %v571_v43, 128 }
  0x97   : > { %651 = vxpose.xlu0.b32.end [16/16] %v555_v60, 128 }
  0x9a   : > { %v620_v61 = vpop.trf.xlu1 }
  0x9b   : > { %v588_v62 = vpop.trf.xlu0  ;;  %701 = vst [vmem:[%s1464_s29 + $0x8] sm:$0xff] %v620_v61 }
  0x9c   : > { %700 = vst [vmem:[%s1464_s29] sm:$0xff] %v588_v62 }
  0x9e   : > { %v621_v63 = vpop.trf.xlu1 }
  0x9f   : > { %v589_v0 = vpop.trf.xlu0  ;;  %705 = vst [vmem:[%s1464_s29 + $0x28] sm:$0xff] %v621_v63 }
  0xa0   : > { %704 = vst [vmem:[%s1464_s29 + $0x20] sm:$0xff] %v589_v0 }
  0xa2   : > { %v622_v4 = vpop.trf.xlu1 }
  0xa3   : > { %v590_v47 = vpop.trf.xlu0  ;;  %709 = vst [vmem:[%s1464_s29 + $0x48] sm:$0xff] %v622_v4 }
  0xa4   : > { %708 = vst [vmem:[%s1464_s29 + $0x40] sm:$0xff] %v590_v47 }
  0xa6   : > { %v623_v10 = vpop.trf.xlu1 }
  0xa7   : > { %v591_v11 = vpop.trf.xlu0  ;;  %713 = vst [vmem:[%s1464_s29 + $0x68] sm:$0xff] %v623_v10 }
  0xa8   : > { %712 = vst [vmem:[%s1464_s29 + $0x60] sm:$0xff] %v591_v11 }
  0xaa   : > { %v624_v41 = vpop.trf.xlu1 }
  0xab   : > { %v592_v12 = vpop.trf.xlu0  ;;  %717 = vst [vmem:[%s1464_s29 + $0x88] sm:$0xff] %v624_v41 }
  0xac   : > { %716 = vst [vmem:[%s1464_s29 + $0x80] sm:$0xff] %v592_v12 }
  0xae   : > { %v625_v13 = vpop.trf.xlu1 }
  0xaf   : > { %v593_v20 = vpop.trf.xlu0  ;;  %721 = vst [vmem:[%s1464_s29 + $0xa8] sm:$0xff] %v625_v13 }
  0xb0   : > { %720 = vst [vmem:[%s1464_s29 + $0xa0] sm:$0xff] %v593_v20 }
  0xb2   : > { %v626_v25 = vpop.trf.xlu1 }
  0xb3   : > { %v594_v26 = vpop.trf.xlu0  ;;  %725 = vst [vmem:[%s1464_s29 + $0xc8] sm:$0xff] %v626_v25 }
  0xb4   : > { %724 = vst [vmem:[%s1464_s29 + $0xc0] sm:$0xff] %v594_v26 }
  0xb6   : > { %v627_v14 = vpop.trf.xlu1 }
  0xb7   : > { %v595_v6 = vpop.trf.xlu0  ;;  %729 = vst [vmem:[%s1464_s29 + $0xe8] sm:$0xff] %v627_v14 }
  0xb8   : > { %728 = vst [vmem:[%s1464_s29 + $0xe0] sm:$0xff] %v595_v6 }
  0xba   : > { %v628_v15 = vpop.trf.xlu1 }
  0xbb   : > { %v596_v49 = vpop.trf.xlu0  ;;  %733 = vst [vmem:[%s1464_s29 + $0x108] sm:$0xff] %v628_v15 }
  0xbc   : > { %732 = vst [vmem:[%s1464_s29 + $0x100] sm:$0xff] %v596_v49 }
  0xbe   : > { %v629_v16 = vpop.trf.xlu1 }
  0xbf   : > { %v597_v17 = vpop.trf.xlu0  ;;  %737 = vst [vmem:[%s1464_s29 + $0x128] sm:$0xff] %v629_v16 }
  0xc0   : > { %736 = vst [vmem:[%s1464_s29 + $0x120] sm:$0xff] %v597_v17 }
  0xc2   : > { %v630_v27 = vpop.trf.xlu1 }
  0xc3   : > { %v598_v29 = vpop.trf.xlu0  ;;  %741 = vst [vmem:[%s1464_s29 + $0x148] sm:$0xff] %v630_v27 }
  0xc4   : > { %740 = vst [vmem:[%s1464_s29 + $0x140] sm:$0xff] %v598_v29 }
  0xc6   : > { %v631_v33 = vpop.trf.xlu1 }
  0xc7   : > { %v599_v36 = vpop.trf.xlu0  ;;  %745 = vst [vmem:[%s1464_s29 + $0x168] sm:$0xff] %v631_v33 }
  0xc8   : > { %744 = vst [vmem:[%s1464_s29 + $0x160] sm:$0xff] %v599_v36 }
  0xca   : > { %v632_v32 = vpop.trf.xlu1 }
  0xcb   : > { %v600_v34 = vpop.trf.xlu0  ;;  %749 = vst [vmem:[%s1464_s29 + $0x188] sm:$0xff] %v632_v32 }
  0xcc   : > { %748 = vst [vmem:[%s1464_s29 + $0x180] sm:$0xff] %v600_v34 }
  0xce   : > { %v633_v48 = vpop.trf.xlu1 }
  0xcf   : > { %v601_v52 = vpop.trf.xlu0  ;;  %753 = vst [vmem:[%s1464_s29 + $0x1a8] sm:$0xff] %v633_v48 }
  0xd0   : > { %752 = vst [vmem:[%s1464_s29 + $0x1a0] sm:$0xff] %v601_v52 }
  0xd2   : > { %v634_v38 = vpop.trf.xlu1 }
  0xd3   : > { %v602_v39 = vpop.trf.xlu0  ;;  %757 = vst [vmem:[%s1464_s29 + $0x1c8] sm:$0xff] %v634_v38 }
  0xd4   : > { %756 = vst [vmem:[%s1464_s29 + $0x1c0] sm:$0xff] %v602_v39 }
  0xd6   : > { %v635_v40 = vpop.trf.xlu1 }
  0xd7   : > { %v603_v44 = vpop.trf.xlu0  ;;  %761 = vst [vmem:[%s1464_s29 + $0x1e8] sm:$0xff] %v635_v40 }
  0xd8   : > { %760 = vst [vmem:[%s1464_s29 + $0x1e0] sm:$0xff] %v603_v44 }
  0xda   : > { %v684_v1 = vpop.trf.xlu1 }
  0xdb   : > { %v652_v45 = vpop.trf.xlu0  ;;  %703 = vst [vmem:[%s1464_s29 + $0x18] sm:$0xff] %v684_v1 }
  0xdc   : > { %702 = vst [vmem:[%s1464_s29 + $0x10] sm:$0xff] %v652_v45 }
  0xde   : > { %v685_v55 = vpop.trf.xlu1 }
  0xdf   : > { %v653_v59 = vpop.trf.xlu0  ;;  %707 = vst [vmem:[%s1464_s29 + $0x38] sm:$0xff] %v685_v55 }
  0xe0   : > { %706 = vst [vmem:[%s1464_s29 + $0x30] sm:$0xff] %v653_v59 }
  0xe2   : > { %v686_v9 = vpop.trf.xlu1 }
  0xe3   : > { %v654_v42 = vpop.trf.xlu0  ;;  %711 = vst [vmem:[%s1464_s29 + $0x58] sm:$0xff] %v686_v9 }
  0xe4   : > { %710 = vst [vmem:[%s1464_s29 + $0x50] sm:$0xff] %v654_v42 }
  0xe6   : > { %v687_v50 = vpop.trf.xlu1 }
  0xe7   : > { %v655_v7 = vpop.trf.xlu0  ;;  %715 = vst [vmem:[%s1464_s29 + $0x78] sm:$0xff] %v687_v50 }
  0xe8   : > { %714 = vst [vmem:[%s1464_s29 + $0x70] sm:$0xff] %v655_v7 }
  0xea   : > { %v688_v18 = vpop.trf.xlu1 }
  0xeb   : > { %v656_v19 = vpop.trf.xlu0  ;;  %719 = vst [vmem:[%s1464_s29 + $0x98] sm:$0xff] %v688_v18 }
  0xec   : > { %718 = vst [vmem:[%s1464_s29 + $0x90] sm:$0xff] %v656_v19 }
  0xee   : > { %v689_v21 = vpop.trf.xlu1 }
  0xef   : > { %v657_v22 = vpop.trf.xlu0  ;;  %723 = vst [vmem:[%s1464_s29 + $0xb8] sm:$0xff] %v689_v21 }
  0xf0   : > { %722 = vst [vmem:[%s1464_s29 + $0xb0] sm:$0xff] %v657_v22 }
  0xf2   : > { %v690_v23 = vpop.trf.xlu1 }
  0xf3   : > { %v658_v24 = vpop.trf.xlu0  ;;  %727 = vst [vmem:[%s1464_s29 + $0xd8] sm:$0xff] %v690_v23 }
  0xf4   : > { %726 = vst [vmem:[%s1464_s29 + $0xd0] sm:$0xff] %v658_v24 }
  0xf6   : > { %v691_v28 = vpop.trf.xlu1 }
  0xf7   : > { %v659_v58 = vpop.trf.xlu0  ;;  %731 = vst [vmem:[%s1464_s29 + $0xf8] sm:$0xff] %v691_v28 }
  0xf8   : > { %730 = vst [vmem:[%s1464_s29 + $0xf0] sm:$0xff] %v659_v58 }
  0xfa   : > { %v692_v2 = vpop.trf.xlu1 }
  0xfb   : > { %v660_v3 = vpop.trf.xlu0  ;;  %735 = vst [vmem:[%s1464_s29 + $0x118] sm:$0xff] %v692_v2 }
  0xfc   : > { %734 = vst [vmem:[%s1464_s29 + $0x110] sm:$0xff] %v660_v3 }
  0xfe   : > { %v693_v5 = vpop.trf.xlu1 }
  0xff   : > { %v661_v30 = vpop.trf.xlu0  ;;  %739 = vst [vmem:[%s1464_s29 + $0x138] sm:$0xff] %v693_v5 }
 0x100   : > { %738 = vst [vmem:[%s1464_s29 + $0x130] sm:$0xff] %v661_v30 }
 0x102   : > { %v694_v31 = vpop.trf.xlu1 }
 0x103   : > { %v662_v46 = vpop.trf.xlu0  ;;  %743 = vst [vmem:[%s1464_s29 + $0x158] sm:$0xff] %v694_v31 }
 0x104   : > { %742 = vst [vmem:[%s1464_s29 + $0x150] sm:$0xff] %v662_v46 }
 0x106   : > { %v695_v8 = vpop.trf.xlu1 }
 0x107   : > { %v663_v37 = vpop.trf.xlu0  ;;  %747 = vst [vmem:[%s1464_s29 + $0x178] sm:$0xff] %v695_v8 }
 0x108   : > { %746 = vst [vmem:[%s1464_s29 + $0x170] sm:$0xff] %v663_v37 }
 0x10a   : > { %v696_v51 = vpop.trf.xlu1 }
 0x10b   : > { %v664_v54 = vpop.trf.xlu0  ;;  %751 = vst [vmem:[%s1464_s29 + $0x198] sm:$0xff] %v696_v51 }
 0x10c   : > { %750 = vst [vmem:[%s1464_s29 + $0x190] sm:$0xff] %v664_v54 }
 0x10e   : > { %v697_v56 = vpop.trf.xlu1 }
 0x10f   : > { %v665_v57 = vpop.trf.xlu0  ;;  %755 = vst [vmem:[%s1464_s29 + $0x1b8] sm:$0xff] %v697_v56 }
 0x110   : > { %754 = vst [vmem:[%s1464_s29 + $0x1b0] sm:$0xff] %v665_v57 }
 0x112   : > { %v698_v35 = vpop.trf.xlu1 }
 0x113   : > { %v666_v53 = vpop.trf.xlu0  ;;  %759 = vst [vmem:[%s1464_s29 + $0x1d8] sm:$0xff] %v698_v35 }
 0x114   : > { %758 = vst [vmem:[%s1464_s29 + $0x1d0] sm:$0xff] %v666_v53 }
 0x116   : > { %v699_v43 = vpop.trf.xlu1 }
 0x117   : > { %v667_v60 = vpop.trf.xlu0  ;;  %763 = vst [vmem:[%s1464_s29 + $0x1f8] sm:$0xff] %v699_v43 }
 0x118   : > { %762 = vst [vmem:[%s1464_s29 + $0x1f0] sm:$0xff] %v667_v60 }
 0x119 PF: > { %s13_s14 = sadd.s32 1, %s1089_s14   ;;  %s1543_s12 = smov %s1085_s13 }
 0x11a   : > { %p10_p5 = scmp.ge.s32.totalorder %s13_s14, 4   ;;  %s1544_s13 = smov %s1546_s15 }
 0x11c   :  { %12 = sbr.rel (!%p10_p5) target bundleno = 2 (0x2), region = 68 }

// kernel: conv3d_gn_relu_drop_forward.2
= control target key start
LH: loop header
LB: loop body
LE: loop exit
PB: predicated region body
PF: predicated region fallthrough
CT: control target
= control target key end

     0   :  { %s6572_s21 = smov 0   ;;  %s6574_s22 = smov 0   ;;  %s8023_s0 = inlined_call_operand.vmem [shape: bf16[2,10,10,10,4], index: 0, kind: input, shape index: {}, may-alias: {0,1,2}]   ;;  %s8024_s1 = inlined_call_operand.vmem [shape: bf16[2,10,10,10,4], index: 1, kind: input, shape index: {}, may-alias: {0,1,2}]   ;;  %s8025_s2 = inlined_call_operand.vmem [shape: bf16[2,10,10,10,4], index: 2, kind: input, shape index: {}, may-alias: {0,1,2}]   ;;  %s8026_s3 = inlined_call_operand.vmem [shape: bf16[3,3,3,4,128], index: 3, kind: input, shape index: {}]   ;;  %s8027_s4 = inlined_call_operand.vmem [shape: f32[1,128], index: 4, kind: input, shape index: {}]   ;;  %s8028_s5 = inlined_call_operand.vmem [shape: bf16[2,8,64,128], index: 5, kind: output, shape index: {0}]   ;;  %s8029_s6 = inlined_call_operand.vmem [shape: f32[2,8,2,128], index: 6, kind: output, shape index: {1}]  }
   0x1   :  { %s6576_s23 = smov 0   ;;  %s6578_s24 = smov 0  }
   0x2   :  { %s6580_s25 = smov 0  }
   0x3 LB: > { %s26_s26 = sadd.s32 1, %s6527_s23  ;;  %s29_s27 = sadd.s32 1, %s6531_s24  ;;  %s6535_s25 = sphi %s6580_s25, %s17_s25   ;;  %s6531_s24 = sphi %s6578_s24, %s8041_s24   ;;  %s6527_s23 = sphi %s6576_s23, %s8040_s23   ;;  %s6523_s22 = sphi %s6574_s22, %s8039_s22   ;;  %s6519_s21 = sphi %s6572_s21, %s8038_s21  }
   0x4   : > { %p27_p0 = scmp.ge.s32.totalorder %s26_s26, 8  ;;  %p5214_p1 = scmp.ge.s32.totalorder %s6535_s25, 1 }
   0x5   : > { %p277_p2 = scmp.lt.s32.totalorder %s6535_s25, 17 }
   0x6   : > { %s8043_s26 = smov (%p27_p0, %s26_s26), 0  ;;  %s8045_s27 = smov (!%p27_p0, %s29_s27), %s6531_s24 }
   0x7   : > { %p278_p3 = pnand %p5214_p1, %p277_p2  ;;  %p31_p4 = scmp.ge.s32.totalorder %s8045_s27, 2 }
   0x8   : > { %v5223_v0 = vld [vmem:[%s8026_s3 + $0x2] sm:$0x3] (!%p278_p3)  ;;  %vm551_vm0 = vcmask (!%p278_p3), 1041408   ;;  %v5459_v1 = vld [vmem:[%s8026_s3 + $0x1a] sm:$0x3] (!%p278_p3)  ;;  %p343_p5 = scmp.lt.s32.totalorder (!%p278_p3), %s6523_s22, 1 }
   0x9   : > { %s8047_s27 = smov (%p31_p4, %s8045_s27), 0  ;;  %281 = sbr.rel (%p278_p3) target bundleno = 512 (0x200), region = 40 }
   0xa   : > { %6386 = vmatprep.subr.msk.bf16.mxu1 (!%p278_p3), %vm551_vm0, %v5223_v0  ;;  %6399 = vmatprep.subr.msk.bf16.mxu0 (!%p278_p3), %vm551_vm0, %v5459_v1  ;;  %v553_v2 = vsel (!%p278_p3), %vm551_vm0, %v5223_v0, 0  ;;  %v6614_v3 = vsel (!%p278_p3), %vm551_vm0, %v5459_v1, 0  ;;  %p345_p6 = scmp.lt.s32.totalorder (!%p278_p3), %s6519_s21, 9  ;;  %s352_s8 = sadd.s32 (!%p278_p3), 1, %s6519_s21  ;;  %v400_v4 = vld [vmem:[%s8026_s3] sm:$0x3] (!%p278_p3) }
   0xb   : > { %5907 = vmatpush3.bf16.msra.mxu1 (!%p278_p3), %v553_v2  ;;  %6037 = vmatpush3.bf16.msra.mxu0 (!%p278_p3), %v6614_v3  ;;  %v5484_v5 = vld [vmem:[%s8026_s3 + $0x1c] sm:$0x3] (!%p278_p3)  ;;  %p355_p7 = scmp.lt.s32.totalorder (!%p278_p3), %s352_s8, 9  ;;  %v6636_v6 = vld [vmem:[%s8026_s3 + $0x1e] sm:$0x3] (!%p278_p3)  ;;  %v6650_v9 = vsel (!%p278_p3), %vm551_vm0, %v400_v4, 0 }
   0xc   : > { %6387 = vmatprep.subr.msk.bf16.mxu1 (!%p278_p3), %vm551_vm0, %v400_v4  ;;  %6401 = vmatprep.subr.msk.bf16.mxu0 (!%p278_p3), %vm551_vm0, %v5484_v5  ;;  %v6641_v7 = vld [vmem:[%s8026_s3 + $0x4] sm:$0x3] (!%p278_p3)  ;;  %v6646_v8 = vld [vmem:[%s8026_s3 + $0x20] sm:$0x3] (!%p278_p3)  ;;  %vm409_vm1 = vsmask.f32 (!%p278_p3), 3328 }
   0xd   : > { %vm410_vm2 = vsmask.f32 (!%p278_p3), 7440  ;;  %v6653_v10 = vsel (!%p278_p3), %vm551_vm0, %v5484_v5, 0  ;;  %v6657_v11 = vsel (!%p278_p3), %vm551_vm0, %v6636_v6, 0  ;;  %v6662_v12 = vld [vmem:[%s8026_s3 + $0x6] sm:$0x3] (!%p278_p3) }
   0xe   : > { %v6671_v13 = vsel (!%p278_p3), %vm551_vm0, %v6641_v7, 0  ;;  %v6675_v14 = vsel (!%p278_p3), %vm551_vm0, %v6646_v8, 0  ;;  %v6680_v15 = vld [vmem:[%s8026_s3 + $0x22] sm:$0x3] (!%p278_p3)  ;;  %v6685_v16 = vld [vmem:[%s8026_s3 + $0x8] sm:$0x3] (!%p278_p3)  ;;  %vm6739_vm4 = vmor (!%p278_p3), %vm409_vm1, %vm410_vm2 }
   0xf   : > { %vm538_vm3 = vcmask (!%p278_p3), 31744   ;;  %v6711_v28 = vsel (!%p278_p3), %vm551_vm0, %v6662_v12, 0  ;;  %v6715_v31 = vsel (!%p278_p3), %vm551_vm0, %v6680_v15, 0  ;;  %v6719_v32 = vsel (!%p278_p3), %vm551_vm0, %v6685_v16, 0  ;;  %p376_p9 = scmp.lt.s32.totalorder (!%p278_p3), %s6519_s21, 7 }
  0x10   : > { %s8049_s22 = smov (!%p343_p5, %s6523_s22), 1  ;;  %s8051_s8 = smov (!%p355_p7, %s352_s8), 9  ;;  %vm744_vm5 = vcmask 1042432   ;;  %vm745_vm6 = vcmask 1046532  }
  0x11   : > { %s346_s11 = scalar_select %p345_p6, %s6519_s21, 9  ;;  %vm6839_vm7 = vmor %vm744_vm5, %vm745_vm6 }
  0x12   : > { %s6630_s14 = smul.u32 200, %s8049_s22 }
  0x13   : > { %s6414_s15 = smul.u32 20, %s346_s11 }
  0x14   : > { %s6416_s7 = smul.u32 20, %s8051_s8 }
  0x15   : > { %s349_s29 = sadd.s32 %s6630_s14, %s6414_s15 }
  0x16   : > { %s5215_s30 = sshll.u32 %s349_s29, 2  ;;  %s359_s18 = sadd.s32 %s6416_s7, %s6630_s14 }
  0x17   : > { %s6667_s13 = scalar_lea.vmem %s8023_s0, %s5215_s30  ;;  %s5216_s19 = sshll.u32 %s359_s18, 2 }
  0x18   : > { %v6689_v17 = vld [vmem:[%s6667_s13] sm:$0xf]  ;;  %v6692_v18 = vld [vmem:[%s6667_s13 + $0x8] sm:$0xf]  ;;  %v6695_v19 = vld [vmem:[%s6667_s13 + $0x4] sm:$0x1]  ;;  %s6724_s29 = scalar_lea.vmem %s8024_s1, %s5216_s19 }
  0x19   : > { %v6698_v20 = vld [vmem:[%s6667_s13 + $0xc] sm:$0x1]  ;;  %v413_v21 = vshrl.u32 %v6689_v17, 16  ;;  %v416_v22 = vshll.u32 %v6689_v17, 16  ;;  %v422_v23 = vshll.u32 %v6695_v19, 16  ;;  %v427_v24 = vshrl.u32 %v6692_v18, 16 }
  0x1a   : > { %v430_v25 = vshll.u32 %v6692_v18, 16  ;;  %v436_v26 = vshll.u32 %v6698_v20, 16  ;;  %v6707_v27 = vld [vmem:[%s6667_s13 + $0x10] sm:$0xf]  ;;  %v6727_v36 = vld [vmem:[%s6667_s13 + $0x18] sm:$0xf] }
  0x1b   : > { %v415_v29 = vrot.slane %v413_v21, 4  ;;  %v418_v30 = vrot.slane %v416_v22, 5  ;;  %v424_v33 = vrot.slane %v422_v23, 5  ;;  %v429_v34 = vrot.slane %v427_v24, 4  ;;  %v6731_v40 = vld [vmem:[%s6667_s13 + $0x14] sm:$0x1] }
  0x1c   : > { %v432_v35 = vrot.slane %v430_v25, 5  ;;  %v441_v37 = vshrl.u32 %v6707_v27, 16  ;;  %v438_v39 = vrot.slane %v436_v26, 5  ;;  %v6734_v41 = vld [vmem:[%s6667_s13 + $0x1c] sm:$0x1]  ;;  %v444_v42 = vshll.u32 %v6707_v27, 16 }
  0x1d   : > { %v419_v38 = vor.u32 %v418_v30, %v415_v29  ;;  %v450_v46 = vshll.u32 %v6731_v40, 16  ;;  %v455_v47 = vshrl.u32 %v6727_v36, 16  ;;  %v458_v50 = vshll.u32 %v6727_v36, 16  ;;  %v5443_v52 = vld [vmem:[%s6724_s29 + $0x8] sm:$0xf]  ;;  %s363_s30 = sadd.s32 2, %s6519_s21 }
  0x1e   : > { %v433_v44 = vor.u32 %v432_v35, %v429_v34  ;;  %v443_v45 = vrot.slane %v441_v37, 4  ;;  %v446_v49 = vrot.slane %v444_v42, 5  ;;  %v464_v51 = vshll.u32 %v6734_v41, 16  ;;  %v6751_v57 = vld [vmem:[%s6724_s29 + $0xc] sm:$0x1]  ;;  %p7019_p8 = scmp.lt.s32.totalorder %s363_s30, 9 }
  0x1f   : > { %v420_v48 = vrot.slane %v419_v38, 4  ;;  %v457_v56 = vrot.slane %v455_v47, 4  ;;  %v452_v60 = vrot.slane %v450_v46, 5  ;;  %v460_v61 = vrot.slane %v458_v50, 5  ;;  %v5445_v62 = vld [vmem:[%s6724_s29 + $0x10] sm:$0xf] }
  0x20   : > { %v434_v53 = vrot.slane %v433_v44, 4  ;;  %v447_v59 = vor.u32 %v446_v49, %v443_v45  ;;  %v466_v0 = vrot.slane %v464_v51, 5  ;;  %v6759_v1 = vld [vmem:[%s6724_s29 + $0x14] sm:$0x1]  ;;  %v2537_v2 = vshrl.u32 %v5443_v52, 16  ;;  %s8053_s30 = smov (!%p7019_p8, %s363_s30), 9 }
  0x21   : > { %v425_v58 = vsel %vm6739_vm4, %v420_v48, %v424_v33  ;;  %v2540_v4 = vshll.u32 %v5443_v52, 16  ;;  %v461_v22 = vor.u32 %v460_v61, %v457_v56  ;;  %v2546_v23 = vshll.u32 %v6751_v57, 16  ;;  %v5447_v30 = vld [vmem:[%s6724_s29 + $0x18] sm:$0xf]  ;;  %v6768_v38 = vld [vmem:[%s6724_s29 + $0x1c] sm:$0x1] }
  0x22   : > { %v439_v63 = vsel %vm6739_vm4, %v434_v53, %v438_v39  ;;  %v448_v21 = vrot.slane %v447_v59, 4  ;;  %v2539_v24 = vrot.slane %v2537_v2, 4  ;;  %v2551_v26 = vshrl.u32 %v5445_v62, 16  ;;  %v5449_v46 = vld [vmem:[%s6724_s29 + $0x20] sm:$0xf]  ;;  %s6417_s9 = smul.u32 20, %s8053_s30 }
  0x23   : > { %v5224_v5 = vcombine.low %v425_v58, %v439_v63  ;;  %v2542_v25 = vrot.slane %v2540_v4, 5  ;;  %v2554_v29 = vshll.u32 %v5445_v62, 16  ;;  %v462_v34 = vrot.slane %v461_v22, 4  ;;  %v6776_v50 = vld [vmem:[%s6724_s29 + $0x24] sm:$0x1]  ;;  %s8055_s21 = smov (!%p376_p9, %s6519_s21), 7 }
  0x24   : > { %v453_v33 = vsel %vm6739_vm4, %v448_v21, %v452_v60  ;;  %v2548_v35 = vrot.slane %v2546_v23, 5  ;;  %v2560_v37 = vshll.u32 %v6759_v1, 16  ;;  %v2553_v42 = vrot.slane %v2551_v26, 4  ;;  %v6780_v63 = vld [vmem:[%s6667_s13 + $0x20] sm:$0xf]  ;;  %s7134_s12 = sadd.s32 %s6417_s9, %s6630_s14  ;;  %s5221_s14 = sshll.u32 %s8049_s22, 3 }
  0x25   : > { %5908 = vmatprep.mubr.msk.bf16.mxu1 %vm538_vm3, %v5224_v5  ;;  %v2543_v39 = vor.u32 %v2542_v25, %v2539_v24  ;;  %v2556_v44 = vrot.slane %v2554_v29, 5  ;;  %v2776_v45 = vrot.slane %v6751_v57, 5  ;;  %v467_v47 = vsel %vm6739_vm4, %v462_v34, %v466_v0  ;;  %v6787_v21 = vld [vmem:[%s6667_s13 + $0x28] sm:$0xf]  ;;  %v6792_v26 = vld [vmem:[%s6667_s13 + $0x24] sm:$0x1]  ;;  %s388_s8 = sadd.s32 %s5221_s14, %s8055_s21 }
  0x26   : > { %v2562_v48 = vrot.slane %v2560_v37, 5  ;;  %v2780_v49 = vrot.slane %v6759_v1, 5  ;;  %v2565_v51 = vshrl.u32 %v5447_v30, 16  ;;  %v5225_v52 = vcombine.low %v453_v33, %v467_v47  ;;  %v5454_v54 = vld [vmem:[%s6724_s29 + $0x34] sm:$0x1]  ;;  %s5217_s15 = sshll.u32 %s7134_s12, 2 }
  0x27   : > { %v2544_v53 = vrot.slane %v2543_v39, 4  ;;  %v2557_v56 = vor.u32 %v2556_v44, %v2553_v42  ;;  %v2568_v58 = vshll.u32 %v5447_v30, 16  ;;  %v2574_v60 = vshll.u32 %v6768_v38, 16  ;;  %s7171_s18 = scalar_lea.vmem %s8025_s2, %s5217_s15  ;;  %s5222_s15 = sshll.u32 %s388_s8, 1 }
  0x28   : > { %v2567_v59 = vrot.slane %v2565_v51, 4  ;;  %v2579_v61 = vshrl.u32 %v5449_v46, 16  ;;  %v2582_v62 = vshll.u32 %v5449_v46, 16  ;;  %5909 = vmatmul.mubr.msk.bf16.vlgmr.msra.gmra.mrb[0].mxu1 %vm538_vm3, %v5225_v52  ;;  %v2588_v5 = vshll.u32 %v6776_v50, 16  ;;  %v6808_v51 = vld [vmem:[%s6667_s13 + $0x30] sm:$0xf]  ;;  %s390_s19 = scalar_lea.vmem %s8029_s6, %s5222_s15 }
  0x29   : > { %v2549_v0 = vsel %vm6739_vm4, %v2544_v53, %v2548_v35  ;;  %v2558_v2 = vrot.slane %v2557_v56, 4  ;;  %v2570_v4 = vrot.slane %v2568_v58, 5  ;;  %5917 = vmatpush3.bf16.msra.mxu1 %v6650_v9  ;;  %v2576_v22 = vrot.slane %v2574_v60, 5  ;;  %v6798_v35 = vld [vmem:[%s6667_s13 + $0x2c] sm:$0x1] }
  0x2a   : > { %v2581_v23 = vrot.slane %v2579_v61, 4  ;;  %v2584_v24 = vrot.slane %v2582_v62, 5  ;;  %v2784_v25 = vrot.slane %v6768_v38, 5  ;;  %v2590_v33 = vrot.slane %v2588_v5, 5  ;;  %6388 = vmatprep.subr.msk.bf16.mxu1 %vm551_vm0, %v6641_v7  ;;  %v6813_v58 = vld [vmem:[%s6667_s13 + $0x34] sm:$0x1] }
  0x2b   : > { %v2563_v29 = vsel %vm6739_vm4, %v2558_v2, %v2562_v48  ;;  %v2571_v30 = vor.u32 %v2570_v4, %v2567_v59  ;;  %v469_v39 = vshrl.u32 %v6780_v63, 16  ;;  %v472_v42 = vshll.u32 %v6780_v63, 16 }
  0x2c   : > { %v5460_v9 = vcombine.low %v2549_v0, %v2563_v29  ;;  %v2585_v37 = vor.u32 %v2584_v24, %v2581_v23  ;;  %v478_v46 = vshll.u32 %v6792_v26, 16  ;;  %v483_v47 = vshrl.u32 %v6787_v21, 16  ;;  %v6818_v0 = vld [vmem:[%s6667_s13 + $0x38] sm:$0xf]  ;;  %v6823_v23 = vld [vmem:[%s6667_s13 + $0x3c] sm:$0x1] }
  0x2d   : > { %v2572_v44 = vrot.slane %v2571_v30, 4  ;;  %v486_v48 = vshll.u32 %v6787_v21, 16  ;;  %v471_v52 = vrot.slane %v469_v39, 4  ;;  %v474_v53 = vrot.slane %v472_v42, 5  ;;  %v5468_v29 = vld [vmem:[%s6724_s29 + $0x8] sm:$0xe] }
  0x2e   : > { %6038 = vmatprep.mubr.msk.bf16.mxu0 %vm538_vm3, %v5460_v9  ;;  %v2586_v7 = vrot.slane %v2585_v37, 4  ;;  %v492_v56 = vshll.u32 %v6798_v35, 16  ;;  %v480_v60 = vrot.slane %v478_v46, 5  ;;  %v485_v61 = vrot.slane %v483_v47, 4  ;;  %v5469_v39 = vld [vmem:[%s6724_s29 + $0x10] sm:$0xe] }
  0x2f   : > { %v2577_v59 = vsel %vm6739_vm4, %v2572_v44, %v2576_v22  ;;  %v488_v62 = vrot.slane %v486_v48, 5  ;;  %v475_v4 = vor.u32 %v474_v53, %v471_v52  ;;  %v497_v24 = vshrl.u32 %v6808_v51, 16  ;;  %v5470_v42 = vld [vmem:[%s6724_s29 + $0x18] sm:$0xe]  ;;  %v5471_v48 = vld [vmem:[%s6724_s29 + $0x20] sm:$0xe] }
  0x30   : > { %v2591_v2 = vsel %vm6739_vm4, %v2586_v7, %v2590_v33  ;;  %v494_v5 = vrot.slane %v492_v56, 5  ;;  %v500_v9 = vshll.u32 %v6808_v51, 16  ;;  %v506_v37 = vshll.u32 %v6813_v58, 16  ;;  %v5472_v7 = vld [vmem:[%s6724_s29 + $0x28] sm:$0xe] }
  0x31   : > { %v5461_v30 = vcombine.low %v2577_v59, %v2591_v2  ;;  %v489_v22 = vor.u32 %v488_v62, %v485_v61  ;;  %v476_v44 = vrot.slane %v475_v4, 4  ;;  %v499_v33 = vrot.slane %v497_v24, 4  ;;  %v5452_v62 = vld [vmem:[%s6724_s29 + $0x2c] sm:$0x1] }
  0x32   : > { %v511_v46 = vshrl.u32 %v6818_v0, 16  ;;  %v514_v47 = vshll.u32 %v6818_v0, 16  ;;  %v502_v53 = vrot.slane %v500_v9, 5  ;;  %v508_v56 = vrot.slane %v506_v37, 5 }
  0x33   : > { %6039 = vmatmul.mubr.msk.bf16.vlgmr.msra.gmra.mrb[0].mxu0 %vm538_vm3, %v5461_v30  ;;  %v490_v52 = vrot.slane %v489_v22, 4  ;;  %v520_v59 = vshll.u32 %v6823_v23, 16  ;;  %v481_v2 = vsel %vm6739_vm4, %v476_v44, %v480_v60  ;;  %v5476_v30 = vrot.slane %v5468_v29, 9  ;;  %v5473_v44 = vld [vmem:[%s6724_s29 + $0x30] sm:$0xe] }
  0x34   : > { %6047 = vmatpush3.bf16.msra.mxu0 %v6653_v10  ;;  %v513_v4 = vrot.slane %v511_v46, 4  ;;  %v516_v24 = vrot.slane %v514_v47, 5  ;;  %v503_v9 = vor.u32 %v502_v53, %v499_v33  ;;  %v5477_v55 = vrot.slane %v5469_v39, 9  ;;  %v6862_v46 = vld [vmem:[%s6724_s29 + $0x3c] sm:$0x1] }
  0x35   : > { %v495_v22 = vsel %vm6739_vm4, %v490_v52, %v494_v5  ;;  %v522_v37 = vrot.slane %v520_v59, 5  ;;  %6402 = vmatprep.subr.msk.bf16.mxu0 %vm551_vm0, %v6636_v6  ;;  %v2777_v60 = vsel %vm6839_vm7, %v5476_v30, %v2776_v45  ;;  %v5478_v29 = vrot.slane %v5470_v42, 9  ;;  %v6870_v42 = vld [vmem:[%s6724_s29 + $0x44] sm:$0x1]  ;;  %v720_v53 = vld [vmem:[%s6667_s13] sm:$0xe] }
  0x36   : > { %v5226_v34 = vcombine.low %v481_v2, %v495_v22  ;;  %v517_v10 = vor.u32 %v516_v24, %v513_v4  ;;  %v504_v5 = vrot.slane %v503_v9, 4  ;;  %v2781_v39 = vsel %vm6839_vm7, %v5477_v55, %v2780_v49  ;;  %v5474_v55 = vld [vmem:[%s6724_s29 + $0x38] sm:$0xe]  ;;  %v5475_v49 = vld [vmem:[%s6724_s29 + $0x40] sm:$0xe] }
  0x37   : > { %v5479_v6 = vrot.slane %v5471_v48, 9  ;;  %v5480_v33 = vrot.slane %v5472_v7, 9  ;;  %v5485_v47 = vcombine.low %v2777_v60, %v2781_v39  ;;  %v2785_v45 = vsel %vm6839_vm7, %v5478_v29, %v2784_v25  ;;  %v722_v2 = vld [vmem:[%s6667_s13 + $0x10] sm:$0xe]  ;;  %v724_v29 = vld [vmem:[%s6667_s13 + $0x20] sm:$0xe] }
  0x38   : > { %5912 = vmatprep.mubr.msk.bf16.mxu1 %vm538_vm3, %v5226_v34  ;;  %v518_v57 = vrot.slane %v517_v10, 4  ;;  %v2792_v1 = vrot.slane %v5452_v62, 5  ;;  %v509_v48 = vsel %vm6739_vm4, %v504_v5, %v508_v56  ;;  %v8034_v7 = vrot.slane %v6776_v50, 5  ;;  %v721_v62 = vld [vmem:[%s6667_s13 + $0x8] sm:$0xe] }
  0x39   : > { %v5481_v52 = vrot.slane %v5473_v44, 9  ;;  %v2796_v38 = vrot.slane %v5454_v54, 5  ;;  %6048 = vmatprep.mubr.msk.bf16.mxu0 %vm538_vm3, %v5485_v47  ;;  %v5232_v59 = vcombine.low %v6689_v17, %v6692_v18  ;;  %v5233_v56 = vcombine.low %v6707_v27, %v6727_v36  ;;  %v723_v27 = vld [vmem:[%s6667_s13 + $0x18] sm:$0xe]  ;;  %v725_v39 = vld [vmem:[%s6667_s13 + $0x28] sm:$0xe] }
  0x3a   : > { %v2789_v34 = vsel %vm6839_vm7, %v5479_v6, %v8034_v7  ;;  %v523_v25 = vsel %vm6739_vm4, %v518_v57, %v522_v37  ;;  %v2793_v50 = vsel %vm6839_vm7, %v5480_v33, %v2792_v1  ;;  %v5482_v30 = vrot.slane %v5474_v55, 9  ;;  %v727_v7 = vld [vmem:[%s6667_s13 + $0x38] sm:$0xe] }
  0x3b   : > { %v5227_v54 = vcombine.low %v509_v48, %v523_v25  ;;  %v5486_v4 = vcombine.low %v2785_v45, %v2789_v34  ;;  %v2797_v24 = vsel %vm6839_vm7, %v5481_v52, %v2796_v38  ;;  %v757_v22 = vrot.slane %v6731_v40, 5  ;;  %v726_v45 = vld [vmem:[%s6667_s13 + $0x30] sm:$0xe]  ;;  %v6943_v38 = vld [vmem:[%s6724_s29 + $0x14] sm:$0x1] }
  0x3c   : > { %v5487_v9 = vcombine.low %v2793_v50, %v2797_v24  ;;  %v2800_v17 = vrot.slane %v6862_v46, 5  ;;  %v5483_v18 = vrot.slane %v5475_v49, 9  ;;  %v761_v36 = vrot.slane %v6734_v41, 5 }
  0x3d   : > { %5913 = vmatmul.mubr.msk.bf16.gmra.mrb[4].mxu1 %vm538_vm3, %v5227_v54  ;;  %v2630_v37 = vshll.u32 %v6862_v46, 16  ;;  %v2644_v10 = vshll.u32 %v6870_v42, 16  ;;  %v2804_v60 = vrot.slane %v6870_v42, 5  ;;  %v5240_v44 = vrot.slane %v720_v53, 9  ;;  %v5512_v53 = vld [vmem:[%s6724_s29 + $0x18] sm:$0xf] }
  0x3e   : > { %5918 = vmatprep.mubr.msk.bf16.mxu1 %vm538_vm3, %v5232_v59  ;;  %v2801_v40 = vsel %vm6839_vm7, %v5482_v30, %v2800_v17  ;;  %v5241_v5 = vrot.slane %v721_v62, 9  ;;  %v5242_v41 = vrot.slane %v722_v2, 9  ;;  %v5234_v33 = vcombine.low %v6780_v63, %v6787_v21  ;;  %v6952_v62 = vld [vmem:[%s6724_s29 + $0x1c] sm:$0x1]  ;;  %v5514_v30 = vld [vmem:[%s6724_s29 + $0x20] sm:$0xf] }
  0x3f   : > { %6049 = vmatmul.mubr.msk.bf16.vlgmr.msra.gmra.mrb[0].mxu0 %vm538_vm3, %v5486_v4  ;;  %v2805_v6 = vsel %vm6839_vm7, %v5483_v18, %v2804_v60  ;;  %v5235_v57 = vcombine.low %v6808_v51, %v6818_v0  ;;  %v5243_v47 = vrot.slane %v723_v27, 9  ;;  %v8035_v1 = vrot.slane %v6695_v19, 5  ;;  %v5516_v60 = vld [vmem:[%s6724_s29 + $0x28] sm:$0xf] }
  0x40   : > { %6057 = vmatpush3.bf16.msra.mxu0 %v6657_v11  ;;  %6052 = vmatprep.mubr.msk.bf16.mxu0 %vm538_vm3, %v5487_v9  ;;  %v8036_v63 = vrot.slane %v6698_v20, 5  ;;  %v5244_v49 = vrot.slane %v724_v29, 9  ;;  %v765_v48 = vrot.slane %v6792_v26, 5  ;;  %v5510_v11 = vld [vmem:[%s6724_s29 + $0x10] sm:$0xf]  ;;  %v5488_v34 = vcombine.low %v2801_v40, %v2805_v6 }
  0x41   : > { %v6921_v55 = vsel %vm6839_vm7, %v5240_v44, %v8035_v1  ;;  %6403 = vmatprep.subr.msk.bf16.mxu0 %vm551_vm0, %v6646_v8  ;;  %v6936_v19 = vsel %vm6839_vm7, %v5242_v41, %v757_v22  ;;  %v6940_v20 = vsel %vm6839_vm7, %v5243_v47, %v761_v36  ;;  %v5245_v52 = vrot.slane %v725_v39, 9  ;;  %v6462_v26 = vld [vmem:[%s6724_s29 + $0x10] ss:$8 sps:$4 sm:$0xff]  }
  0x42   : > { %v6927_v21 = vsel %vm6839_vm7, %v5241_v5, %v8036_v63  ;;  %v769_v8 = vrot.slane %v6798_v35, 5  ;;  %v5246_v59 = vrot.slane %v726_v45, 9  ;;  %v773_v50 = vrot.slane %v6813_v58, 5  ;;  %v6964_v58 = vld [vmem:[%s6724_s29 + $0x24] sm:$0x1] }
  0x43   : > { %v5249_v25 = vcombine.low %v6921_v55, %v6927_v21  ;;  %v5247_v2 = vrot.slane %v727_v7, 9  ;;  %v777_v54 = vrot.slane %v6823_v23, 5  ;;  %v3044_v4 = vshrl.u32 %v5510_v11, 16  ;;  %v6463_v63 = vld [vmem:[%s6724_s29 + $0x20] ss:$8 sps:$4 sm:$0xff]  }
  0x44   : > { %v3047_v24 = vshll.u32 %v5510_v11, 16  ;;  %v5250_v22 = vcombine.low %v6936_v19, %v6940_v20  ;;  %v6960_v9 = vsel %vm6839_vm7, %v5244_v49, %v765_v48  ;;  %v3053_v35 = vshll.u32 %v6943_v38, 16  ;;  %v5518_v11 = vld [vmem:[%s6724_s29 + $0x30] sm:$0xf]  ;;  %v5538_v19 = vld [vmem:[%s6724_s29 + $0x28] sm:$0xe] }
  0x45   : > { %v3058_v17 = vshrl.u32 %v5512_v53, 16  ;;  %5919 = vmatmul.mubr.msk.bf16.vlgmr.msra.gmra.mrb[0].mxu1 %vm538_vm3, %v5233_v56  ;;  %v6969_v23 = vsel %vm6839_vm7, %v5245_v52, %v769_v8  ;;  %v6973_v18 = vsel %vm6839_vm7, %v5246_v59, %v773_v50  ;;  %v3046_v27 = vrot.slane %v3044_v4, 4  ;;  %v6997_v8 = vld [vmem:[%s6724_s29 + $0x34] sm:$0x1]  ;;  %v6464_v59 = vld [vmem:[%s6724_s29 + $0x30] ss:$8 sps:$4 sm:$0xff]  }
  0x46   : > { %v3049_v36 = vrot.slane %v3047_v24, 5  ;;  %5927 = vmatpush3.bf16.msra.mxu1 %v6671_v13  ;;  %5922 = vmatprep.mubr.msk.bf16.mxu1 %vm538_vm3, %v5234_v33  ;;  %v6980_v29 = vsel %vm6839_vm7, %v5247_v2, %v777_v54  ;;  %v3055_v56 = vrot.slane %v3053_v35, 5  ;;  %v3061_v44 = vshll.u32 %v5512_v53, 16  ;;  %v6988_v33 = vld [vmem:[%s6724_s29 + $0x2c] sm:$0x1] }
  0x47   : > { %v3060_v40 = vrot.slane %v3058_v17, 4  ;;  %6053 = vmatmul.mubr.msk.bf16.gmra.mrb[4].mxu0 %vm538_vm3, %v5488_v34  ;;  %6389 = vmatprep.subr.msk.bf16.mxu1 %vm551_vm0, %v6662_v12  ;;  %v3067_v13 = vshll.u32 %v6952_v62, 16  ;;  %v3072_v41 = vshrl.u32 %v5514_v30, 16  ;;  %v3075_v39 = vshll.u32 %v5514_v30, 16  ;;  %v5520_v4 = vld [vmem:[%s6724_s29 + $0x38] sm:$0xf] }
  0x48   : > { %v3050_v5 = vor.u32 %v3049_v36, %v3046_v27  ;;  %6058 = vmatprep.mubr.msk.bf16.mxu0 %vm538_vm3, %v6462_v26  ;;  %v3063_v6 = vrot.slane %v3061_v44, 5  ;;  %v3081_v47 = vshll.u32 %v6964_v58, 16  ;;  %v3086_v45 = vshrl.u32 %v5516_v60, 16  ;;  %v7005_v17 = vld [vmem:[%s6724_s29 + $0x3c] sm:$0x1] }
  0x49   : > { %v3089_v1 = vshll.u32 %v5516_v60, 16  ;;  %v3069_v49 = vrot.slane %v3067_v13, 5  ;;  %v3074_v48 = vrot.slane %v3072_v41, 4  ;;  %v3077_v7 = vrot.slane %v3075_v39, 5  ;;  %v7032_v41 = vld [vmem:[%s6724_s29 + $0x44] sm:$0x1] }
  0x4a   : > { %v3051_v12 = vrot.slane %v3050_v5, 4  ;;  %v3064_v34 = vor.u32 %v3063_v6, %v3060_v40  ;;  %v6994_v52 = vrot.slane %v3081_v47, 5  ;;  %v3088_v53 = vrot.slane %v3086_v45, 4  ;;  %v5522_v5 = vld [vmem:[%s6724_s29 + $0x40] sm:$0xf] }
  0x4b   : > { %v3091_v26 = vrot.slane %v3089_v1, 5  ;;  %v3078_v2 = vor.u32 %v3077_v7, %v3074_v48  ;;  %v3095_v54 = vshll.u32 %v6988_v33, 16  ;;  %v3100_v24 = vshrl.u32 %v5518_v11, 16  ;;  %v5524_v6 = vld [vmem:[%s6724_s29 + $0x48] sm:$0xf] }
  0x4c   : > { %v3056_v50 = vsel %vm6739_vm4, %v3051_v12, %v3055_v56  ;;  %v3065_v30 = vrot.slane %v3064_v34, 4  ;;  %v3103_v27 = vshll.u32 %v5518_v11, 16  ;;  %v3109_v36 = vshll.u32 %v6997_v8, 16 }
  0x4d   : > { %v3092_v35 = vor.u32 %v3091_v26, %v3088_v53  ;;  %5923 = vmatmul.mubr.msk.bf16.gmra.mrb[4].mxu1 %vm538_vm3, %v5235_v57  ;;  %v7012_v60 = vrot.slane %v3078_v2, 4  ;;  %v7014_v56 = vrot.slane %v3095_v54, 5  ;;  %v3102_v40 = vrot.slane %v3100_v24, 4  ;;  %v5535_v24 = vld [vmem:[%s6724_s29 + $0x10] sm:$0xe] }
  0x4e   : > { %v3114_v44 = vshrl.u32 %v5520_v4, 16  ;;  %5928 = vmatprep.mubr.msk.bf16.mxu1 %vm538_vm3, %v5249_v25  ;;  %v3070_v51 = vsel %vm6739_vm4, %v3065_v30, %v3069_v49  ;;  %v3105_v57 = vrot.slane %v3103_v27, 5  ;;  %v7029_v13 = vrot.slane %v3109_v36, 5  ;;  %v5536_v30 = vld [vmem:[%s6724_s29 + $0x18] sm:$0xe] }
  0x4f   : > { %v3093_v0 = vrot.slane %v3092_v35, 4  ;;  %6059 = vmatmul.mubr.msk.bf16.vlgmr.msra.gmra.mrb[0].mxu0 %vm538_vm3, %v6463_v63  ;;  %v5251_v39 = vcombine.low %v6960_v9, %v6969_v23  ;;  %v5252_v55 = vcombine.low %v6973_v18, %v6980_v29  ;;  %v3117_v25 = vshll.u32 %v5520_v4, 16  ;;  %v7044_v63 = vld [vmem:[%s6724_s29 + $0x4c] sm:$0x1]  ;;  %v5315_v29 = vld [vmem:[%s8026_s3 + $0xa] sm:$0x3] }
  0x50   : > { %v3116_v21 = vrot.slane %v3114_v44, 4  ;;  %6067 = vmatpush3.bf16.msra.mxu0 %v6675_v14  ;;  %6062 = vmatprep.mubr.msk.bf16.mxu0 %vm538_vm3, %v6464_v59  ;;  %v5527_v47 = vcombine.low %v3056_v50, %v3070_v51  ;;  %v3106_v45 = vor.u32 %v3105_v57, %v3102_v40  ;;  %v3123_v1 = vshll.u32 %v7005_v17, 16  ;;  %v5274_v57 = vld [vmem:[%s6667_s13 + $0x8] sm:$0xf] }
  0x51   : > { %v3128_v9 = vshrl.u32 %v5522_v5, 16  ;;  %6404 = vmatprep.subr.msk.bf16.mxu0 %vm551_vm0, %v6680_v15  ;;  %v3084_v14 = vsel %vm6739_vm4, %v7012_v60, %v6994_v52  ;;  %v3119_v23 = vrot.slane %v3117_v25, 5  ;;  %v3131_v12 = vshll.u32 %v5522_v5, 16  ;;  %v6465_v15 = vld [vmem:[%s6724_s29 + $0x40] ss:$8 sps:$4 sm:$0xff]  }
  0x52   : > { %v3137_v49 = vshll.u32 %v7032_v41, 16  ;;  %v3107_v48 = vrot.slane %v3106_v45, 4  ;;  %v3125_v7 = vrot.slane %v3123_v1, 5  ;;  %v3142_v34 = vshrl.u32 %v5524_v6, 16  ;;  %v6466_v25 = vld [vmem:[%s6667_s13 + $0x8] ss:$8 sps:$4 sm:$0xff]  }
  0x53   : > { %v3130_v11 = vrot.slane %v3128_v9, 4  ;;  %v3120_v53 = vor.u32 %v3119_v23, %v3116_v21  ;;  %v3133_v26 = vrot.slane %v3131_v12, 5  ;;  %v3145_v52 = vshll.u32 %v5524_v6, 16  ;;  %v5276_v21 = vld [vmem:[%s6667_s13 + $0x10] sm:$0xf] }
  0x54   : > { %v3139_v59 = vrot.slane %v3137_v49, 5  ;;  %v3098_v50 = vsel %vm6739_vm4, %v3093_v0, %v7014_v56  ;;  %v3112_v2 = vsel %vm6739_vm4, %v3107_v48, %v7029_v13  ;;  %v3144_v54 = vrot.slane %v3142_v34, 4  ;;  %v5537_v56 = vld [vmem:[%s6724_s29 + $0x20] sm:$0xe]  ;;  %v5560_v13 = vld [vmem:[%s8026_s3 + $0x24] sm:$0x3] }
  0x55   : > { %v3151_v4 = vshll.u32 %v7044_v63, 16  ;;  %5929 = vmatmul.mubr.msk.bf16.vlgmr.msra.gmra.mrb[0].mxu1 %vm538_vm3, %v5250_v22  ;;  %v3121_v35 = vrot.slane %v3120_v53, 4  ;;  %v3134_v27 = vor.u32 %v3133_v26, %v3130_v11  ;;  %v3147_v36 = vrot.slane %v3145_v52, 5  ;;  %v7104_v9 = vld [vmem:[%s6667_s13 + $0xc] sm:$0x1] }
  0x56   : > { %v5543_v60 = vrot.slane %v5535_v24, 9  ;;  %5937 = vmatpush3.bf16.msra.mxu1 %v6711_v28  ;;  %5932 = vmatprep.mubr.msk.bf16.mxu1 %vm538_vm3, %v5251_v39  ;;  %v3283_v44 = vrot.slane %v6943_v38, 5  ;;  %v5544_v5 = vrot.slane %v5536_v30, 9  ;;  %v3287_v51 = vrot.slane %v6952_v62, 5  ;;  %v7114_v12 = vld [vmem:[%s6667_s13 + $0x14] sm:$0x1] }
  0x57   : > { %v3153_v40 = vrot.slane %v3151_v4, 5  ;;  %6063 = vmatmul.mubr.msk.bf16.gmra.mrb[4].mxu0 %vm538_vm3, %v6465_v15  ;;  %6390 = vmatprep.subr.msk.bf16.mxu1 %vm551_vm0, %v6685_v16  ;;  %v3126_v20 = vsel %vm6739_vm4, %v3121_v35, %v3125_v7  ;;  %v3135_v28 = vrot.slane %v3134_v27, 4  ;;  %v3148_v22 = vor.u32 %v3147_v36, %v3144_v54  ;;  %v5278_v48 = vld [vmem:[%s6667_s13 + $0x18] sm:$0xf]  ;;  %v7123_v53 = vld [vmem:[%s6667_s13 + $0x1c] sm:$0x1] }
  0x58   : > { %v5545_v0 = vrot.slane %v5537_v56, 9  ;;  %6068 = vmatprep.mubr.msk.bf16.mxu0 %vm538_vm3, %v5527_v47  ;;  %v5528_v38 = vcombine.low %v3084_v14, %v3098_v50  ;;  %v7089_v62 = vsel %vm6839_vm7, %v5543_v60, %v3283_v44  ;;  %v7093_v16 = vsel %vm6839_vm7, %v5544_v5, %v3287_v51  ;;  %v5280_v50 = vld [vmem:[%s6667_s13 + $0x20] sm:$0xf]  ;;  %v7145_v27 = vld [vmem:[%s6667_s13 + $0x24] sm:$0x1] }
  0x59   : > { %v3291_v39 = vrot.slane %v6964_v58, 5  ;;  %v5529_v6 = vcombine.low %v3112_v2, %v3126_v20  ;;  %v3140_v47 = vsel %vm6739_vm4, %v3135_v28, %v3139_v59  ;;  %v3149_v45 = vrot.slane %v3148_v22, 4  ;;  %v5539_v5 = vld [vmem:[%s6724_s29 + $0x30] sm:$0xe] }
  0x5a   : > { %v5546_v1 = vrot.slane %v5538_v19, 9  ;;  %v5552_v14 = vcombine.low %v7089_v62, %v7093_v16  ;;  %v3295_v23 = vrot.slane %v6988_v33, 5  ;;  %v1017_v49 = vshrl.u32 %v5274_v57, 16  ;;  %v6468_v51 = vld [vmem:[%s6667_s13 + $0x28] ss:$8 sps:$4 sm:$0xff]  }
  0x5b   : > { %v7110_v58 = vsel %vm6839_vm7, %v5545_v0, %v3291_v39  ;;  %v3154_v7 = vsel %vm6739_vm4, %v3149_v45, %v3153_v40  ;;  %v7120_v11 = vsel %vm551_vm0, %v5560_v13, 0  ;;  %v1020_v34 = vshll.u32 %v5274_v57, 16  ;;  %v5540_v0 = vld [vmem:[%s6724_s29 + $0x38] sm:$0xe]  ;;  %v7220_v62 = vld [vmem:[%s6667_s13 + $0x3c] sm:$0x1] }
  0x5c   : > { %v1031_v15 = vshrl.u32 %v5276_v21, 16  ;;  %v7127_v26 = vsel %vm6839_vm7, %v5546_v1, %v3295_v23  ;;  %v1019_v33 = vrot.slane %v1017_v49, 4  ;;  %v1026_v59 = vshll.u32 %v7104_v9, 16  ;;  %v5542_v1 = vld [vmem:[%s6724_s29 + $0x48] sm:$0xe] }
  0x5d   : > { %v1034_v52 = vshll.u32 %v5276_v21, 16  ;;  %5933 = vmatmul.mubr.msk.bf16.gmra.mrb[4].mxu1 %vm538_vm3, %v5252_v55  ;;  %v5530_v2 = vcombine.low %v3140_v47, %v3154_v7  ;;  %v5553_v54 = vcombine.low %v7110_v58, %v7127_v26  ;;  %v1022_v4 = vrot.slane %v1020_v34, 5  ;;  %v6467_v55 = vld [vmem:[%s6667_s13 + $0x18] ss:$8 sps:$4 sm:$0xff]   ;;  %v5282_v7 = vld [vmem:[%s6667_s13 + $0x28] sm:$0xf] }
  0x5e   : > { %v1033_v24 = vrot.slane %v1031_v15, 4  ;;  %5938 = vmatprep.mubr.msk.bf16.mxu1 %vm538_vm3, %v6466_v25  ;;  %v1040_v35 = vshll.u32 %v7114_v12, 16  ;;  %v1045_v36 = vshrl.u32 %v5278_v48, 16  ;;  %v1048_v18 = vshll.u32 %v5278_v48, 16  ;;  %v5541_v25 = vld [vmem:[%s6724_s29 + $0x40] sm:$0xe] }
  0x5f   : > { %v1036_v30 = vrot.slane %v1034_v52, 5  ;;  %6069 = vmatmul.mubr.msk.bf16.vlgmr.msra.gmra.mrb[0].mxu0 %vm538_vm3, %v5528_v38  ;;  %v1023_v60 = vor.u32 %v1022_v4, %v1019_v33  ;;  %v1054_v56 = vshll.u32 %v7123_v53, 16  ;;  %v1059_v40 = vshrl.u32 %v5280_v50, 16  ;;  %v7176_v52 = vld [vmem:[%s6667_s13 + $0x2c] sm:$0x1] }
  0x60   : > { %v1062_v44 = vshll.u32 %v5280_v50, 16  ;;  %6077 = vmatpush3.bf16.msra.mxu0 %v6715_v31  ;;  %6072 = vmatprep.mubr.msk.bf16.mxu0 %vm538_vm3, %v5529_v6  ;;  %v1028_v19 = vrot.slane %v1026_v59, 5  ;;  %v1047_v28 = vrot.slane %v1045_v36, 4  ;;  %v1050_v22 = vrot.slane %v1048_v18, 5 }
  0x61   : > { %v1037_v20 = vor.u32 %v1036_v30, %v1033_v24  ;;  %6405 = vmatprep.subr.msk.bf16.mxu0 %vm551_vm0, %v5560_v13  ;;  %v1024_v57 = vrot.slane %v1023_v60, 4  ;;  %v1042_v38 = vrot.slane %v1040_v35, 5  ;;  %v1061_v39 = vrot.slane %v1059_v40, 4  ;;  %v5284_v30 = vld [vmem:[%s6667_s13 + $0x30] sm:$0xf] }
  0x62   : > { %v1064_v21 = vrot.slane %v1062_v44, 5  ;;  %v1051_v31 = vor.u32 %v1050_v22, %v1047_v28  ;;  %v1056_v45 = vrot.slane %v1054_v56, 5  ;;  %v1068_v6 = vshll.u32 %v7145_v27, 16  ;;  %v6469_v60 = vld [vmem:[%s6667_s13 + $0x38] ss:$8 sps:$4 sm:$0xff]  }
  0x63   : > { %v1038_v47 = vrot.slane %v1037_v20, 4  ;;  %v7164_v49 = vsel %vm551_vm0, %v5315_v29, 0  ;;  %v5547_v48 = vrot.slane %v5539_v5, 9  ;;  %v3299_v13 = vrot.slane %v6997_v8, 5  ;;  %v7201_v40 = vld [vmem:[%s6667_s13 + $0x34] sm:$0x1] }
  0x64   : > { %v1065_v23 = vor.u32 %v1064_v21, %v1061_v39  ;;  %v1029_v34 = vsel %vm6739_vm4, %v1024_v57, %v1028_v19  ;;  %v1052_v15 = vrot.slane %v1051_v31, 4  ;;  %v1070_v33 = vrot.slane %v1068_v6, 5  ;;  %v5288_v57 = vld [vmem:[%s6667_s13 + $0x40] sm:$0xf]  ;;  %v7228_v21 = vld [vmem:[%s6667_s13 + $0x44] sm:$0x1] }
  0x65   : > { %v5548_v59 = vrot.slane %v5540_v0, 9  ;;  %5939 = vmatmul.mubr.msk.bf16.vlgmr.msra.gmra.mrb[0].mxu1 %vm538_vm3, %v6467_v55  ;;  %v1043_v8 = vsel %vm6739_vm4, %v1038_v47, %v1042_v38  ;;  %v7183_v4 = vsel %vm6839_vm7, %v5547_v48, %v3299_v13  ;;  %v3303_v24 = vrot.slane %v7005_v17, 5  ;;  %v5299_v48 = vld [vmem:[%s6667_s13 + $0x8] sm:$0xe] }
  0x66   : > { %v1066_v50 = vrot.slane %v1065_v23, 4  ;;  %5947 = vmatpush3.bf16.msra.mxu1 %v6719_v32  ;;  %5942 = vmatprep.mubr.msk.bf16.mxu1 %vm538_vm3, %v6468_v51  ;;  %v1057_v35 = vsel %vm6739_vm4, %v1052_v15, %v1056_v45  ;;  %v5549_v36 = vrot.slane %v5541_v25, 9  ;;  %v3307_v18 = vrot.slane %v7032_v41, 5  ;;  %v5286_v41 = vld [vmem:[%s6667_s13 + $0x38] sm:$0xf] }
  0x67   : > { %v5550_v55 = vrot.slane %v5542_v1, 9  ;;  %6073 = vmatmul.mubr.msk.bf16.gmra.mrb[4].mxu0 %vm538_vm3, %v5530_v2  ;;  %6391 = vmatprep.subr.msk.bf16.mxu1 %vm551_vm0, %v5315_v29  ;;  %v3304_v32 = vsel %vm6839_vm7, %v5548_v59, %v3303_v24  ;;  %v3311_v17 = vrot.slane %v7044_v63, 5  ;;  %v1073_v44 = vshrl.u32 %v5282_v7, 16  ;;  %v5569_v23 = vld [vmem:[%s8026_s3 + $0x26] sm:$0x3] }
  0x68   : > { %v1071_v56 = vsel %vm6739_vm4, %v1066_v50, %v1070_v33  ;;  %6078 = vmatprep.mubr.msk.bf16.mxu0 %vm538_vm3, %v5552_v14  ;;  %v5291_v2 = vcombine.low %v1029_v34, %v1043_v8  ;;  %v7212_v29 = vsel %vm6839_vm7, %v5549_v36, %v3307_v18  ;;  %v1076_v51 = vshll.u32 %v5282_v7, 16  ;;  %v5300_v33 = vld [vmem:[%s6667_s13 + $0x10] sm:$0xe]  ;;  %v5301_v24 = vld [vmem:[%s6667_s13 + $0x18] sm:$0xe] }
  0x69   : > { %v7208_v5 = vcombine.low %v1057_v35, %v1071_v56  ;;  %v7216_v63 = vsel %vm6839_vm7, %v5550_v55, %v3311_v17  ;;  %v1075_v19 = vrot.slane %v1073_v44, 4  ;;  %v1082_v20 = vshll.u32 %v7176_v52, 16  ;;  %v5302_v55 = vld [vmem:[%s6667_s13 + $0x20] sm:$0xe] }
  0x6a   : > { %v1087_v28 = vshrl.u32 %v5284_v30, 16  ;;  %v5554_v16 = vcombine.low %v7183_v4, %v3304_v32  ;;  %v1078_v14 = vrot.slane %v1076_v51, 5  ;;  %v1090_v22 = vshll.u32 %v5284_v30, 16 }
  0x6b   : > { %v1096_v0 = vshll.u32 %v7201_v40, 16  ;;  %v5555_v38 = vcombine.low %v7212_v29, %v7216_v63  ;;  %v1101_v25 = vshrl.u32 %v5286_v41, 16  ;;  %v1104_v47 = vshll.u32 %v5286_v41, 16 }
  0x6c   : > { %v1089_v39 = vrot.slane %v1087_v28, 4  ;;  %v1079_v31 = vor.u32 %v1078_v14, %v1075_v19  ;;  %v1084_v45 = vrot.slane %v1082_v20, 5  ;;  %v1092_v6 = vrot.slane %v1090_v22, 5 }
  0x6d   : > { %v1110_v1 = vshll.u32 %v7220_v62, 16  ;;  %5943 = vmatmul.mubr.msk.bf16.gmra.mrb[4].mxu1 %vm538_vm3, %v6469_v60  ;;  %v1103_v13 = vrot.slane %v1101_v25, 4  ;;  %v1106_v7 = vrot.slane %v1104_v47, 5  ;;  %v1115_v34 = vshrl.u32 %v5288_v57, 16 }
  0x6e   : > { %v1118_v15 = vshll.u32 %v5288_v57, 16  ;;  %5948 = vmatprep.mubr.msk.bf16.mxu1 %vm538_vm3, %v5291_v2  ;;  %v1080_v59 = vrot.slane %v1079_v31, 4  ;;  %v1093_v8 = vor.u32 %v1092_v6, %v1089_v39  ;;  %v1098_v50 = vrot.slane %v1096_v0, 5  ;;  %v5303_v57 = vld [vmem:[%s6667_s13 + $0x28] sm:$0xe] }
  0x6f   : > { %v1124_v4 = vshll.u32 %v7228_v21, 16  ;;  %6079 = vmatmul.mubr.msk.bf16.vlgmr.msra.gmra.mrb[0].mxu0 %vm538_vm3, %v5553_v54  ;;  %v1107_v30 = vor.u32 %v1106_v7, %v1103_v13  ;;  %v1112_v35 = vrot.slane %v1110_v1, 5  ;;  %v1117_v36 = vrot.slane %v1115_v34, 4  ;;  %v7289_v13 = vld [vmem:[%s7171_s18 + $0x4] sm:$0x1] }
  0x70   : > { %v1120_v18 = vrot.slane %v1118_v15, 5  ;;  %6087 = vmatpush3.bf16.msra.mxu0 %v7120_v11  ;;  %6082 = vmatprep.mubr.msk.bf16.mxu0 %vm538_vm3, %v5554_v16  ;;  %v1085_v60 = vsel %vm6739_vm4, %v1080_v59, %v1084_v45  ;;  %v1094_v56 = vrot.slane %v1093_v8, 4  ;;  %v5307_v17 = vrot.slane %v5299_v48, 9  ;;  %v5332_v11 = vld [vmem:[%s8026_s3 + $0xc] sm:$0x3] }
  0x71   : > { %v1126_v32 = vrot.slane %v1124_v4, 5  ;;  %v1108_v44 = vrot.slane %v1107_v30, 4  ;;  %6406 = vmatprep.subr.msk.bf16.mxu0 %vm551_vm0, %v5569_v23  ;;  %v1256_v26 = vrot.slane %v7104_v9, 5  ;;  %v5308_v54 = vrot.slane %v5300_v33, 9  ;;  %v6470_v16 = vld [vmem:[%s7171_s18] ss:$8 sps:$4 sm:$0xff]  }
  0x72   : > { %v1121_v58 = vor.u32 %v1120_v18, %v1117_v36  ;;  %v1099_v41 = vsel %vm6739_vm4, %v1094_v56, %v1098_v50  ;;  %v1260_v2 = vrot.slane %v7114_v12, 5  ;;  %v5309_v51 = vrot.slane %v5301_v24, 9  ;;  %v5305_v45 = vld [vmem:[%s6667_s13 + $0x38] sm:$0xe]  ;;  %v3533_v48 = vld [vmem:[%s7171_s18] sm:$0xf] }
  0x73   : > { %v1264_v19 = vrot.slane %v7123_v53, 5  ;;  %v5293_v20 = vcombine.low %v1085_v60, %v1099_v41  ;;  %v7260_v9 = vsel %vm551_vm0, %v5569_v23, 0  ;;  %v1257_v14 = vsel %vm6839_vm7, %v5307_v17, %v1256_v26  ;;  %v5304_v53 = vld [vmem:[%s6667_s13 + $0x30] sm:$0xe]  ;;  %v3535_v15 = vld [vmem:[%s7171_s18 + $0x8] sm:$0xf] }
  0x74   : > { %v1122_v28 = vrot.slane %v1121_v58, 4  ;;  %v1261_v22 = vsel %vm6839_vm7, %v5308_v54, %v1260_v2  ;;  %v5310_v0 = vrot.slane %v5302_v55, 9  ;;  %v1268_v12 = vrot.slane %v7145_v27, 5  ;;  %v5306_v27 = vld [vmem:[%s6667_s13 + $0x40] sm:$0xe] }
  0x75   : > { %5949 = vmatmul.mubr.msk.bf16.vlgmr.msra.gmra.mrb[0].mxu1 %vm538_vm3, %v7208_v5  ;;  %v1113_v39 = vsel %vm6739_vm4, %v1108_v44, %v1112_v35  ;;  %v7275_v25 = vsel %vm6839_vm7, %v5309_v51, %v1264_v19  ;;  %v7278_v47 = vsel %vm551_vm0, %v5332_v11, 0  ;;  %v5311_v31 = vrot.slane %v5303_v57, 9  ;;  %v6471_v8 = vld [vmem:[%s7171_s18 + $0x10] ss:$8 sps:$4 sm:$0xff]   ;;  %v6472_v35 = vld [vmem:[%s7171_s18 + $0x20] ss:$8 sps:$4 sm:$0xff]  }
  0x76   : > { %5957 = vmatpush3.bf16.msra.mxu1 %v7164_v49  ;;  %5952 = vmatprep.mubr.msk.bf16.mxu1 %vm538_vm3, %v5293_v20  ;;  %v1127_v5 = vsel %vm6739_vm4, %v1122_v28, %v1126_v32  ;;  %v5316_v6 = vcombine.low %v1257_v14, %v1261_v22  ;;  %v1272_v1 = vrot.slane %v7176_v52, 5  ;;  %v5312_v23 = vrot.slane %v5304_v53, 9  ;;  %v3537_v24 = vld [vmem:[%s7171_s18 + $0x10] sm:$0xf]  ;;  %v7327_v55 = vld [vmem:[%s7171_s18 + $0x14] sm:$0x1] }
  0x77   : > { %6083 = vmatmul.mubr.msk.bf16.gmra.mrb[4].mxu0 %vm538_vm3, %v5555_v38  ;;  %v7297_v49 = vsel %vm6839_vm7, %v5310_v0, %v1268_v12  ;;  %6392 = vmatprep.subr.msk.bf16.mxu1 %vm551_vm0, %v5332_v11  ;;  %v1276_v52 = vrot.slane %v7201_v40, 5  ;;  %v5313_v7 = vrot.slane %v5305_v45, 9  ;;  %v1280_v34 = vrot.slane %v7220_v62, 5  ;;  %v7315_v62 = vld [vmem:[%s7171_s18 + $0xc] sm:$0x1] }
  0x78   : > { %6088 = vmatprep.mubr.msk.bf16.mxu0 %vm538_vm3, %v6470_v16  ;;  %v7306_v29 = vsel %vm6839_vm7, %v5311_v31, %v1272_v1  ;;  %v5314_v63 = vrot.slane %v5306_v27, 9  ;;  %v1284_v38 = vrot.slane %v7228_v21, 5  ;;  %v3550_v33 = vshrl.u32 %v3533_v48, 16  ;;  %v3539_v60 = vld [vmem:[%s7171_s18 + $0x18] sm:$0xf] }
  0x79   : > { %v5294_v59 = vcombine.low %v1113_v39, %v1127_v5  ;;  %v7312_v40 = vsel %vm6839_vm7, %v5312_v23, %v1276_v52  ;;  %v3553_v50 = vshll.u32 %v3533_v48, 16  ;;  %v3559_v4 = vshll.u32 %v7289_v13, 16  ;;  %v7333_v58 = vld [vmem:[%s7171_s18 + $0x1c] sm:$0x1]  ;;  %v5586_v16 = vld [vmem:[%s8026_s3 + $0x28] sm:$0x3] }
  0x7a   : > { %v5317_v30 = vcombine.low %v7275_v25, %v7297_v49  ;;  %v7324_v21 = vsel %vm6839_vm7, %v5313_v7, %v1280_v34  ;;  %v3552_v36 = vrot.slane %v3550_v33, 4  ;;  %v3564_v18 = vshrl.u32 %v3535_v15, 16  ;;  %v6473_v5 = vld [vmem:[%s7171_s18 + $0x30] ss:$8 sps:$4 sm:$0xff]   ;;  %v5357_v23 = vld [vmem:[%s8026_s3 + $0xe] sm:$0x3] }
  0x7b   : > { %v5318_v56 = vcombine.low %v7306_v29, %v7312_v40  ;;  %v3555_v32 = vrot.slane %v3553_v50, 5  ;;  %v3561_v17 = vrot.slane %v3559_v4, 5  ;;  %v3567_v44 = vshll.u32 %v3535_v15, 16  ;;  %v3541_v15 = vld [vmem:[%s7171_s18 + $0x20] sm:$0xf] }
  0x7c   : > { %v3566_v26 = vrot.slane %v3564_v18, 4  ;;  %v3573_v54 = vshll.u32 %v7315_v62, 16  ;;  %v3578_v11 = vshrl.u32 %v3537_v24, 16  ;;  %v3581_v41 = vshll.u32 %v3537_v24, 16  ;;  %v7372_v33 = vld [vmem:[%s7171_s18 + $0x2c] sm:$0x1] }
  0x7d   : > { %5953 = vmatmul.mubr.msk.bf16.gmra.mrb[4].mxu1 %vm538_vm3, %v5294_v59  ;;  %v3556_v2 = vor.u32 %v3555_v32, %v3552_v36  ;;  %v3569_v51 = vrot.slane %v3567_v44, 5  ;;  %v3587_v19 = vshll.u32 %v7327_v55, 16  ;;  %v3592_v20 = vshrl.u32 %v3539_v60, 16  ;;  %v3545_v4 = vld [vmem:[%s7171_s18 + $0x30] sm:$0xf] }
  0x7e   : > { %5958 = vmatprep.mubr.msk.bf16.mxu1 %vm538_vm3, %v5316_v6  ;;  %v7341_v28 = vsel %vm6839_vm7, %v5314_v63, %v1284_v38  ;;  %v3580_v14 = vrot.slane %v3578_v11, 4  ;;  %v3583_v22 = vrot.slane %v3581_v41, 5  ;;  %v3595_v0 = vshll.u32 %v3539_v60, 16  ;;  %v7368_v63 = vld [vmem:[%s7171_s18 + $0x24] sm:$0x1] }
  0x7f   : > { %6089 = vmatmul.mubr.msk.bf16.vlgmr.msra.gmra.mrb[0].mxu0 %vm538_vm3, %v6471_v8  ;;  %v3557_v12 = vrot.slane %v3556_v2, 4  ;;  %v3570_v57 = vor.u32 %v3569_v51, %v3566_v26  ;;  %v3575_v53 = vrot.slane %v3573_v54, 5  ;;  %v3594_v39 = vrot.slane %v3592_v20, 4  ;;  %v3543_v38 = vld [vmem:[%s7171_s18 + $0x28] sm:$0xf] }
  0x80   : > { %6097 = vmatpush3.bf16.msra.mxu0 %v7260_v9  ;;  %6092 = vmatprep.mubr.msk.bf16.mxu0 %vm538_vm3, %v6472_v35  ;;  %v3584_v25 = vor.u32 %v3583_v22, %v3580_v14  ;;  %v3589_v31 = vrot.slane %v3587_v19, 5  ;;  %v3597_v45 = vrot.slane %v3595_v0, 5  ;;  %v3601_v27 = vshll.u32 %v7333_v58, 16  ;;  %v7378_v24 = vld [vmem:[%s7171_s18 + $0x34] sm:$0x1] }
  0x81   : > { %v3562_v6 = vsel %vm6739_vm4, %v3557_v12, %v3561_v17  ;;  %v3571_v1 = vrot.slane %v3570_v57, 4  ;;  %6407 = vmatprep.subr.msk.bf16.mxu0 %vm551_vm0, %v5586_v16  ;;  %v7355_v9 = vsel %vm551_vm0, %v5586_v16, 0  ;;  %v3789_v48 = vrot.slane %v7289_v13, 5  ;;  %v3547_v32 = vld [vmem:[%s7171_s18 + $0x38] sm:$0xf] }
  0x82   : > { %v3585_v49 = vrot.slane %v3584_v25, 4  ;;  %v3598_v52 = vor.u32 %v3597_v45, %v3594_v39  ;;  %v3603_v7 = vrot.slane %v3601_v27, 5  ;;  %v7362_v34 = vsel %vm551_vm0, %v5357_v23, 0  ;;  %v7389_v26 = vld [vmem:[%s7171_s18 + $0x3c] sm:$0x1] }
  0x83   : > { %v3576_v29 = vsel %vm6739_vm4, %v3571_v1, %v3575_v53  ;;  %v5319_v59 = vcombine.low %v7324_v21, %v7341_v28  ;;  %v3606_v50 = vshrl.u32 %v3541_v15, 16  ;;  %v3609_v35 = vshll.u32 %v3541_v15, 16  ;;  %v6474_v20 = vld [vmem:[%s6667_s13 + $0x10] ss:$8 sps:$4 sm:$0xff]   ;;  %v3763_v1 = vld [vmem:[%s7171_s18] sm:$0xe] }
  0x84   : > { %v5570_v8 = vcombine.low %v3562_v6, %v3576_v29  ;;  %v3599_v40 = vrot.slane %v3598_v52, 4  ;;  %v3615_v36 = vshll.u32 %v7368_v63, 16  ;;  %v3620_v18 = vshrl.u32 %v3543_v38, 16  ;;  %v5603_v29 = vld [vmem:[%s8026_s3 + $0x2a] sm:$0x3] }
  0x85   : > { %5959 = vmatmul.mubr.msk.bf16.vlgmr.msra.gmra.mrb[0].mxu1 %vm538_vm3, %v5317_v30  ;;  %v3623_v60 = vshll.u32 %v3543_v38, 16  ;;  %v3590_v21 = vsel %vm6739_vm4, %v3585_v49, %v3589_v31  ;;  %v3608_v17 = vrot.slane %v3606_v50, 4  ;;  %v3629_v44 = vshll.u32 %v7372_v33, 16  ;;  %v3765_v38 = vld [vmem:[%s7171_s18 + $0x10] sm:$0xe] }
  0x86   : > { %5967 = vmatpush3.bf16.msra.mxu1 %v7278_v47  ;;  %5962 = vmatprep.mubr.msk.bf16.mxu1 %vm538_vm3, %v5318_v56  ;;  %v3634_v30 = vshrl.u32 %v3545_v4, 16  ;;  %v3604_v54 = vsel %vm6739_vm4, %v3599_v40, %v3603_v7  ;;  %v3611_v47 = vrot.slane %v3609_v35, 5  ;;  %v3617_v11 = vrot.slane %v3615_v36, 5  ;;  %v3766_v50 = vld [vmem:[%s7171_s18 + $0x18] sm:$0xe] }
  0x87   : > { %6093 = vmatmul.mubr.msk.bf16.gmra.mrb[4].mxu0 %vm538_vm3, %v6473_v5  ;;  %6393 = vmatprep.subr.msk.bf16.mxu1 %vm551_vm0, %v5357_v23  ;;  %v3622_v56 = vrot.slane %v3620_v18, 4  ;;  %v3625_v41 = vrot.slane %v3623_v60, 5  ;;  %v3631_v2 = vrot.slane %v3629_v44, 5  ;;  %v3637_v19 = vshll.u32 %v3545_v4, 16  ;;  %v3764_v23 = vld [vmem:[%s7171_s18 + $0x8] sm:$0xe] }
  0x88   : > { %6098 = vmatprep.mubr.msk.bf16.mxu0 %vm538_vm3, %v5570_v8  ;;  %v3636_v51 = vrot.slane %v3634_v30, 4  ;;  %v3612_v28 = vor.u32 %v3611_v47, %v3608_v17  ;;  %v3643_v16 = vshll.u32 %v7378_v24, 16  ;;  %v3648_v14 = vshrl.u32 %v3547_v32, 16  ;;  %v6475_v35 = vld [vmem:[%s6667_s13 + $0x20] ss:$8 sps:$4 sm:$0xff]  }
  0x89   : > { %v3651_v22 = vshll.u32 %v3547_v32, 16  ;;  %v5571_v0 = vcombine.low %v3590_v21, %v3604_v54  ;;  %v3626_v12 = vor.u32 %v3625_v41, %v3622_v56  ;;  %v3639_v57 = vrot.slane %v3637_v19, 5  ;;  %v5341_v21 = vld [vmem:[%s6667_s13 + $0x10] sm:$0xf]  ;;  %v7428_v30 = vld [vmem:[%s6667_s13 + $0x14] sm:$0x1] }
  0x8a   : > { %v3657_v53 = vshll.u32 %v7389_v26, 16  ;;  %v3613_v39 = vrot.slane %v3612_v28, 4  ;;  %v3645_v25 = vrot.slane %v3643_v16, 5  ;;  %v3650_v31 = vrot.slane %v3648_v14, 4  ;;  %v6476_v41 = vld [vmem:[%s6667_s13 + $0x30] ss:$8 sps:$4 sm:$0xff]  }
  0x8b   : > { %v3653_v45 = vrot.slane %v3651_v22, 5  ;;  %v3627_v27 = vrot.slane %v3626_v12, 4  ;;  %v3640_v5 = vor.u32 %v3639_v57, %v3636_v51  ;;  %v5578_v7 = vrot.slane %v3763_v1, 9 }
  0x8c   : > { %v3659_v6 = vrot.slane %v3657_v53, 5  ;;  %v3618_v49 = vsel %vm6739_vm4, %v3613_v39, %v3617_v11  ;;  %v5579_v15 = vrot.slane %v3764_v23, 9  ;;  %v5580_v4 = vrot.slane %v3765_v38, 9  ;;  %v5345_v11 = vld [vmem:[%s6667_s13 + $0x20] sm:$0xf] }
  0x8d   : > { %5963 = vmatmul.mubr.msk.bf16.gmra.mrb[4].mxu1 %vm538_vm3, %v5319_v59  ;;  %v3654_v52 = vor.u32 %v3653_v45, %v3650_v31  ;;  %v3632_v8 = vsel %vm6739_vm4, %v3627_v27, %v3631_v2  ;;  %v3641_v40 = vrot.slane %v3640_v5, 4  ;;  %v3793_v59 = vrot.slane %v7315_v62, 5  ;;  %v7464_v5 = vld [vmem:[%s6667_s13 + $0x2c] sm:$0x1] }
  0x8e   : > { %5968 = vmatprep.mubr.msk.bf16.mxu1 %vm538_vm3, %v6474_v20  ;;  %v5572_v36 = vcombine.low %v3618_v49, %v3632_v8  ;;  %v3790_v60 = vsel %vm6839_vm7, %v5578_v7, %v3789_v48  ;;  %v3797_v32 = vrot.slane %v7327_v55, 5  ;;  %v5581_v44 = vrot.slane %v3766_v50, 9  ;;  %v5343_v48 = vld [vmem:[%s6667_s13 + $0x18] sm:$0xf]  ;;  %v7452_v20 = vld [vmem:[%s6667_s13 + $0x24] sm:$0x1] }
  0x8f   : > { %6099 = vmatmul.mubr.msk.bf16.vlgmr.msra.gmra.mrb[0].mxu0 %vm538_vm3, %v5571_v0  ;;  %v3655_v18 = vrot.slane %v3654_v52, 4  ;;  %v3646_v62 = vsel %vm6739_vm4, %v3641_v40, %v3645_v25  ;;  %v3794_v17 = vsel %vm6839_vm7, %v5579_v15, %v3793_v59  ;;  %v3801_v13 = vrot.slane %v7333_v58, 5  ;;  %v7443_v58 = vld [vmem:[%s6667_s13 + $0x1c] sm:$0x1]  ;;  %v5347_v0 = vld [vmem:[%s6667_s13 + $0x28] sm:$0xf] }
  0x90   : > { %6107 = vmatpush3.bf16.msra.mxu0 %v7355_v9  ;;  %6102 = vmatprep.mubr.msk.bf16.mxu0 %vm538_vm3, %v5572_v36  ;;  %v5587_v9 = vcombine.low %v3790_v60, %v3794_v17  ;;  %v7437_v54 = vsel %vm6839_vm7, %v5580_v4, %v3797_v32  ;;  %v7440_v47 = vsel %vm551_vm0, %v5603_v29, 0  ;;  %v1524_v51 = vshrl.u32 %v5341_v21, 16  ;;  %v5382_v25 = vld [vmem:[%s8026_s3 + $0x10] sm:$0x3]  ;;  %v6477_v7 = vld [vmem:[%s6667_s13 + $0x40] ss:$8 sps:$4 sm:$0xff]  }
  0x91   : > { %v3660_v55 = vsel %vm6739_vm4, %v3655_v18, %v3659_v6  ;;  %6408 = vmatprep.subr.msk.bf16.mxu0 %vm551_vm0, %v5603_v29  ;;  %v7449_v2 = vsel %vm6839_vm7, %v5581_v44, %v3801_v13  ;;  %v1527_v19 = vshll.u32 %v5341_v21, 16  ;;  %v1533_v16 = vshll.u32 %v7428_v30, 16  ;;  %v3767_v40 = vld [vmem:[%s7171_s18 + $0x20] sm:$0xe]  ;;  %v3769_v21 = vld [vmem:[%s7171_s18 + $0x30] sm:$0xe] }
  0x92   : > { %v5573_v56 = vcombine.low %v3646_v62, %v3660_v55  ;;  %v5588_v28 = vcombine.low %v7437_v54, %v7449_v2  ;;  %v1538_v14 = vshrl.u32 %v5343_v48, 16  ;;  %v1541_v22 = vshll.u32 %v5343_v48, 16  ;;  %v3770_v48 = vld [vmem:[%s7171_s18 + $0x38] sm:$0xe] }
  0x93   : > { %v1526_v12 = vrot.slane %v1524_v51, 4  ;;  %v1529_v57 = vrot.slane %v1527_v19, 5  ;;  %v1547_v53 = vshll.u32 %v7443_v58, 16  ;;  %v1552_v39 = vshrl.u32 %v5345_v11, 16 }
  0x94   : > { %v1535_v31 = vrot.slane %v1533_v16, 5  ;;  %v1540_v45 = vrot.slane %v1538_v14, 4  ;;  %v1543_v27 = vrot.slane %v1541_v22, 5  ;;  %v1555_v6 = vshll.u32 %v5345_v11, 16  ;;  %v7491_v22 = vld [vmem:[%s6667_s13 + $0x34] sm:$0x1] }
  0x95   : > { %5969 = vmatmul.mubr.msk.bf16.vlgmr.msra.gmra.mrb[0].mxu1 %vm538_vm3, %v6475_v35  ;;  %v1530_v1 = vor.u32 %v1529_v57, %v1526_v12  ;;  %v1549_v23 = vrot.slane %v1547_v53, 5  ;;  %v1554_v49 = vrot.slane %v1552_v39, 4  ;;  %v1561_v52 = vshll.u32 %v7452_v20, 16  ;;  %v3768_v35 = vld [vmem:[%s7171_s18 + $0x28] sm:$0xe] }
  0x96   : > { %5977 = vmatpush3.bf16.msra.mxu1 %v7362_v34  ;;  %5972 = vmatprep.mubr.msk.bf16.mxu1 %vm538_vm3, %v6476_v41  ;;  %v1544_v15 = vor.u32 %v1543_v27, %v1540_v45  ;;  %v1557_v29 = vrot.slane %v1555_v6, 5  ;;  %v1566_v38 = vshrl.u32 %v5347_v0, 16  ;;  %v1569_v8 = vshll.u32 %v5347_v0, 16  ;;  %v5349_v41 = vld [vmem:[%s6667_s13 + $0x30] sm:$0xf] }
  0x97   : > { %6103 = vmatmul.mubr.msk.bf16.gmra.mrb[4].mxu0 %vm538_vm3, %v5573_v56  ;;  %6394 = vmatprep.subr.msk.bf16.mxu1 %vm551_vm0, %v5382_v25  ;;  %v1531_v34 = vrot.slane %v1530_v1, 4  ;;  %v1563_v59 = vrot.slane %v1561_v52, 5  ;;  %v1575_v50 = vshll.u32 %v7464_v5, 16  ;;  %v7476_v4 = vsel %vm551_vm0, %v5382_v25, 0  ;;  %v7499_v39 = vld [vmem:[%s6667_s13 + $0x3c] sm:$0x1] }
  0x98   : > { %6108 = vmatprep.mubr.msk.bf16.mxu0 %vm538_vm3, %v5587_v9  ;;  %v1545_v36 = vrot.slane %v1544_v15, 4  ;;  %v1558_v18 = vor.u32 %v1557_v29, %v1554_v49  ;;  %v1568_v60 = vrot.slane %v1566_v38, 4  ;;  %v1571_v32 = vrot.slane %v1569_v8, 5  ;;  %v5353_v25 = vld [vmem:[%s6667_s13 + $0x40] sm:$0xf] }
  0x99   : > { %v1536_v62 = vsel %vm6739_vm4, %v1531_v34, %v1535_v31  ;;  %v1577_v17 = vrot.slane %v1575_v50, 5  ;;  %v5582_v44 = vrot.slane %v3767_v40, 9  ;;  %v3805_v13 = vrot.slane %v7368_v63, 5  ;;  %v5351_v63 = vld [vmem:[%s6667_s13 + $0x38] sm:$0xf] }
  0x9a   : > { %v1550_v55 = vsel %vm6739_vm4, %v1545_v36, %v1549_v23  ;;  %v1559_v9 = vrot.slane %v1558_v18, 4  ;;  %v1572_v11 = vor.u32 %v1571_v32, %v1568_v60  ;;  %v5583_v56 = vrot.slane %v3768_v35, 9  ;;  %v7507_v6 = vld [vmem:[%s6667_s13 + $0x44] sm:$0x1]  ;;  %v7529_v34 = vld [vmem:[%s6667_s13 + $0x4c] sm:$0x1] }
  0x9b   : > { %v5358_v51 = vcombine.low %v1536_v62, %v1550_v55  ;;  %v3806_v19 = vsel %vm6839_vm7, %v5582_v44, %v3805_v13  ;;  %v3809_v16 = vrot.slane %v7372_v33, 5  ;;  %v5584_v14 = vrot.slane %v3769_v21, 9  ;;  %v6478_v32 = vld [vmem:[%s7171_s18 + $0x8] ss:$8 sps:$4 sm:$0xff]  }
  0x9c   : > { %v1564_v0 = vsel %vm6739_vm4, %v1559_v9, %v1563_v59  ;;  %v1573_v12 = vrot.slane %v1572_v11, 4  ;;  %v3813_v57 = vrot.slane %v7378_v24, 5  ;;  %v5585_v53 = vrot.slane %v3770_v48, 9  ;;  %v5366_v13 = vld [vmem:[%s6667_s13 + $0x10] sm:$0xe] }
  0x9d   : > { %5973 = vmatmul.mubr.msk.bf16.gmra.mrb[4].mxu1 %vm538_vm3, %v6477_v7  ;;  %v3810_v33 = vsel %vm6839_vm7, %v5583_v56, %v3809_v16  ;;  %v3817_v31 = vrot.slane %v7389_v26, 5  ;;  %v1580_v45 = vshrl.u32 %v5349_v41, 16  ;;  %v1583_v27 = vshll.u32 %v5349_v41, 16  ;;  %v5355_v26 = vld [vmem:[%s6667_s13 + $0x48] sm:$0xf] }
  0x9e   : > { %5978 = vmatprep.mubr.msk.bf16.mxu1 %vm538_vm3, %v5358_v51  ;;  %v1578_v24 = vsel %vm6739_vm4, %v1573_v12, %v1577_v17  ;;  %v5589_v1 = vcombine.low %v3806_v19, %v3810_v33  ;;  %v3814_v23 = vsel %vm6839_vm7, %v5584_v14, %v3813_v57  ;;  %v1589_v49 = vshll.u32 %v7491_v22, 16  ;;  %v5367_v11 = vld [vmem:[%s6667_s13 + $0x18] sm:$0xe]  ;;  %v5368_v56 = vld [vmem:[%s6667_s13 + $0x20] sm:$0xe] }
  0x9f   : > { %6109 = vmatmul.mubr.msk.bf16.vlgmr.msra.gmra.mrb[0].mxu0 %vm538_vm3, %v5588_v28  ;;  %v5359_v52 = vcombine.low %v1564_v0, %v1578_v24  ;;  %v3818_v7 = vsel %vm6839_vm7, %v5585_v53, %v3817_v31  ;;  %v1582_v54 = vrot.slane %v1580_v45, 4  ;;  %v1585_v2 = vrot.slane %v1583_v27, 5  ;;  %v5628_v28 = vld [vmem:[%s8026_s3 + $0x2c] sm:$0x3]  ;;  %v5369_v14 = vld [vmem:[%s6667_s13 + $0x28] sm:$0xe] }
  0xa0   : > { %6117 = vmatpush3.bf16.msra.mxu0 %v7440_v47  ;;  %6112 = vmatprep.mubr.msk.bf16.mxu0 %vm538_vm3, %v5589_v1  ;;  %v5590_v15 = vcombine.low %v3814_v23, %v3818_v7  ;;  %v1591_v29 = vrot.slane %v1589_v49, 5  ;;  %v1594_v38 = vshrl.u32 %v5351_v63, 16  ;;  %v1597_v8 = vshll.u32 %v5351_v63, 16  ;;  %v5391_v63 = vld [vmem:[%s8026_s3 + $0x12] sm:$0x3] }
  0xa1   : > { %6409 = vmatprep.subr.msk.bf16.mxu0 %vm551_vm0, %v5628_v28  ;;  %v1586_v47 = vor.u32 %v1585_v2, %v1582_v54  ;;  %v1603_v40 = vshll.u32 %v7499_v39, 16  ;;  %v1608_v59 = vshrl.u32 %v5353_v25, 16  ;;  %v1611_v50 = vshll.u32 %v5353_v25, 16  ;;  %v6479_v23 = vld [vmem:[%s7171_s18 + $0x18] ss:$8 sps:$4 sm:$0xff]  }
  0xa2   : > { %v1596_v35 = vrot.slane %v1594_v38, 4  ;;  %v1599_v36 = vrot.slane %v1597_v8, 5  ;;  %v1617_v18 = vshll.u32 %v7507_v6, 16  ;;  %v1622_v60 = vshrl.u32 %v5355_v26, 16  ;;  %v5371_v38 = vld [vmem:[%s6667_s13 + $0x38] sm:$0xe] }
  0xa3   : > { %v1587_v21 = vrot.slane %v1586_v47, 4  ;;  %v1605_v62 = vrot.slane %v1603_v40, 5  ;;  %v1610_v17 = vrot.slane %v1608_v59, 4  ;;  %v1613_v44 = vrot.slane %v1611_v50, 5  ;;  %v5372_v50 = vld [vmem:[%s6667_s13 + $0x40] sm:$0xe] }
  0xa4   : > { %v1600_v48 = vor.u32 %v1599_v36, %v1596_v35  ;;  %v1624_v55 = vrot.slane %v1622_v60, 4  ;;  %v1625_v9 = vshll.u32 %v5355_v26, 16  ;;  %v1619_v19 = vrot.slane %v1617_v18, 5  ;;  %v5373_v35 = vld [vmem:[%s6667_s13 + $0x48] sm:$0xe] }
  0xa5   : > { %5979 = vmatmul.mubr.msk.bf16.vlgmr.msra.gmra.mrb[0].mxu1 %vm538_vm3, %v5359_v52  ;;  %v1592_v41 = vsel %vm6739_vm4, %v1587_v21, %v1591_v29  ;;  %v1614_v51 = vor.u32 %v1613_v44, %v1610_v17  ;;  %v1631_v16 = vshll.u32 %v7529_v34, 16  ;;  %v5374_v57 = vrot.slane %v5366_v13, 9  ;;  %v7581_v21 = vld [vmem:[%s7171_s18 + $0xc] sm:$0x1]  ;;  %v5614_v13 = vld [vmem:[%s7171_s18 + $0x10] sm:$0xf] }
  0xa6   : > { %5987 = vmatpush3.bf16.msra.mxu1 %v7476_v4  ;;  %v1601_v0 = vrot.slane %v1600_v48, 4  ;;  %v1627_v12 = vrot.slane %v1625_v9, 5  ;;  %v1763_v4 = vrot.slane %v7428_v30, 5  ;;  %v5375_v33 = vrot.slane %v5367_v11, 9 }
  0xa7   : > { %6113 = vmatmul.mubr.msk.bf16.gmra.mrb[4].mxu0 %vm538_vm3, %v5590_v15  ;;  %6395 = vmatprep.subr.msk.bf16.mxu1 %vm551_vm0, %v5391_v63  ;;  %v1615_v53 = vrot.slane %v1614_v51, 4  ;;  %v1633_v25 = vrot.slane %v1631_v16, 5  ;;  %v1767_v31 = vrot.slane %v7443_v58, 5  ;;  %v5376_v30 = vrot.slane %v5368_v56, 9  ;;  %v5370_v15 = vld [vmem:[%s6667_s13 + $0x30] sm:$0xe] }
  0xa8   : > { %6118 = vmatprep.mubr.msk.bf16.mxu0 %vm538_vm3, %v6478_v32  ;;  %v1606_v45 = vsel %vm6739_vm4, %v1601_v0, %v1605_v62  ;;  %v1628_v27 = vor.u32 %v1627_v12, %v1624_v55  ;;  %v1764_v24 = vsel %vm6839_vm7, %v5374_v57, %v1763_v4  ;;  %v4195_v49 = vsel %vm551_vm0, %v5628_v28, 0  ;;  %v6480_v28 = vld [vmem:[%s7171_s18 + $0x28] ss:$8 sps:$4 sm:$0xff]   ;;  %v7591_v55 = vld [vmem:[%s7171_s18 + $0x14] sm:$0x1] }
  0xa9   : > { %v5360_v1 = vcombine.low %v1592_v41, %v1606_v45  ;;  %v1768_v26 = vsel %vm6839_vm7, %v5375_v33, %v1767_v31  ;;  %v1771_v52 = vrot.slane %v7452_v20, 5  ;;  %v1620_v58 = vsel %vm6739_vm4, %v1615_v53, %v1619_v19  ;;  %v5612_v32 = vld [vmem:[%s7171_s18 + $0x8] sm:$0xf]  ;;  %v5616_v16 = vld [vmem:[%s7171_s18 + $0x18] sm:$0xf] }
  0xaa   : > { %v1629_v7 = vrot.slane %v1628_v27, 4  ;;  %v5377_v54 = vrot.slane %v5369_v14, 9  ;;  %v1775_v2 = vrot.slane %v7464_v5, 5  ;;  %v5383_v29 = vcombine.low %v1764_v24, %v1768_v26  ;;  %v7603_v57 = vld [vmem:[%s7171_s18 + $0x1c] sm:$0x1] }
  0xab   : > { %5982 = vmatprep.mubr.msk.bf16.mxu1 %vm538_vm3, %v5360_v1  ;;  %v5378_v8 = vrot.slane %v5370_v15, 9  ;;  %v1779_v20 = vrot.slane %v7491_v22, 5  ;;  %v1772_v40 = vsel %vm6839_vm7, %v5376_v30, %v1771_v52  ;;  %v5379_v59 = vrot.slane %v5371_v38, 9  ;;  %v5618_v33 = vld [vmem:[%s7171_s18 + $0x20] sm:$0xf] }
  0xac   : > { %v1634_v47 = vsel %vm6739_vm4, %v1629_v7, %v1633_v25  ;;  %v1783_v5 = vrot.slane %v7499_v39, 5  ;;  %v1776_v18 = vsel %vm6839_vm7, %v5377_v54, %v1775_v2  ;;  %v1938_v60 = vsel %vm551_vm0, %v5391_v63, 0  ;;  %v7608_v27 = vld [vmem:[%s7171_s18 + $0x24] sm:$0x1] }
  0xad   : > { %v5361_v36 = vcombine.low %v1620_v58, %v1634_v47  ;;  %v1780_v22 = vsel %vm6839_vm7, %v5378_v8, %v1779_v20  ;;  %v5380_v62 = vrot.slane %v5372_v50, 9  ;;  %v1787_v17 = vrot.slane %v7507_v6, 5  ;;  %v6481_v6 = vld [vmem:[%s7171_s18 + $0x38] ss:$8 sps:$4 sm:$0xff]  }
  0xae   : > { %v1784_v39 = vsel %vm6839_vm7, %v5379_v59, %v1783_v5  ;;  %v5381_v44 = vrot.slane %v5373_v35, 9  ;;  %v1791_v48 = vrot.slane %v7529_v34, 5  ;;  %v4057_v9 = vshrl.u32 %v5612_v32, 16  ;;  %v5653_v34 = vld [vmem:[%s8026_s3 + $0x2e] sm:$0x3] }
  0xaf   : > { %6119 = vmatmul.mubr.msk.bf16.vlgmr.msra.gmra.mrb[0].mxu0 %vm538_vm3, %v6479_v23  ;;  %5983 = vmatmul.mubr.msk.bf16.gmra.mrb[4].mxu1 %vm538_vm3, %v5361_v36  ;;  %v4060_v11 = vshll.u32 %v5612_v32, 16  ;;  %v4066_v56 = vshll.u32 %v7581_v21, 16  ;;  %v5384_v41 = vcombine.low %v1772_v40, %v1776_v18  ;;  %v4071_v51 = vshrl.u32 %v5614_v13, 16  ;;  %v5400_v35 = vld [vmem:[%s8026_s3 + $0x14] sm:$0x3] }
  0xb0   : > { %6127 = vmatpush3.bf16.msra.mxu0 %v4195_v49  ;;  %5988 = vmatprep.mubr.msk.bf16.mxu1 %vm538_vm3, %v5383_v29  ;;  %v4074_v19 = vshll.u32 %v5614_v13, 16  ;;  %v5385_v14 = vcombine.low %v1780_v22, %v1784_v39  ;;  %v4059_v63 = vrot.slane %v4057_v9, 4  ;;  %v4080_v25 = vshll.u32 %v7591_v55, 16  ;;  %v5620_v36 = vld [vmem:[%s7171_s18 + $0x28] sm:$0xf] }
  0xb1   : > { %6122 = vmatprep.mubr.msk.bf16.mxu0 %vm538_vm3, %v6480_v28  ;;  %v4062_v0 = vrot.slane %v4060_v11, 5  ;;  %v4068_v12 = vrot.slane %v4066_v56, 5  ;;  %6410 = vmatprep.subr.msk.bf16.mxu0 %vm551_vm0, %v5653_v34  ;;  %v4073_v4 = vrot.slane %v4071_v51, 4  ;;  %v4085_v31 = vshrl.u32 %v5616_v16, 16  ;;  %v6482_v13 = vld [vmem:[%s6724_s29] ss:$8 sps:$4 sm:$0xff]  }
  0xb2   : > { %v4076_v53 = vrot.slane %v4074_v19, 5  ;;  %v4088_v24 = vshll.u32 %v5616_v16, 16  ;;  %v4094_v30 = vshll.u32 %v7603_v57, 16  ;;  %v4099_v1 = vshrl.u32 %v5618_v33, 16 }
  0xb3   : > { %v4063_v45 = vor.u32 %v4062_v0, %v4059_v63  ;;  %v4082_v49 = vrot.slane %v4080_v25, 5  ;;  %v4087_v26 = vrot.slane %v4085_v31, 4  ;;  %v4102_v52 = vshll.u32 %v5618_v33, 16  ;;  %v5626_v31 = vld [vmem:[%s7171_s18 + $0x40] sm:$0xf] }
  0xb4   : > { %v4077_v23 = vor.u32 %v4076_v53, %v4073_v4  ;;  %v1788_v58 = vsel %vm6839_vm7, %v5380_v62, %v1787_v17  ;;  %v4090_v54 = vrot.slane %v4088_v24, 5  ;;  %v4101_v2 = vrot.slane %v4099_v1, 4  ;;  %v7634_v62 = vld [vmem:[%s7171_s18 + $0x2c] sm:$0x1]  ;;  %v5622_v17 = vld [vmem:[%s7171_s18 + $0x30] sm:$0xf] }
  0xb5   : > { %v4064_v7 = vrot.slane %v4063_v45, 4  ;;  %v1792_v15 = vsel %vm6839_vm7, %v5381_v44, %v1791_v48  ;;  %v4104_v28 = vrot.slane %v4102_v52, 5  ;;  %v4108_v38 = vshll.u32 %v7608_v27, 16  ;;  %v7639_v48 = vld [vmem:[%s7171_s18 + $0x34] sm:$0x1] }
  0xb6   : > { %v4078_v29 = vrot.slane %v4077_v23, 4  ;;  %v4091_v20 = vor.u32 %v4090_v54, %v4087_v26  ;;  %v4096_v47 = vrot.slane %v4094_v30, 5  ;;  %v4353_v40 = vsel %vm551_vm0, %v5653_v34, 0  ;;  %v5624_v34 = vld [vmem:[%s7171_s18 + $0x38] sm:$0xf] }
  0xb7   : > { %6123 = vmatmul.mubr.msk.bf16.gmra.mrb[4].mxu0 %vm538_vm3, %v6481_v6  ;;  %5989 = vmatmul.mubr.msk.bf16.vlgmr.msra.gmra.mrb[0].mxu1 %vm538_vm3, %v5384_v41  ;;  %v4069_v8 = vsel %vm6739_vm4, %v4064_v7, %v4068_v12  ;;  %v4105_v5 = vor.u32 %v4104_v28, %v4101_v2  ;;  %v4110_v50 = vrot.slane %v4108_v38, 5  ;;  %v4296_v18 = vrot.slane %v7581_v21, 5  ;;  %v7650_v12 = vld [vmem:[%s7171_s18 + $0x3c] sm:$0x1]  ;;  %v7654_v24 = vld [vmem:[%s7171_s18 + $0x44] sm:$0x1] }
  0xb8   : > { %5997 = vmatpush3.bf16.msra.mxu1 %v1938_v60  ;;  %5992 = vmatprep.mubr.msk.bf16.mxu1 %vm538_vm3, %v5385_v14  ;;  %v4083_v59 = vsel %vm6739_vm4, %v4078_v29, %v4082_v49  ;;  %v5386_v22 = vcombine.low %v1788_v58, %v1792_v15  ;;  %v4092_v39 = vrot.slane %v4091_v20, 4  ;;  %v7631_v60 = vsel %vm551_vm0, %v5400_v35, 0  ;;  %v6483_v29 = vld [vmem:[%s6724_s29 + $0x10] ss:$8 sps:$4 sm:$0xff]  }
  0xb9   : > { %v5629_v32 = vcombine.low %v4069_v8, %v4083_v59  ;;  %6396 = vmatprep.subr.msk.bf16.mxu1 %vm551_vm0, %v5400_v35  ;;  %v4106_v44 = vrot.slane %v4105_v5, 4  ;;  %v4113_v9 = vshrl.u32 %v5620_v36, 16  ;;  %v4116_v11 = vshll.u32 %v5620_v36, 16  ;;  %v5637_v35 = vld [vmem:[%s7171_s18 + $0x8] sm:$0xe] }
  0xba   : > { %v4122_v56 = vshll.u32 %v7634_v62, 16  ;;  %v4097_v41 = vsel %vm6739_vm4, %v4092_v39, %v4096_v47  ;;  %v4127_v6 = vshrl.u32 %v5622_v17, 16  ;;  %v4130_v51 = vshll.u32 %v5622_v17, 16  ;;  %v5638_v36 = vld [vmem:[%s7171_s18 + $0x10] sm:$0xe] }
  0xbb   : > { %6128 = vmatprep.mubr.msk.bf16.mxu0 %vm538_vm3, %v5629_v32  ;;  %v4136_v19 = vshll.u32 %v7639_v48, 16  ;;  %v4111_v16 = vsel %vm6739_vm4, %v4106_v44, %v4110_v50  ;;  %v4115_v14 = vrot.slane %v4113_v9, 4  ;;  %v4118_v63 = vrot.slane %v4116_v11, 5  ;;  %v5670_v9 = vld [vmem:[%s8026_s3 + $0x30] sm:$0x3] }
  0xbc   : > { %v4124_v0 = vrot.slane %v4122_v56, 5  ;;  %v5630_v4 = vcombine.low %v4097_v41, %v4111_v16  ;;  %v4129_v53 = vrot.slane %v4127_v6, 4  ;;  %v4132_v25 = vrot.slane %v4130_v51, 5  ;;  %v5639_v56 = vld [vmem:[%s7171_s18 + $0x18] sm:$0xe] }
  0xbd   : > { %v4138_v33 = vrot.slane %v4136_v19, 5  ;;  %v4119_v45 = vor.u32 %v4118_v63, %v4115_v14  ;;  %v4141_v30 = vshrl.u32 %v5624_v34, 16  ;;  %v4144_v1 = vshll.u32 %v5624_v34, 16  ;;  %v5640_v41 = vld [vmem:[%s7171_s18 + $0x20] sm:$0xe] }
  0xbe   : > { %v4150_v23 = vshll.u32 %v7650_v12, 16  ;;  %v4133_v49 = vor.u32 %v4132_v25, %v4129_v53  ;;  %v4155_v26 = vshrl.u32 %v5626_v31, 16  ;;  %v4158_v52 = vshll.u32 %v5626_v31, 16  ;;  %v2013_v34 = vld [vmem:[%s6724_s29] sm:$0xf] }
  0xbf   : > { %5993 = vmatmul.mubr.msk.bf16.gmra.mrb[4].mxu1 %vm538_vm3, %v5386_v22  ;;  %6129 = vmatmul.mubr.msk.bf16.vlgmr.msra.gmra.mrb[0].mxu0 %vm538_vm3, %v5630_v4  ;;  %v4164_v58 = vshll.u32 %v7654_v24, 16  ;;  %v4120_v7 = vrot.slane %v4119_v45, 4  ;;  %v4143_v54 = vrot.slane %v4141_v30, 4  ;;  %v4146_v2 = vrot.slane %v4144_v1, 5  ;;  %v7689_v16 = vld [vmem:[%s6724_s29 + $0x4] sm:$0x1] }
  0xc0   : > { %6137 = vmatpush3.bf16.msra.mxu0 %v4353_v40  ;;  %5998 = vmatprep.mubr.msk.bf16.mxu1 %vm538_vm3, %v6482_v13  ;;  %v4152_v15 = vrot.slane %v4150_v23, 5  ;;  %v4134_v28 = vrot.slane %v4133_v49, 4  ;;  %v4157_v38 = vrot.slane %v4155_v26, 4  ;;  %v4160_v8 = vrot.slane %v4158_v52, 5  ;;  %v6484_v40 = vld [vmem:[%s6724_s29 + $0x20] ss:$8 sps:$4 sm:$0xff]  }
  0xc1   : > { %v4166_v20 = vrot.slane %v4164_v58, 5  ;;  %v4125_v47 = vsel %vm6739_vm4, %v4120_v7, %v4124_v0  ;;  %v4147_v59 = vor.u32 %v4146_v2, %v4143_v54  ;;  %v4300_v22 = vrot.slane %v7591_v55, 5  ;;  %6411 = vmatprep.subr.msk.bf16.mxu0 %vm551_vm0, %v5670_v9  ;;  %v7699_v0 = vld [vmem:[%s6724_s29 + $0xc] sm:$0x1]  ;;  %v2017_v31 = vld [vmem:[%s6724_s29 + $0x10] sm:$0xf] }
  0xc2   : > { %v4139_v5 = vsel %vm6739_vm4, %v4134_v28, %v4138_v33  ;;  %v4161_v50 = vor.u32 %v4160_v8, %v4157_v38  ;;  %v4304_v32 = vrot.slane %v7603_v57, 5  ;;  %v5645_v44 = vrot.slane %v5637_v35, 9  ;;  %v7707_v45 = vld [vmem:[%s6724_s29 + $0x14] sm:$0x1]  ;;  %v6485_v30 = vld [vmem:[%s6724_s29 + $0x30] ss:$8 sps:$4 sm:$0xff]  }
  0xc3   : > { %v5631_v39 = vcombine.low %v4125_v47, %v4139_v5  ;;  %v4148_v17 = vrot.slane %v4147_v59, 4  ;;  %v5646_v13 = vrot.slane %v5638_v36, 9  ;;  %v4308_v55 = vrot.slane %v7608_v27, 5  ;;  %v2019_v26 = vld [vmem:[%s6724_s29 + $0x18] sm:$0xf] }
  0xc4   : > { %v4162_v11 = vrot.slane %v4161_v50, 4  ;;  %v4297_v6 = vsel %vm6839_vm7, %v5645_v44, %v4296_v18  ;;  %v5647_v19 = vrot.slane %v5639_v56, 9  ;;  %v5648_v21 = vrot.slane %v5640_v41, 9  ;;  %v2015_v18 = vld [vmem:[%s6724_s29 + $0x8] sm:$0xf] }
  0xc5   : > { %6132 = vmatprep.mubr.msk.bf16.mxu0 %vm538_vm3, %v5631_v39  ;;  %v4153_v57 = vsel %vm6739_vm4, %v4148_v17, %v4152_v15  ;;  %v4301_v51 = vsel %vm6839_vm7, %v5646_v13, %v4300_v22  ;;  %v7695_v63 = vsel %vm551_vm0, %v5670_v9, 0  ;;  %v2030_v25 = vshrl.u32 %v2013_v34, 16  ;;  %v7717_v2 = vld [vmem:[%s6724_s29 + $0x1c] sm:$0x1]  ;;  %v5417_v8 = vld [vmem:[%s8026_s3 + $0x16] sm:$0x3] }
  0xc6   : > { %v4167_v27 = vsel %vm6739_vm4, %v4162_v11, %v4166_v20  ;;  %v5654_v14 = vcombine.low %v4297_v6, %v4301_v51  ;;  %v4305_v53 = vsel %vm6839_vm7, %v5647_v19, %v4304_v32  ;;  %v2033_v33 = vshll.u32 %v2013_v34, 16  ;;  %v5641_v22 = vld [vmem:[%s7171_s18 + $0x28] sm:$0xe]  ;;  %v5642_v13 = vld [vmem:[%s7171_s18 + $0x30] sm:$0xe] }
  0xc7   : > { %5999 = vmatmul.mubr.msk.bf16.vlgmr.msra.gmra.mrb[0].mxu1 %vm538_vm3, %v6483_v29  ;;  %v5632_v4 = vcombine.low %v4153_v57, %v4167_v27  ;;  %v4309_v1 = vsel %vm6839_vm7, %v5648_v21, %v4308_v55  ;;  %v2039_v23 = vshll.u32 %v7689_v16, 16  ;;  %v2044_v49 = vshrl.u32 %v2015_v18, 16  ;;  %v5643_v55 = vld [vmem:[%s7171_s18 + $0x38] sm:$0xe]  ;;  %v5644_v34 = vld [vmem:[%s7171_s18 + $0x40] sm:$0xe] }
  0xc8   : > { %6007 = vmatpush3.bf16.msra.mxu1 %v7631_v60  ;;  %6002 = vmatprep.mubr.msk.bf16.mxu1 %vm538_vm3, %v6484_v40  ;;  %v2047_v60 = vshll.u32 %v2015_v18, 16  ;;  %v5655_v52 = vcombine.low %v4305_v53, %v4309_v1  ;;  %v2032_v58 = vrot.slane %v2030_v25, 4  ;;  %v2035_v7 = vrot.slane %v2033_v33, 5  ;;  %v7739_v53 = vld [vmem:[%s6724_s29 + $0x24] sm:$0x1] }
  0xc9   : > { %6133 = vmatmul.mubr.msk.bf16.gmra.mrb[4].mxu0 %vm538_vm3, %v5632_v4  ;;  %v2053_v54 = vshll.u32 %v7699_v0, 16  ;;  %v2041_v15 = vrot.slane %v2039_v23, 5  ;;  %v2046_v29 = vrot.slane %v2044_v49, 4  ;;  %v2058_v38 = vshrl.u32 %v2017_v31, 16  ;;  %6397 = vmatprep.subr.msk.bf16.mxu1 %vm551_vm0, %v5417_v8  ;;  %v2021_v4 = vld [vmem:[%s6724_s29 + $0x20] sm:$0xf] }
  0xca   : > { %6138 = vmatprep.mubr.msk.bf16.mxu0 %vm538_vm3, %v5654_v14  ;;  %v2049_v28 = vrot.slane %v2047_v60, 5  ;;  %v2036_v20 = vor.u32 %v2035_v7, %v2032_v58  ;;  %v2061_v59 = vshll.u32 %v2017_v31, 16  ;;  %v2067_v40 = vshll.u32 %v7707_v45, 16  ;;  %v2023_v1 = vld [vmem:[%s6724_s29 + $0x28] sm:$0xf] }
  0xcb   : > { %v2055_v47 = vrot.slane %v2053_v54, 5  ;;  %v2060_v50 = vrot.slane %v2058_v38, 4  ;;  %v2072_v35 = vshrl.u32 %v2019_v26, 16  ;;  %v2075_v36 = vshll.u32 %v2019_v26, 16  ;;  %v7749_v26 = vld [vmem:[%s6724_s29 + $0x2c] sm:$0x1] }
  0xcc   : > { %v2050_v5 = vor.u32 %v2049_v28, %v2046_v29  ;;  %v2037_v32 = vrot.slane %v2036_v20, 4  ;;  %v2063_v39 = vrot.slane %v2061_v59, 5  ;;  %v2069_v17 = vrot.slane %v2067_v40, 5  ;;  %v2025_v7 = vld [vmem:[%s6724_s29 + $0x30] sm:$0xf] }
  0xcd   : > { %v2081_v44 = vshll.u32 %v7717_v2, 16  ;;  %v2074_v11 = vrot.slane %v2072_v35, 4  ;;  %v2077_v56 = vrot.slane %v2075_v36, 5  ;;  %v2326_v41 = vsel %vm551_vm0, %v5417_v8, 0  ;;  %v7759_v54 = vld [vmem:[%s6724_s29 + $0x34] sm:$0x1] }
  0xce   : > { %v2051_v9 = vrot.slane %v2050_v5, 4  ;;  %v2042_v57 = vsel %vm6739_vm4, %v2037_v32, %v2041_v15  ;;  %v2064_v6 = vor.u32 %v2063_v39, %v2060_v50  ;;  %v5649_v19 = vrot.slane %v5641_v22, 9  ;;  %v2027_v38 = vld [vmem:[%s6724_s29 + $0x38] sm:$0xf]  ;;  %v5695_v40 = vld [vmem:[%s8026_s3 + $0x32] sm:$0x3] }
  0xcf   : > { %6003 = vmatmul.mubr.msk.bf16.gmra.mrb[4].mxu1 %vm538_vm3, %v6485_v30  ;;  %v2083_v51 = vrot.slane %v2081_v44, 5  ;;  %v2078_v14 = vor.u32 %v2077_v56, %v2074_v11  ;;  %v4312_v21 = vrot.slane %v7634_v62, 5  ;;  %v5650_v18 = vrot.slane %v5642_v13, 9  ;;  %v6486_v59 = vld [vmem:[%s7171_s18 + $0x10] ss:$8 sps:$4 sm:$0xff]  }
  0xd0   : > { %v2056_v27 = vsel %vm6739_vm4, %v2051_v9, %v2055_v47  ;;  %v2065_v33 = vrot.slane %v2064_v6, 4  ;;  %v4316_v31 = vrot.slane %v7639_v48, 5  ;;  %v5651_v30 = vrot.slane %v5643_v55, 9  ;;  %v7778_v11 = vld [vmem:[%s6724_s29 + $0x3c] sm:$0x1] }
  0xd1   : > { %6139 = vmatmul.mubr.msk.bf16.vlgmr.msra.gmra.mrb[0].mxu0 %vm538_vm3, %v5655_v52  ;;  %v5401_v25 = vcombine.low %v2042_v57, %v2056_v27  ;;  %v2079_v23 = vrot.slane %v2078_v14, 4  ;;  %v4313_v62 = vsel %vm6839_vm7, %v5649_v19, %v4312_v21  ;;  %v4320_v49 = vrot.slane %v7650_v12, 5  ;;  %v2243_v19 = vld [vmem:[%s6724_s29] sm:$0xe]  ;;  %v2244_v21 = vld [vmem:[%s6724_s29 + $0x8] sm:$0xe] }
  0xd2   : > { %6147 = vmatpush3.bf16.msra.mxu0 %v7695_v63  ;;  %v5652_v60 = vrot.slane %v5644_v34, 9  ;;  %v2070_v48 = vsel %vm6739_vm4, %v2065_v33, %v2069_v17  ;;  %v4317_v52 = vsel %vm6839_vm7, %v5650_v18, %v4316_v31  ;;  %v4324_v63 = vrot.slane %v7654_v24, 5  ;;  %v6487_v33 = vld [vmem:[%s7171_s18 + $0x20] ss:$8 sps:$4 sm:$0xff]  }
  0xd3   : > { %6008 = vmatprep.mubr.msk.bf16.mxu1 %vm538_vm3, %v5401_v25  ;;  %v2086_v58 = vshrl.u32 %v2021_v4, 16  ;;  %v2084_v12 = vsel %vm6739_vm4, %v2079_v23, %v2083_v51  ;;  %v5656_v15 = vcombine.low %v4313_v62, %v4317_v52  ;;  %v4321_v29 = vsel %vm6839_vm7, %v5651_v30, %v4320_v49  ;;  %6412 = vmatprep.subr.msk.bf16.mxu0 %vm551_vm0, %v5695_v40  ;;  %v2245_v30 = vld [vmem:[%s6724_s29 + $0x10] sm:$0xe] }
  0xd4   : > { %v2089_v28 = vshll.u32 %v2021_v4, 16  ;;  %v5402_v8 = vcombine.low %v2070_v48, %v2084_v12  ;;  %v4325_v20 = vsel %vm6839_vm7, %v5652_v60, %v4324_v63  ;;  %v2095_v24 = vshll.u32 %v7739_v53, 16  ;;  %v2246_v60 = vld [vmem:[%s6724_s29 + $0x18] sm:$0xe] }
  0xd5   : > { %v2088_v47 = vrot.slane %v2086_v58, 4  ;;  %6142 = vmatprep.mubr.msk.bf16.mxu0 %vm538_vm3, %v5656_v15  ;;  %v5657_v5 = vcombine.low %v4321_v29, %v4325_v20  ;;  %v2100_v35 = vshrl.u32 %v2023_v1, 16  ;;  %v2103_v36 = vshll.u32 %v2023_v1, 16 }
  0xd6   : > { %v2091_v50 = vrot.slane %v2089_v28, 5  ;;  %v2097_v22 = vrot.slane %v2095_v24, 5  ;;  %v2109_v32 = vshll.u32 %v7749_v26, 16  ;;  %v2114_v39 = vshrl.u32 %v2025_v7, 16 }
  0xd7   : > { %6009 = vmatmul.mubr.msk.bf16.vlgmr.msra.gmra.mrb[0].mxu1 %vm538_vm3, %v5402_v8  ;;  %v2117_v17 = vshll.u32 %v2025_v7, 16  ;;  %v2102_v13 = vrot.slane %v2100_v35, 4  ;;  %v2105_v9 = vrot.slane %v2103_v36, 5  ;;  %v2123_v56 = vshll.u32 %v7759_v54, 16  ;;  %v5434_v7 = vld [vmem:[%s8026_s3 + $0x18] sm:$0x3] }
  0xd8   : > { %6017 = vmatpush3.bf16.msra.mxu1 %v2326_v41  ;;  %v2092_v44 = vor.u32 %v2091_v50, %v2088_v47  ;;  %v2111_v55 = vrot.slane %v2109_v32, 5  ;;  %v2116_v57 = vrot.slane %v2114_v39, 4  ;;  %v2128_v51 = vshrl.u32 %v2027_v38, 16  ;;  %v6488_v47 = vld [vmem:[%s7171_s18 + $0x30] ss:$8 sps:$4 sm:$0xff]  }
  0xd9   : > { %6143 = vmatmul.mubr.msk.bf16.gmra.mrb[4].mxu0 %vm538_vm3, %v5657_v5  ;;  %v2119_v6 = vrot.slane %v2117_v17, 5  ;;  %v2106_v41 = vor.u32 %v2105_v9, %v2102_v13  ;;  %v2125_v27 = vrot.slane %v2123_v56, 5  ;;  %v2131_v14 = vshll.u32 %v2027_v38, 16  ;;  %6398 = vmatprep.subr.msk.bf16.mxu1 %vm551_vm0, %v5434_v7  ;;  %v2247_v35 = vld [vmem:[%s6724_s29 + $0x20] sm:$0xe] }
  0xda   : > { %v2093_v34 = vrot.slane %v2092_v44, 4  ;;  %6148 = vmatprep.mubr.msk.bf16.mxu0 %vm538_vm3, %v6486_v59  ;;  %v2130_v4 = vrot.slane %v2128_v51, 4  ;;  %v2137_v25 = vshll.u32 %v7778_v11, 16  ;;  %v4702_v31 = vsel %vm551_vm0, %v5695_v40, 0  ;;  %v6489_v17 = vld [vmem:[%s7171_s18 + $0x40] ss:$8 sps:$4 sm:$0xff]  }
  0xdb   : > { %v2120_v18 = vor.u32 %v2119_v6, %v2116_v57  ;;  %v2107_v23 = vrot.slane %v2106_v41, 4  ;;  %v2133_v62 = vrot.slane %v2131_v14, 5  ;;  %v5409_v49 = vrot.slane %v2243_v19, 9  ;;  %v2250_v13 = vld [vmem:[%s6724_s29 + $0x38] sm:$0xe] }
  0xdc   : > { %v2098_v1 = vsel %vm6739_vm4, %v2093_v34, %v2097_v22  ;;  %v2139_v52 = vrot.slane %v2137_v25, 5  ;;  %v2269_v63 = vrot.slane %v7689_v16, 5  ;;  %v5410_v58 = vrot.slane %v2244_v21, 9  ;;  %v2249_v22 = vld [vmem:[%s6724_s29 + $0x30] sm:$0xe] }
  0xdd   : > { %v2121_v48 = vrot.slane %v2120_v18, 4  ;;  %v2112_v12 = vsel %vm6739_vm4, %v2107_v23, %v2111_v55  ;;  %v2134_v15 = vor.u32 %v2133_v62, %v2130_v4  ;;  %v2273_v29 = vrot.slane %v7699_v0, 5  ;;  %v5679_v9 = vld [vmem:[%s7171_s18 + $0x10] sm:$0xf]  ;;  %v7839_v6 = vld [vmem:[%s7171_s18 + $0x14] sm:$0x1] }
  0xde   : > { %v5411_v28 = vrot.slane %v2245_v30, 9  ;;  %v5403_v38 = vcombine.low %v2098_v1, %v2112_v12  ;;  %v2270_v16 = vsel %vm6839_vm7, %v5409_v49, %v2269_v63  ;;  %v2277_v20 = vrot.slane %v7707_v45, 5  ;;  %v5681_v19 = vld [vmem:[%s7171_s18 + $0x18] sm:$0xf]  ;;  %v7846_v34 = vld [vmem:[%s7171_s18 + $0x1c] sm:$0x1] }
  0xdf   : > { %v2126_v8 = vsel %vm6739_vm4, %v2121_v48, %v2125_v27  ;;  %v2135_v24 = vrot.slane %v2134_v15, 4  ;;  %v2274_v59 = vsel %vm6839_vm7, %v5410_v58, %v2273_v29  ;;  %v5412_v0 = vrot.slane %v2246_v60, 9  ;;  %v5720_v18 = vld [vmem:[%s8026_s3 + $0x34] sm:$0x3]  ;;  %v5683_v4 = vld [vmem:[%s7171_s18 + $0x20] sm:$0xf] }
  0xe0   : > { %v2281_v40 = vrot.slane %v7717_v2, 5  ;;  %v7811_v5 = vrot.slane %v2630_v37, 5  ;;  %v7815_v50 = vrot.slane %v2644_v10, 5  ;;  %6012 = vmatprep.mubr.msk.bf16.mxu1 %vm538_vm3, %v5403_v38  ;;  %v5418_v45 = vcombine.low %v2270_v16, %v2274_v59  ;;  %v2248_v37 = vld [vmem:[%s6724_s29 + $0x28] sm:$0xe] }
  0xe1   : > { %6149 = vmatmul.mubr.msk.bf16.vlgmr.msra.gmra.mrb[0].mxu0 %vm538_vm3, %v6487_v33  ;;  %v2285_v36 = vrot.slane %v7739_v53, 5  ;;  %v2140_v46 = vsel %vm6739_vm4, %v2135_v24, %v2139_v52  ;;  %v2278_v42 = vsel %vm6839_vm7, %v5411_v28, %v2277_v20  ;;  %v5413_v10 = vrot.slane %v2247_v35, 9  ;;  %v7857_v1 = vld [vmem:[%s7171_s18 + $0x24] sm:$0x1]  ;;  %v5685_v49 = vld [vmem:[%s7171_s18 + $0x28] sm:$0xf] }
  0xe2   : > { %6157 = vmatpush3.bf16.msra.mxu0 %v4702_v31  ;;  %6152 = vmatprep.mubr.msk.bf16.mxu0 %vm538_vm3, %v6488_v47  ;;  %v2289_v2 = vrot.slane %v7749_v26, 5  ;;  %v5404_v32 = vcombine.low %v2126_v8, %v2140_v46  ;;  %v2282_v53 = vsel %vm6839_vm7, %v5412_v0, %v2281_v40  ;;  %v2445_v39 = vsel %vm551_vm0, %v5434_v7, 0  ;;  %v7867_v63 = vld [vmem:[%s7171_s18 + $0x2c] sm:$0x1] }
  0xe3   : > { %v5414_v44 = vrot.slane %v2248_v37, 9  ;;  %v2286_v56 = vsel %vm6839_vm7, %v5413_v10, %v2285_v36  ;;  %v5415_v55 = vrot.slane %v2249_v22, 9  ;;  %v2293_v26 = vrot.slane %v7759_v54, 5  ;;  %6413 = vmatprep.subr.msk.bf16.mxu0 %vm551_vm0, %v5720_v18  ;;  %v5687_v10 = vld [vmem:[%s7171_s18 + $0x30] sm:$0xf] }
  0xe4   : > { %v5416_v57 = vrot.slane %v2250_v13, 9  ;;  %6013 = vmatmul.mubr.msk.bf16.gmra.mrb[4].mxu1 %vm538_vm3, %v5404_v32  ;;  %v4564_v41 = vshrl.u32 %v5679_v9, 16  ;;  %v4567_v27 = vshll.u32 %v5679_v9, 16  ;;  %v5419_v14 = vcombine.low %v2278_v42, %v2282_v53  ;;  %v6494_v53 = vld [vmem:[%s8026_s3 + $0x1a] sm:$0x3] }
  0xe5   : > { %v2290_v51 = vsel %vm6839_vm7, %v5414_v44, %v2289_v2  ;;  %6018 = vmatprep.mubr.msk.bf16.mxu1 %vm538_vm3, %v5418_v45  ;;  %v2297_v54 = vrot.slane %v7778_v11, 5  ;;  %v4573_v21 = vshll.u32 %v7839_v6, 16  ;;  %v4578_v30 = vshrl.u32 %v5681_v19, 16  ;;  %v6490_v9 = vld [vmem:[%s6724_s29 + $0x8] ss:$8 sps:$4 sm:$0xff]  }
  0xe6   : > { %v5420_v25 = vcombine.low %v2286_v56, %v2290_v51  ;;  %v4566_v33 = vrot.slane %v4564_v41, 4  ;;  %v4569_v31 = vrot.slane %v4567_v27, 5  ;;  %v7861_v23 = vsel %vm6839_vm7, %v5415_v55, %v2293_v26  ;;  %v7892_v56 = vld [vmem:[%s7171_s18 + $0x3c] sm:$0x1] }
  0xe7   : > { %v4581_v11 = vshll.u32 %v5681_v19, 16  ;;  %v4587_v62 = vshll.u32 %v7846_v34, 16  ;;  %v4592_v60 = vshrl.u32 %v5683_v4, 16  ;;  %v4580_v52 = vrot.slane %v4578_v30, 4 }
  0xe8   : > { %v4570_v48 = vor.u32 %v4569_v31, %v4566_v33  ;;  %v4595_v58 = vshll.u32 %v5683_v4, 16  ;;  %v4601_v7 = vshll.u32 %v7857_v1, 16  ;;  %v4575_v12 = vrot.slane %v4573_v21, 5  ;;  %v5693_v33 = vld [vmem:[%s7171_s18 + $0x48] sm:$0xf] }
  0xe9   : > { %6153 = vmatmul.mubr.msk.bf16.gmra.mrb[4].mxu0 %vm538_vm3, %v6489_v17  ;;  %v4583_v15 = vrot.slane %v4581_v11, 5  ;;  %v4594_v29 = vrot.slane %v4592_v60, 4  ;;  %v4606_v28 = vshrl.u32 %v5685_v49, 16  ;;  %v2298_v38 = vsel %vm6839_vm7, %v5416_v57, %v2297_v54  ;;  %v5689_v17 = vld [vmem:[%s7171_s18 + $0x38] sm:$0xf] }
  0xea   : > { %v4571_v8 = vrot.slane %v4570_v48, 4  ;;  %v4597_v16 = vrot.slane %v4595_v58, 5  ;;  %v4609_v20 = vshll.u32 %v5685_v49, 16  ;;  %v4589_v24 = vrot.slane %v4587_v62, 5  ;;  %v7899_v54 = vld [vmem:[%s7171_s18 + $0x44] sm:$0x1] }
  0xeb   : > { %v4584_v47 = vor.u32 %v4583_v15, %v4580_v52  ;;  %v4608_v59 = vrot.slane %v4606_v28, 4  ;;  %v4615_v0 = vshll.u32 %v7867_v63, 16  ;;  %v4603_v45 = vrot.slane %v4601_v7, 5 }
  0xec   : > { %6019 = vmatmul.mubr.msk.bf16.vlgmr.msra.gmra.mrb[0].mxu1 %vm538_vm3, %v5419_v14  ;;  %v4598_v40 = vor.u32 %v4597_v16, %v4594_v29  ;;  %v4611_v35 = vrot.slane %v4609_v20, 5  ;;  %v4576_v36 = vsel %vm6739_vm4, %v4571_v8, %v4575_v12  ;;  %v4860_v37 = vsel %vm551_vm0, %v5720_v18, 0  ;;  %v5691_v14 = vld [vmem:[%s7171_s18 + $0x40] sm:$0xf] }
  0xed   : > { %6027 = vmatpush3.bf16.msra.mxu1 %v2445_v39  ;;  %6022 = vmatprep.mubr.msk.bf16.mxu1 %vm538_vm3, %v5420_v25  ;;  %v4585_v46 = vrot.slane %v4584_v47, 4  ;;  %v4617_v42 = vrot.slane %v4615_v0, 5  ;;  %v5421_v2 = vcombine.low %v7861_v23, %v2298_v38  ;;  %v7885_v39 = vld [vmem:[%s7171_s18 + $0x34] sm:$0x1]  ;;  %v4620_v44 = vshrl.u32 %v5687_v10, 16 }
  0xee   : > { %v4599_v22 = vrot.slane %v4598_v40, 4  ;;  %v4612_v32 = vor.u32 %v4611_v35, %v4608_v59  ;;  %6400 = vmatprep.subr.msk.bf16.mxu1 %vm551_vm0, %v6494_v53  ;;  %v4623_v55 = vshll.u32 %v5687_v10, 16  ;;  %v4629_v26 = vshll.u32 %v7885_v39, 16  ;;  %v7907_v23 = vld [vmem:[%s7171_s18 + $0x4c] sm:$0x1] }
  0xef   : > { %v4590_v13 = vsel %vm6739_vm4, %v4585_v46, %v4589_v24  ;;  %v4634_v57 = vshrl.u32 %v5689_v17, 16  ;;  %v4622_v27 = vrot.slane %v4620_v44, 4  ;;  %v4637_v25 = vshll.u32 %v5689_v17, 16  ;;  %v6491_v16 = vld [vmem:[%s6724_s29 + $0x18] ss:$8 sps:$4 sm:$0xff]  }
  0xf0   : > { %v5696_v51 = vcombine.low %v4576_v36, %v4590_v13  ;;  %v4604_v19 = vsel %vm6739_vm4, %v4599_v22, %v4603_v45  ;;  %v4613_v41 = vrot.slane %v4612_v32, 4  ;;  %v4625_v21 = vrot.slane %v4623_v55, 5  ;;  %v6492_v45 = vld [vmem:[%s6724_s29 + $0x28] ss:$8 sps:$4 sm:$0xff]   ;;  %v5705_v36 = vld [vmem:[%s7171_s18 + $0x18] sm:$0xe] }
  0xf1   : > { %v4631_v18 = vrot.slane %v4629_v26, 5  ;;  %v4636_v4 = vrot.slane %v4634_v57, 4  ;;  %v4643_v30 = vshll.u32 %v7892_v56, 16  ;;  %v4648_v11 = vshrl.u32 %v5691_v14, 16  ;;  %v5704_v35 = vld [vmem:[%s7171_s18 + $0x10] sm:$0xe] }
  0xf2   : > { %6158 = vmatprep.mubr.msk.bf16.mxu0 %vm538_vm3, %v5696_v51  ;;  %v4618_v31 = vsel %vm6739_vm4, %v4613_v41, %v4617_v42  ;;  %v4651_v62 = vshll.u32 %v5691_v14, 16  ;;  %v4626_v60 = vor.u32 %v4625_v21, %v4622_v27  ;;  %v4639_v48 = vrot.slane %v4637_v25, 5  ;;  %v5707_v17 = vld [vmem:[%s7171_s18 + $0x28] sm:$0xe]  ;;  %v5453_v51 = vld [vmem:[%s6724_s29 + $0x30] sm:$0xf] }
  0xf3   : > { %v5697_v49 = vcombine.low %v4604_v19, %v4618_v31  ;;  %v4657_v52 = vshll.u32 %v7899_v54, 16  ;;  %v4650_v58 = vrot.slane %v4648_v11, 4  ;;  %v4662_v12 = vshrl.u32 %v5693_v33, 16  ;;  %v5451_v13 = vld [vmem:[%s6724_s29 + $0x28] sm:$0xf] }
  0xf4   : > { %6023 = vmatmul.mubr.msk.bf16.gmra.mrb[4].mxu1 %vm538_vm3, %v5421_v2  ;;  %v4653_v7 = vrot.slane %v4651_v62, 5  ;;  %v4803_v15 = vrot.slane %v7839_v6, 5  ;;  %v4627_v29 = vrot.slane %v4626_v60, 4  ;;  %v4640_v28 = vor.u32 %v4639_v48, %v4636_v4  ;;  %v5706_v2 = vld [vmem:[%s7171_s18 + $0x20] sm:$0xe] }
  0xf5   : > { %6159 = vmatmul.mubr.msk.bf16.vlgmr.msra.gmra.mrb[0].mxu0 %vm538_vm3, %v5697_v49  ;;  %6028 = vmatprep.mubr.msk.bf16.mxu1 %vm538_vm3, %v6490_v9  ;;  %v4645_v38 = vrot.slane %v4643_v30, 5  ;;  %v4665_v8 = vshll.u32 %v5693_v33, 16  ;;  %v4659_v47 = vrot.slane %v4657_v52, 5  ;;  %v4664_v24 = vrot.slane %v4662_v12, 4  ;;  %v6495_v25 = vld [vmem:[%s6724_s29 + $0x2c] sm:$0x1] }
  0xf6   : > { %6167 = vmatpush3.bf16.msra.mxu0 %v4860_v37  ;;  %v4654_v20 = vor.u32 %v4653_v7, %v4650_v58  ;;  %v4671_v6 = vshll.u32 %v7907_v23, 16  ;;  %v4632_v59 = vsel %vm6739_vm4, %v4627_v29, %v4631_v18  ;;  %v4641_v0 = vrot.slane %v4640_v28, 4  ;;  %v5455_v30 = vld [vmem:[%s6724_s29 + $0x38] sm:$0xf]  ;;  %v5457_v11 = vld [vmem:[%s6724_s29 + $0x40] sm:$0xf] }
  0xf7   : > { %v4667_v40 = vrot.slane %v4665_v8, 5  ;;  %v5712_v37 = vrot.slane %v5704_v35, 9  ;;  %v5713_v10 = vrot.slane %v5705_v36, 9  ;;  %v4807_v53 = vrot.slane %v7846_v34, 5  ;;  %v6493_v52 = vld [vmem:[%s6724_s29 + $0x38] ss:$8 sps:$4 sm:$0xff]  }
  0xf8   : > { %v4655_v46 = vrot.slane %v4654_v20, 4  ;;  %v4673_v42 = vrot.slane %v4671_v6, 5  ;;  %v4646_v22 = vsel %vm6739_vm4, %v4641_v0, %v4645_v38  ;;  %v5714_v44 = vrot.slane %v5706_v2, 9  ;;  %v5709_v20 = vld [vmem:[%s7171_s18 + $0x38] sm:$0xe] }
  0xf9   : > { %v4668_v32 = vor.u32 %v4667_v40, %v4664_v24  ;;  %v5698_v9 = vcombine.low %v4632_v59, %v4646_v22  ;;  %v4804_v26 = vsel %vm6839_vm7, %v5712_v37, %v4803_v15  ;;  %v4811_v57 = vrot.slane %v7857_v1, 5  ;;  %v6496_v15 = vld [vmem:[%s6724_s29 + $0x34] sm:$0x1]  ;;  %v5710_v0 = vld [vmem:[%s7171_s18 + $0x40] sm:$0xe]  ;;  %s5218_s29 = sshll.u32 %s8055_s21, 3 }
  0xfa   : > { %v4660_v55 = vsel %vm6739_vm4, %v4655_v46, %v4659_v47  ;;  %v4808_v41 = vsel %vm6839_vm7, %v5713_v10, %v4807_v53  ;;  %v5715_v34 = vrot.slane %v5707_v17, 9  ;;  %v4815_v27 = vrot.slane %v7867_v63, 5  ;;  %v5711_v2 = vld [vmem:[%s7171_s18 + $0x48] sm:$0xe] }
  0xfb   : > { %v4669_v19 = vrot.slane %v4668_v32, 4  ;;  %6162 = vmatprep.mubr.msk.bf16.mxu0 %vm538_vm3, %v5698_v9  ;;  %v5721_v14 = vcombine.low %v4804_v26, %v4808_v41  ;;  %v4812_v21 = vsel %vm6839_vm7, %v5714_v44, %v4811_v57  ;;  %v2593_v1 = vshrl.u32 %v5451_v13, 16 }
  0xfc   : > { %6029 = vmatmul.mubr.msk.bf16.vlgmr.msra.gmra.mrb[0].mxu1 %vm538_vm3, %v6491_v16  ;;  %v2596_v18 = vshll.u32 %v5451_v13, 16  ;;  %v4816_v63 = vsel %vm6839_vm7, %v5715_v34, %v4815_v27  ;;  %v2602_v33 = vshll.u32 %v6495_v25, 16  ;;  %v2607_v31 = vshrl.u32 %v5453_v51, 16 }
  0xfd   : > { %6177 = vmatpush3.bf16.msra.mxu1 %v6614_v3  ;;  %v4674_v4 = vsel %vm6739_vm4, %v4669_v19, %v4673_v42  ;;  %6032 = vmatprep.mubr.msk.bf16.mxu1 %vm538_vm3, %v6492_v45  ;;  %v5722_v49 = vcombine.low %v4812_v21, %v4816_v63  ;;  %v2595_v60 = vrot.slane %v2593_v1, 4  ;;  %v5708_v3 = vld [vmem:[%s7171_s18 + $0x30] sm:$0xe]  ;;  %v2610_v12 = vshll.u32 %v5453_v51, 16  ;;  %s5219_s18 = sshll.u32 %s8049_s22, 6 }
  0xfe   : > { %v5699_v62 = vcombine.low %v4660_v55, %v4674_v4  ;;  %v2598_v48 = vrot.slane %v2596_v18, 5  ;;  %v2604_v58 = vrot.slane %v2602_v33, 5  ;;  %v2609_v7 = vrot.slane %v2607_v31, 4  ;;  %s380_s28 = sadd.s32 %s5219_s18, %s5218_s29  ;;  %v5729_v63 = vld [vmem:[%s8027_s4] ss:$0 sm:$0xff] }
  0xff   : > { %v2616_v29 = vshll.u32 %v6496_v15, 16  ;;  %v2621_v38 = vshrl.u32 %v5455_v30, 16  ;;  %v2624_v8 = vshll.u32 %v5455_v30, 16  ;;  %v2635_v16 = vshrl.u32 %v5457_v11, 16  ;;  %s5220_s9 = sshll.u32 %s380_s28, 2 }
 0x100   : > { %6163 = vmatmul.mubr.msk.bf16.gmra.mrb[4].mxu0 %vm538_vm3, %v5699_v62  ;;  %v2599_v28 = vor.u32 %v2598_v48, %v2595_v60  ;;  %v2612_v47 = vrot.slane %v2610_v12, 5  ;;  %v2638_v6 = vshll.u32 %v5457_v11, 16  ;;  %v5716_v59 = vrot.slane %v5708_v3, 9  ;;  %s7997_s12 = scalar_lea.vmem %s8028_s5, %s5220_s9 }
 0x101   : > { %6168 = vmatprep.mubr.msk.bf16.mxu0 %vm538_vm3, %v5721_v14  ;;  %v2618_v24 = vrot.slane %v2616_v29, 5  ;;  %v2623_v45 = vrot.slane %v2621_v38, 4  ;;  %v2626_v35 = vrot.slane %v2624_v8, 5  ;;  %v2637_v36 = vrot.slane %v2635_v16, 4 }
 0x102   : > { %v2600_v40 = vrot.slane %v2599_v28, 4  ;;  %v2613_v46 = vor.u32 %v2612_v47, %v2609_v7  ;;  %v2640_v42 = vrot.slane %v2638_v6, 5  ;;  %v4819_v37 = vrot.slane %v7885_v39, 5 }
 0x103   : > { %v5717_v10 = vrot.slane %v5709_v20, 9  ;;  %v2627_v32 = vor.u32 %v2626_v35, %v2623_v45  ;;  %v4823_v53 = vrot.slane %v7892_v56, 5  ;;  %v5718_v17 = vrot.slane %v5710_v0, 9 }
 0x104   : > { %6033 = vmatmul.mubr.msk.bf16.gmra.mrb[4].mxu1 %vm538_vm3, %v6493_v52  ;;  %v2605_v22 = vsel %vm6739_vm4, %v2600_v40, %v2604_v58  ;;  %v2614_v44 = vrot.slane %v2613_v46, 4  ;;  %v2641_v13 = vor.u32 %v2640_v42, %v2637_v36  ;;  %v4820_v9 = vsel %vm6839_vm7, %v5716_v59, %v4819_v37 }
 0x105   : > { %v4827_v55 = vrot.slane %v7899_v54, 5  ;;  %v2628_v26 = vrot.slane %v2627_v32, 4  ;;  %v4824_v39 = vsel %vm6839_vm7, %v5717_v10, %v4823_v53  ;;  %v5719_v57 = vrot.slane %v5711_v2, 9 }
 0x106   : > { %v4831_v51 = vrot.slane %v7907_v23, 5  ;;  %v2619_v19 = vsel %vm6739_vm4, %v2614_v44, %v2618_v24  ;;  %v2642_v41 = vrot.slane %v2641_v13, 4  ;;  %v5723_v56 = vcombine.low %v4820_v9, %v4824_v39 }
 0x107   : > { %v5462_v34 = vcombine.low %v2605_v22, %v2619_v19  ;;  %v2633_v54 = vsel %vm6739_vm4, %v2628_v26, %v7811_v5  ;;  %v4828_v23 = vsel %vm6839_vm7, %v5718_v17, %v4827_v55 }
 0x108   : > { %6169 = vmatmul.mubr.msk.bf16.vlgmr.msra.gmra.mrb[0].mxu0 %vm538_vm3, %v5722_v49  ;;  %v2647_v27 = vsel %vm6739_vm4, %v2642_v41, %v7815_v50  ;;  %v4832_v14 = vsel %vm6839_vm7, %v5719_v57, %v4831_v51 }
 0x109   : > { %6172 = vmatprep.mubr.msk.bf16.mxu0 %vm538_vm3, %v5723_v56  ;;  %6042 = vmatprep.mubr.msk.bf16.mxu1 %vm538_vm3, %v5462_v34  ;;  %v5463_v21 = vcombine.low %v2633_v54, %v2647_v27  ;;  %v5724_v1 = vcombine.low %v4828_v23, %v4832_v14 }
 0x110   : > { %6043 = vmatmul.mubr.msk.bf16.vlgmr.msra.gmra.mrb[4].mxu1 %vm538_vm3, %v5463_v21  ;;  %6173 = vmatmul.mubr.msk.bf16.gmra.mrb[4].mxu0 %vm538_vm3, %v5724_v1 }
 0x1cf   : > { %v6030_v5 = vpop.f32.mrb[0].mxu1 }
 0x1d0   : > { %v2481_v43 = vpop.f32.mrb[1].mxu1 }
 0x1d1   : > { %v6031_v50 = vpop.f32.mrb[2].mxu1 }
 0x1d2   : > { %v2484_v18 = vpop.f32.mrb[3].mxu1 }
 0x1db   : > { %v6170_v61 = vpop.f32.mrb[0].mxu0 }
 0x1dc   : > { %v6178_v4 = vadd.f32 %v6170_v61, %v6030_v5  ;;  %v4896_v25 = vpop.f32.mrb[1].mxu0 }
 0x1dd   : > { %v6179_v33 = vadd.f32 %v4896_v25, %v2481_v43  ;;  %v6171_v31 = vpop.f32.mrb[2].mxu0 }
 0x1de   : > { %v6180_v30 = vadd.f32 %v6171_v31, %v6031_v50  ;;  %v4899_v11 = vpop.f32.mrb[3].mxu0  ;;  %v4944_v60 = vadd.f32 %v6178_v4, %v5729_v63 }
 0x1df   : > { %v4942_v62 = vadd.f32 %v6179_v33, %v5729_v63  ;;  %v6181_v49 = vadd.f32 %v4899_v11, %v2484_v18 }
 0x1e0   : > { %v4945_v48 = vadd.f32 %v6180_v30, %v5729_v63  ;;  %v5006_v20 = vmul.f32 %v4944_v60, %v4944_v60 }
 0x1e1   : > { %v4943_v3 = vadd.f32 %v6181_v49, %v5729_v63  ;;  %v5004_v58 = vmul.f32 %v4942_v62, %v4942_v62 }
 0x1e2   : > { %v5756_v52 = vpack.c.bf16 %v4945_v48, %v4944_v60  ;;  %v5007_v40 = vmul.f32 %v4945_v48, %v4945_v48 }
 0x1e3   : > { %v5751_v7 = vpack.c.bf16 %v4943_v3, %v4942_v62  ;;  %v4990_v12 = vadd.f32 %v4943_v3, %v4942_v62  ;;  %v5005_v15 = vmul.f32 %v4943_v3, %v4943_v3  ;;  %v6044_v29 = vpop.f32.mrb[4].mxu1  ;;  %v6174_v28 = vpop.f32.mrb[4].mxu0 }
 0x1e4   : > { %5768 = vst [vmem:[%s7997_s12 + $0x8] sm:$0xff] %v5756_v52   ;;  %v2727_v38 = vpop.f32.mrb[5].mxu1  ;;  %v6182_v8 = vadd.f32 %v6174_v28, %v6044_v29  ;;  %v4912_v16 = vpop.f32.mrb[5].mxu0 }
 0x1e5   : > { %5752 = vst [vmem:[%s7997_s12] sm:$0xff] %v5751_v7   ;;  %v4991_v47 = vadd.f32 %v4990_v12, %v4944_v60  ;;  %v5012_v24 = vadd.f32 %v5005_v15, %v5004_v58  ;;  %v6045_v6 = vpop.f32.mrb[6].mxu1  ;;  %v6183_v59 = vadd.f32 %v4912_v16, %v2727_v38  ;;  %v6175_v0 = vpop.f32.mrb[6].mxu0 }
 0x1e6   : > { %v2730_v45 = vpop.f32.mrb[7].mxu1  ;;  %v6184_v35 = vadd.f32 %v6175_v0, %v6045_v6  ;;  %v4915_v36 = vpop.f32.mrb[7].mxu0  ;;  %v4948_v2 = vadd.f32 %v6182_v8, %v5729_v63 }
 0x1e7   : > { %v5013_v46 = vadd.f32 %v5012_v24, %v5006_v20  ;;  %v4946_v42 = vadd.f32 %v6183_v59, %v5729_v63  ;;  %v4992_v37 = vadd.f32 %v4991_v47, %v4945_v48  ;;  %v6185_v10 = vadd.f32 %v4915_v36, %v2730_v45 }
 0x1e8   : > { %v4949_v22 = vadd.f32 %v6184_v35, %v5729_v63  ;;  %v5010_v57 = vmul.f32 %v4948_v2, %v4948_v2 }
 0x1e9   : > { %v4993_v32 = vadd.f32 %v4992_v37, %v4946_v42  ;;  %v5008_v53 = vmul.f32 %v4946_v42, %v4946_v42  ;;  %v5014_v17 = vadd.f32 %v5013_v46, %v5007_v40  ;;  %v4947_v44 = vadd.f32 %v6185_v10, %v5729_v63 }
 0x1ea   : > { %v5766_v13 = vpack.c.bf16 %v4949_v22, %v4948_v2  ;;  %v5011_v41 = vmul.f32 %v4949_v22, %v4949_v22 }
 0x1eb   : > { %v5015_v9 = vadd.f32 %v5014_v17, %v5008_v53  ;;  %v5761_v55 = vpack.c.bf16 %v4947_v44, %v4946_v42  ;;  %v4994_v26 = vadd.f32 %v4993_v32, %v4947_v44  ;;  %v5009_v39 = vmul.f32 %v4947_v44, %v4947_v44 }
 0x1ec   : > { %5770 = vst [vmem:[%s7997_s12 + $0x18] sm:$0xff] %v5766_v13  }
 0x1ed   : > { %5769 = vst [vmem:[%s7997_s12 + $0x10] sm:$0xff] %v5761_v55   ;;  %v4995_v51 = vadd.f32 %v4994_v26, %v4948_v2  ;;  %v5016_v19 = vadd.f32 %v5015_v9, %v5009_v39 }
 0x1ef   : > { %v4996_v56 = vadd.f32 %v4995_v51, %v4949_v22  ;;  %v5017_v34 = vadd.f32 %v5016_v19, %v5010_v57 }
 0x1f1   : > { %v4997_v54 = vrot.slane %v4996_v56, 4  ;;  %v5018_v27 = vadd.f32 %v5017_v34, %v5011_v41 }
 0x1f3   : > { %v4998_v23 = vadd.f32 %v4997_v54, %v4996_v56  ;;  %v5019_v14 = vrot.slane %v5018_v27, 4 }
 0x1f5   : > { %v4999_v21 = vrot.slane %v4998_v23, 2  ;;  %v5020_v1 = vadd.f32 %v5019_v14, %v5018_v27 }
 0x1f7   : > { %v5000_v5 = vadd.f32 %v4999_v21, %v4998_v23  ;;  %v5021_v43 = vrot.slane %v5020_v1, 2 }
 0x1f9   : > { %v5001_v50 = vrot.slane %v5000_v5, 1  ;;  %v5022_v18 = vadd.f32 %v5021_v43, %v5020_v1 }
 0x1fb   : > { %v5002_v61 = vadd.f32 %v5001_v50, %v5000_v5  ;;  %v5023_v4 = vrot.slane %v5022_v18, 1 }
 0x1fd   : > { %5003 = vst [vmem:[%s390_s19] sm:$0x1] %v5002_v61  ;;  %v5024_v63 = vadd.f32 %v5023_v4, %v5022_v18 }
 0x1ff   : > { %5025 = vst [vmem:[%s390_s19 + $0x1] sm:$0x1] %v5024_v63 }
 0x200 PF: > { %s17_s25 = sadd.s32 1, %s6535_s25   ;;  %s8038_s21 = smov %s6527_s23 }
 0x201   : > { %p14_p10 = scmp.ge.s32.totalorder %s17_s25, 18   ;;  %s8039_s22 = smov %s6531_s24 }
 0x202   : > { %s8040_s23 = smov %s8043_s26  ;;  %s8041_s24 = smov %s8047_s27 }
 0x203   :  { %16 = sbr.rel (!%p14_p10) target bundleno = 3 (0x3), region = 120 }

</bundles_post_ra>
